<compile_context>
chip_gen: v7x
topology: tpu7x:2x2x1
jax: 0.10.0
libtpu: 0.0.40
codegen_flags: <defaults>
</compile_context>

<pallas_src>
import jax
import jax.numpy as jnp
import numpy as np
from jax import lax
from jax.experimental import pallas as pl
from jax.experimental.pallas import tpu as pltpu


# ----------------------------------------------------------------------------
# Kernel 1: fused bidirectional LSTM recurrence (both directions every step).
#   grid = (T // Tc,)  time chunks, "arbitrary" (carry in scratch)
#   gf_ref : [Tc, B, 4H] bf16  fwd gate pre-activations (x @ W_ih_f, no bias)
#   gb_ref : [Tc, B, 4H] bf16  bwd gate pre-activations, block index reversed
#   bias   : [2, 1, 4H]  f32   (b_ih + b_hh) per direction, gate-reordered
#   whh    : [2, H, 4H]  bf16  recurrent weights per direction
#   of_ref : [Tc, B, H]  bf16  fwd hidden states (original time order)
#   ob_ref : [Tc, B, H]  bf16  bwd hidden states (written un-reversed)
#   h_sc/c_sc : VMEM [2, B, H] f32 carries, persist across time chunks
# ----------------------------------------------------------------------------
def _bilstm_kernel(gf_ref, gb_ref, bias_ref, whh_ref, of_ref, ob_ref, h_sc, c_sc):
    Tc, B, four_h = gf_ref.shape
    H = four_h // 4

    @pl.when(pl.program_id(0) == 0)
    def _init():
        h_sc[...] = jnp.zeros_like(h_sc)
        c_sc[...] = jnp.zeros_like(c_sc)

    whh_f = whh_ref[0]                       # bf16 [H, 4H]
    whh_b = whh_ref[1]
    bias_f = bias_ref[0]                     # f32  [1, 4H]
    bias_b = bias_ref[1]

    def cell(g_bf16, bias, h, c, whh):
        # gate layout: [ i | f | o | g_cell ] -> two contiguous nonlinearities
        pre = (jnp.dot(h.astype(jnp.bfloat16), whh,
                       preferred_element_type=jnp.float32)
               + g_bf16.astype(jnp.float32) + bias)
        s = jax.nn.sigmoid(pre[:, :3 * H])
        g_cell = jnp.tanh(pre[:, 3 * H:])
        c_new = s[:, H:2 * H] * c + s[:, :H] * g_cell
        h_new = s[:, 2 * H:3 * H] * jnp.tanh(c_new)
        return h_new, c_new

    def step(t, carry):
        hf, cf, hb, cb = carry
        # Two independent dependence chains per step -> the LLO scheduler
        # interleaves their MXU pushes / EUP ops (single-TC friendly).
        hf, cf = cell(gf_ref[t], bias_f, hf, cf, whh_f)
        hb, cb = cell(gb_ref[Tc - 1 - t], bias_b, hb, cb, whh_b)
        of_ref[t] = hf.astype(jnp.bfloat16)
        ob_ref[Tc - 1 - t] = hb.astype(jnp.bfloat16)   # un-reversed in-place
        return hf, cf, hb, cb

    carry0 = (h_sc[0], c_sc[0], h_sc[1], c_sc[1])
    unroll = True if Tc <= 32 else 4
    hf, cf, hb, cb = lax.fori_loop(0, Tc, step, carry0, unroll=unroll)
    h_sc[0] = hf
    c_sc[0] = cf
    h_sc[1] = hb
    c_sc[1] = cb


def _reorder_gate_cols(w):
    """[..., 4H] in PyTorch gate order (i, f, g, o) -> kernel order (i, f, o, g)."""
    H = w.shape[-1] // 4
    return jnp.concatenate(
        [w[..., :2 * H], w[..., 3 * H:], w[..., 2 * H:3 * H]], axis=-1)


def _pick_time_chunk(T, B, H, budget_bytes=10 * 1024 * 1024):
    """Largest divisor of T whose double-buffered bf16 gate/output streams fit
    the VMEM budget (safe under v5e's 16 MiB scoped default, v7x's 32 MiB)."""
    per_t = 2 * 2 * (B * 4 * H * 2 + B * H * 2)   # 2 dirs x double buffer, bf16
    tc_max = max(1, budget_bytes // per_t)
    if T <= tc_max:
        return T
    for tc in range(tc_max, 0, -1):
        if T % tc == 0:
            return tc
    return 1


def bilstm_encode_tm(x_embed_tm, p):
    """x_embed_tm: [T, B, E] f32 -> (h_fwd, h_bwd), each [T, B, H] bf16, time-major."""
    T, B, E = x_embed_tm.shape
    H = p["w_hh_f"].shape[1]

    # Hoisted input projection (one big MXU matmul per direction).  Bias is NOT
    # added here (folded into the kernel) and the gate stream is stored in bf16.
    x_bf = x_embed_tm.astype(jnp.bfloat16)
    wih_f = _reorder_gate_cols(p["w_ih_f"].T).astype(jnp.bfloat16)   # [E, 4H]
    wih_b = _reorder_gate_cols(p["w_ih_b"].T).astype(jnp.bfloat16)
    gates_f = jnp.einsum("tbe,eh->tbh", x_bf, wih_f,
                         preferred_element_type=jnp.float32).astype(jnp.bfloat16)
    gates_b = jnp.einsum("tbe,eh->tbh", x_bf, wih_b,
                         preferred_element_type=jnp.float32).astype(jnp.bfloat16)

    bias = jnp.stack([_reorder_gate_cols(p["b_ih_f"] + p["b_hh_f"]),
                      _reorder_gate_cols(p["b_ih_b"] + p["b_hh_b"])])[:, None, :]
    whh = jnp.stack([_reorder_gate_cols(p["w_hh_f"].T),
                     _reorder_gate_cols(p["w_hh_b"].T)]).astype(jnp.bfloat16)

    tc = _pick_time_chunk(T, B, H)
    nc = T // tc

    flops = 2 * T * B * (2 * H * 4 * H + 10 * H)
    transc = 2 * T * B * 5 * H
    bytes_accessed = ((gates_f.size + gates_b.size) * 2 + whh.size * 2
                      + bias.size * 4 + 2 * T * B * H * 2)

    h_fwd, h_bwd = pl.pallas_call(
        _bilstm_kernel,
        out_shape=(jax.ShapeDtypeStruct((T, B, H), jnp.bfloat16),
                   jax.ShapeDtypeStruct((T, B, H), jnp.bfloat16)),
        grid=(nc,),
        in_specs=[
            pl.BlockSpec((tc, B, 4 * H), lambda c: (c, 0, 0)),
            pl.BlockSpec((tc, B, 4 * H), lambda c, _n=nc: (_n - 1 - c, 0, 0)),
            pl.BlockSpec((2, 1, 4 * H), lambda c: (0, 0, 0)),
            pl.BlockSpec((2, H, 4 * H), lambda c: (0, 0, 0)),
        ],
        out_specs=(
            pl.BlockSpec((tc, B, H), lambda c: (c, 0, 0)),
            pl.BlockSpec((tc, B, H), lambda c, _n=nc: (_n - 1 - c, 0, 0)),
        ),
        scratch_shapes=[pltpu.VMEM((2, B, H), jnp.float32),
                        pltpu.VMEM((2, B, H), jnp.float32)],
        compiler_params=pltpu.CompilerParams(
            dimension_semantics=("arbitrary",),
            vmem_limit_bytes=32 * 1024 * 1024),
        cost_estimate=pl.CostEstimate(flops=flops, transcendentals=transc,
                                      bytes_accessed=bytes_accessed),
    )(gates_f, gates_b, bias, whh)
    return h_fwd, h_bwd


# ----------------------------------------------------------------------------
# Kernel 2: per-batch NT bmm: logits[b] = queries[b] @ keys[b]^T (contract on H)
# ----------------------------------------------------------------------------
def _bmm_nt_kernel(q_ref, k_ref, o_ref):
    o_ref[...] = lax.dot_general(
        q_ref[...], k_ref[...],
        dimension_numbers=(((1,), (1,)), ((), ())),
        preferred_element_type=jnp.float32)


def _round_up(n, m):
    return ((n + m - 1) // m) * m


def attention_logits(hx_fwd, hx_bwd, hy_fwd, hy_bwd, wk, bk, wq, bq):
    """Time-major per-direction encoder outputs -> Bernoulli logits [B, T_y, T_x]."""
    T_x, B, H = hx_fwd.shape
    T_y = hy_fwd.shape[0]
    Hk = wk.shape[0]

    def project(h_f, h_b, w, b):
        # Linear(concat(fwd, bwd)) split per direction: consumes the encoder
        # outputs directly (time-major, bf16) -- no concat / transpose pass.
        wf = w[:, :H].T.astype(jnp.bfloat16)    # [H, Hk]
        wb = w[:, H:].T.astype(jnp.bfloat16)
        out = (jnp.einsum("tbh,hk->btk", h_f, wf, preferred_element_type=jnp.float32)
               + jnp.einsum("tbh,hk->btk", h_b, wb, preferred_element_type=jnp.float32)
               + b)
        return out.astype(jnp.bfloat16)         # [B, T, Hk]

    keys = project(hx_fwd, hx_bwd, wk, bk)        # [B, T_x, Hk]
    queries = project(hy_fwd, hy_bwd, wq, bq)     # [B, T_y, Hk]

    # Pad so the logits block is lane-dense (last dim % 128 == 0, sublane % 8)
    # -> unmasked vector stores; padding sliced off outside (no-op if aligned).
    T_xp = _round_up(T_x, 128)
    T_yp = _round_up(T_y, 8)
    keys_p = jnp.pad(keys, ((0, 0), (0, T_xp - T_x), (0, 0)))
    queries_p = jnp.pad(queries, ((0, 0), (0, T_yp - T_y), (0, 0)))

    flops = 2 * B * T_yp * T_xp * Hk
    bytes_accessed = keys_p.size * 2 + queries_p.size * 2 + B * T_yp * T_xp * 4

    logits_p = pl.pallas_call(
        _bmm_nt_kernel,
        out_shape=jax.ShapeDtypeStruct((B, T_yp, T_xp), jnp.float32),
        grid=(B,),
        in_specs=[
            pl.BlockSpec((None, T_yp, Hk), lambda b: (b, 0, 0)),
            pl.BlockSpec((None, T_xp, Hk), lambda b: (b, 0, 0)),
        ],
        out_specs=pl.BlockSpec((None, T_yp, T_xp), lambda b: (b, 0, 0)),
        compiler_params=pltpu.CompilerParams(
            dimension_semantics=("parallel",)),
        cost_estimate=pl.CostEstimate(flops=flops, transcendentals=0,
                                      bytes_accessed=bytes_accessed),
    )(queries_p, keys_p)
    return logits_p[:, :T_y, :T_x]


# ----------------------------------------------------------------------------
# Parameter init (deterministic, shapes from InferenceNetwork.__init__;
# LSTM weights kept in PyTorch nn.LSTM layout / gate order).
# ----------------------------------------------------------------------------
def init_params(key, src_vocab, tgt_vocab, emb_size, hidden_size, pad_idx):
    ks = jax.random.split(key, 24)
    ki = iter(ks)

    def nrm(k, shape):
        return (0.1 * jax.random.normal(k, shape)).astype(jnp.float32)

    def lstm_params():
        return {
            "w_ih_f": nrm(next(ki), (4 * hidden_size, emb_size)),
            "w_hh_f": nrm(next(ki), (4 * hidden_size, hidden_size)),
            "b_ih_f": nrm(next(ki), (4 * hidden_size,)),
            "b_hh_f": nrm(next(ki), (4 * hidden_size,)),
            "w_ih_b": nrm(next(ki), (4 * hidden_size, emb_size)),
            "w_hh_b": nrm(next(ki), (4 * hidden_size, hidden_size)),
            "b_ih_b": nrm(next(ki), (4 * hidden_size,)),
            "b_hh_b": nrm(next(ki), (4 * hidden_size,)),
        }

    src_emb = nrm(next(ki), (src_vocab, emb_size)).at[pad_idx].set(0.0)
    tgt_emb = nrm(next(ki), (tgt_vocab, emb_size)).at[pad_idx].set(0.0)
    enc_size = 2 * hidden_size   # bidirectional
    return {
        "src_embedder": src_emb,
        "tgt_embedder": tgt_emb,
        "src_encoder": lstm_params(),
        "tgt_encoder": lstm_params(),
        "key_w": nrm(next(ki), (hidden_size, enc_size)),
        "key_b": nrm(next(ki), (hidden_size,)),
        "query_w": nrm(next(ki), (hidden_size, enc_size)),
        "query_b": nrm(next(ki), (hidden_size,)),
    }


# ----------------------------------------------------------------------------
# InferenceNetwork.forward (dist='bernoulli-RF'): returns the Bernoulli logits.
# ----------------------------------------------------------------------------
@jax.jit
def inference_network_forward(params, x, seq_mask_x, seq_len_x, y, seq_mask_y, seq_len_y):
    # seq_mask/seq_len accepted for signature fidelity; the reference forward
    # (unsorted_forward on padded embeddings) does not use them.
    del seq_mask_x, seq_len_x, seq_mask_y, seq_len_y
    # Embed directly into time-major layout (no later transpose pass).
    x_embed_tm = jnp.take(params["src_embedder"], x.T, axis=0)      # [T_x, B, E]
    y_embed_tm = jnp.take(params["tgt_embedder"], y.T, axis=0)      # [T_y, B, E]
    hx_fwd, hx_bwd = bilstm_encode_tm(x_embed_tm, params["src_encoder"])
    hy_fwd, hy_bwd = bilstm_encode_tm(y_embed_tm, params["tgt_encoder"])
    logits = attention_logits(hx_fwd, hx_bwd, hy_fwd, hy_bwd,
                              params["key_w"], params["key_b"],
                              params["query_w"], params["query_b"])
    # TODO(synk): BernoulliREINFORCE distribution wrapper has no Pallas/JAX-array
    # equivalent; the kernel output is its `logits` parameter.
    return logits


# ----------------------------------------------------------------------------
# Pure-JAX f32 reference (mirrors the PyTorch forward) for correctness check.
# ----------------------------------------------------------------------------
def _reference_logits(params, x, y):
    def lstm_dir(xs, w_ih, w_hh, b_ih, b_hh):
        H = w_hh.shape[1]

        def step(carry, x_t):
            h, c = carry
            g = x_t @ w_ih.T + h @ w_hh.T + b_ih + b_hh   # PyTorch order i,f,g,o
            i = jax.nn.sigmoid(g[:, :H])
            f = jax.nn.sigmoid(g[:, H:2 * H])
            gc = jnp.tanh(g[:, 2 * H:3 * H])
            o = jax.nn.sigmoid(g[:, 3 * H:])
            c = f * c + i * gc
            h = o * jnp.tanh(c)
            return (h, c), h

        Bk = xs.shape[1]
        init = (jnp.zeros((Bk, H), jnp.float32), jnp.zeros((Bk, H), jnp.float32))
        return lax.scan(step, init, xs)[1]                # [T, B, H]

    def encode(emb, ids, p):
        xs = jnp.take(emb, ids.T, axis=0)                 # [T, B, E]
        hf = lstm_dir(xs, p["w_ih_f"], p["w_hh_f"], p["b_ih_f"], p["b_hh_f"])
        hb = lstm_dir(xs[::-1], p["w_ih_b"], p["w_hh_b"],
                      p["b_ih_b"], p["b_hh_b"])[::-1]
        return jnp.concatenate([hf, hb], -1).transpose(1, 0, 2)   # [B, T, 2H]

    x_enc = encode(params["src_embedder"], x, params["src_encoder"])
    y_enc = encode(params["tgt_embedder"], y, params["tgt_encoder"])
    keys = x_enc @ params["key_w"].T + params["key_b"]
    queries = y_enc @ params["query_w"].T + params["query_b"]
    return jnp.einsum("byh,bxh->byx", queries, keys)


if __name__ == "__main__":
    B, T_x, T_y = 2, 8, 6
    src_vocab, tgt_vocab = 20, 22
    emb_size, hidden_size, pad_idx = 16, 32, 0

    key = jax.random.PRNGKey(0)
    k_params, k_x, k_y = jax.random.split(key, 3)

    params = init_params(k_params, src_vocab, tgt_vocab, emb_size, hidden_size, pad_idx)

    x = jax.random.randint(k_x, (B, T_x), 1, src_vocab, dtype=jnp.int32)
    y = jax.random.randint(k_y, (B, T_y), 1, tgt_vocab, dtype=jnp.int32)
    # pad tails to exercise padding_idx handling
    x = x.at[:, -2:].set(pad_idx)
    y = y.at[:, -1:].set(pad_idx)
    seq_mask_x = (x != pad_idx)
    seq_mask_y = (y != pad_idx)
    seq_len_x = seq_mask_x.sum(-1).astype(jnp.int32)
    seq_len_y = seq_mask_y.sum(-1).astype(jnp.int32)

    logits = inference_network_forward(params, x, seq_mask_x, seq_len_x,
                                       y, seq_mask_y, seq_len_y)
    jax.block_until_ready(logits)
    assert logits.shape == (B, T_y, T_x), logits.shape
    assert bool(jnp.all(jnp.isfinite(logits)))

    ref = _reference_logits(params, x, y)
    np.testing.assert_allclose(np.asarray(logits), np.asarray(ref),
                               atol=5e-3, rtol=5e-2)
    print("KERNEL_OK")
</pallas_src>

<mosaic_0001>
module attributes {stable_mosaic.version = 11 : i64} {
  func.func @_bilstm_kernel(%arg0: i32, %arg1: memref<6x2x128xbf16, #tpu.memory_space<vmem>>, %arg2: memref<6x2x128xbf16, #tpu.memory_space<vmem>>, %arg3: memref<2x1x128xf32, #tpu.memory_space<vmem>>, %arg4: memref<2x32x128xbf16, #tpu.memory_space<vmem>>, %arg5: memref<6x2x32xbf16, #tpu.memory_space<vmem>>, %arg6: memref<6x2x32xbf16, #tpu.memory_space<vmem>>, %arg7: memref<2x2x32xf32, #tpu.memory_space<vmem>>, %arg8: memref<2x2x32xf32, #tpu.memory_space<vmem>>) attributes {dimension_semantics = [#tpu.dimension_semantics<arbitrary>], iteration_bounds = array<i64: 1>, scalar_prefetch = 0 : i64, scratch_operands = 2 : i64, tpu.core_type = #tpu.core_type<tc>, window_params = [{transform_indices = @transform_0, window_bounds = array<i64: 6, 2, 128>}, {transform_indices = @transform_1, window_bounds = array<i64: 6, 2, 128>}, {pipeline_mode = #tpu.pipeline_mode<synchronous>, transform_indices = @transform_2, window_bounds = array<i64: 2, 1, 128>}, {pipeline_mode = #tpu.pipeline_mode<synchronous>, transform_indices = @transform_3, window_bounds = array<i64: 2, 32, 128>}, {transform_indices = @transform_4, window_bounds = array<i64: 6, 2, 32>}, {transform_indices = @transform_5, window_bounds = array<i64: 6, 2, 32>}]} {
    %c0_i32 = arith.constant 0 : i32
    %0 = arith.cmpi eq, %arg0, %c0_i32 : i32
    %1 = arith.extui %0 : i1 to i32
    %c0_i32_0 = arith.constant 0 : i32
    %2 = arith.cmpi ne, %1, %c0_i32_0 : i32
    scf.if %2 {
      %cst_119 = arith.constant 0.000000e+00 : f32
      %403 = vector.broadcast %cst_119 : f32 to vector<2x2x32xf32>
      %c0_120 = arith.constant 0 : index
      %c0_121 = arith.constant 0 : index
      %c0_122 = arith.constant 0 : index
      %404 = vector.load %arg7[%c0_120, %c0_121, %c0_122] : memref<2x2x32xf32, #tpu.memory_space<vmem>>, vector<2x2x32xf32>
      tpu.vector_store %arg7[%c0_120, %c0_121, %c0_122], %403 {strides = array<i32>} : memref<2x2x32xf32, #tpu.memory_space<vmem>>, vector<2x2x32xf32>,
      %cst_123 = arith.constant 0.000000e+00 : f32
      %405 = vector.broadcast %cst_123 : f32 to vector<2x2x32xf32>
      %c0_124 = arith.constant 0 : index
      %c0_125 = arith.constant 0 : index
      %c0_126 = arith.constant 0 : index
      %406 = vector.load %arg8[%c0_124, %c0_125, %c0_126] : memref<2x2x32xf32, #tpu.memory_space<vmem>>, vector<2x2x32xf32>
      tpu.vector_store %arg8[%c0_124, %c0_125, %c0_126], %405 {strides = array<i32>} : memref<2x2x32xf32, #tpu.memory_space<vmem>>, vector<2x2x32xf32>,
    } else {
    }
    %c0 = arith.constant 0 : index
    %c0_1 = arith.constant 0 : index
    %c0_2 = arith.constant 0 : index
    %3 = vector.load %arg4[%c0, %c0_1, %c0_2] : memref<2x32x128xbf16, #tpu.memory_space<vmem>>, vector<1x32x128xbf16>
    %4 = vector.shape_cast %3 : vector<1x32x128xbf16> to vector<32x128xbf16>
    %c1 = arith.constant 1 : index
    %c0_3 = arith.constant 0 : index
    %c0_4 = arith.constant 0 : index
    %5 = vector.load %arg4[%c1, %c0_3, %c0_4] : memref<2x32x128xbf16, #tpu.memory_space<vmem>>, vector<1x32x128xbf16>
    %6 = vector.shape_cast %5 : vector<1x32x128xbf16> to vector<32x128xbf16>
    %c0_5 = arith.constant 0 : index
    %c0_6 = arith.constant 0 : index
    %c0_7 = arith.constant 0 : index
    %7 = vector.load %arg3[%c0_5, %c0_6, %c0_7] : memref<2x1x128xf32, #tpu.memory_space<vmem>>, vector<1x1x128xf32>
    %8 = vector.shape_cast %7 : vector<1x1x128xf32> to vector<1x128xf32>
    %c1_8 = arith.constant 1 : index
    %c0_9 = arith.constant 0 : index
    %c0_10 = arith.constant 0 : index
    %9 = vector.load %arg3[%c1_8, %c0_9, %c0_10] : memref<2x1x128xf32, #tpu.memory_space<vmem>>, vector<1x1x128xf32>
    %10 = vector.shape_cast %9 : vector<1x1x128xf32> to vector<1x128xf32>
    %c0_11 = arith.constant 0 : index
    %c0_12 = arith.constant 0 : index
    %c0_13 = arith.constant 0 : index
    %11 = vector.load %arg7[%c0_11, %c0_12, %c0_13] : memref<2x2x32xf32, #tpu.memory_space<vmem>>, vector<1x2x32xf32>
    %12 = vector.shape_cast %11 : vector<1x2x32xf32> to vector<2x32xf32>
    %c0_14 = arith.constant 0 : index
    %c0_15 = arith.constant 0 : index
    %c0_16 = arith.constant 0 : index
    %13 = vector.load %arg8[%c0_14, %c0_15, %c0_16] : memref<2x2x32xf32, #tpu.memory_space<vmem>>, vector<1x2x32xf32>
    %14 = vector.shape_cast %13 : vector<1x2x32xf32> to vector<2x32xf32>
    %c1_17 = arith.constant 1 : index
    %c0_18 = arith.constant 0 : index
    %c0_19 = arith.constant 0 : index
    %15 = vector.load %arg7[%c1_17, %c0_18, %c0_19] : memref<2x2x32xf32, #tpu.memory_space<vmem>>, vector<1x2x32xf32>
    %16 = vector.shape_cast %15 : vector<1x2x32xf32> to vector<2x32xf32>
    %c1_20 = arith.constant 1 : index
    %c0_21 = arith.constant 0 : index
    %c0_22 = arith.constant 0 : index
    %17 = vector.load %arg8[%c1_20, %c0_21, %c0_22] : memref<2x2x32xf32, #tpu.memory_space<vmem>>, vector<1x2x32xf32>
    %18 = vector.shape_cast %17 : vector<1x2x32xf32> to vector<2x32xf32>
    %c0_i32_23 = arith.constant 0 : i32
    %19 = arith.index_cast %c0_i32_23 : i32 to index
    %c0_24 = arith.constant 0 : index
    %c0_25 = arith.constant 0 : index
    %20 = vector.load %arg1[%19, %c0_24, %c0_25] : memref<6x2x128xbf16, #tpu.memory_space<vmem>>, vector<1x2x128xbf16>
    %21 = vector.shape_cast %20 : vector<1x2x128xbf16> to vector<2x128xbf16>
    %22 = arith.truncf %12 : vector<2x32xf32> to vector<2x32xbf16>
    %cst = arith.constant dense<0.000000e+00> : vector<2x128xf32>
    %23 = tpu.matmul %22, %4, %cst {dimension_numbers = #tpu.dot_dimension_numbers<[1], [0], [0], [1], [0, 0, 1, 1], [], []>} : vector<2x32xbf16>, vector<32x128xbf16>, vector<2x128xf32> -> vector<2x128xf32>
    %24 = arith.extf %21 : vector<2x128xbf16> to vector<2x128xf32>
    %25 = arith.addf %23, %24 : vector<2x128xf32>
    %26 = vector.broadcast %8 : vector<1x128xf32> to vector<2x128xf32>
    %27 = arith.addf %25, %26 : vector<2x128xf32>
    %28 = vector.extract_strided_slice %27 {offsets = [0, 0], sizes = [2, 96], strides = [1, 1]} : vector<2x128xf32> to vector<2x96xf32>
    %29 = arith.negf %28 : vector<2x96xf32>
    %30 = math.exp %29 : vector<2x96xf32>
    %cst_26 = arith.constant 1.000000e+00 : f32
    %31 = vector.broadcast %cst_26 : f32 to vector<2x96xf32>
    %32 = arith.addf %31, %30 : vector<2x96xf32>
    %33 = arith.divf %31, %32 : vector<2x96xf32>
    %34 = vector.extract_strided_slice %27 {offsets = [0, 96], sizes = [2, 32], strides = [1, 1]} : vector<2x128xf32> to vector<2x32xf32>
    %35 = math.tanh %34 : vector<2x32xf32>
    %36 = vector.extract_strided_slice %33 {offsets = [0, 32], sizes = [2, 32], strides = [1, 1]} : vector<2x96xf32> to vector<2x32xf32>
    %37 = arith.mulf %36, %14 : vector<2x32xf32>
    %38 = vector.extract_strided_slice %33 {offsets = [0, 0], sizes = [2, 32], strides = [1, 1]} : vector<2x96xf32> to vector<2x32xf32>
    %39 = arith.mulf %38, %35 : vector<2x32xf32>
    %40 = arith.addf %37, %39 : vector<2x32xf32>
    %41 = vector.extract_strided_slice %33 {offsets = [0, 64], sizes = [2, 32], strides = [1, 1]} : vector<2x96xf32> to vector<2x32xf32>
    %42 = math.tanh %40 : vector<2x32xf32>
    %43 = arith.mulf %41, %42 : vector<2x32xf32>
    %c5_i32 = arith.constant 5 : i32
    %44 = arith.subi %c5_i32, %c0_i32_23 : i32
    %45 = arith.index_cast %44 : i32 to index
    %c0_27 = arith.constant 0 : index
    %c0_28 = arith.constant 0 : index
    %46 = vector.load %arg2[%45, %c0_27, %c0_28] : memref<6x2x128xbf16, #tpu.memory_space<vmem>>, vector<1x2x128xbf16>
    %47 = vector.shape_cast %46 : vector<1x2x128xbf16> to vector<2x128xbf16>
    %48 = arith.truncf %16 : vector<2x32xf32> to vector<2x32xbf16>
    %cst_29 = arith.constant dense<0.000000e+00> : vector<2x128xf32>
    %49 = tpu.matmul %48, %6, %cst_29 {dimension_numbers = #tpu.dot_dimension_numbers<[1], [0], [0], [1], [0, 0, 1, 1], [], []>} : vector<2x32xbf16>, vector<32x128xbf16>, vector<2x128xf32> -> vector<2x128xf32>
    %50 = arith.extf %47 : vector<2x128xbf16> to vector<2x128xf32>
    %51 = arith.addf %49, %50 : vector<2x128xf32>
    %52 = vector.broadcast %10 : vector<1x128xf32> to vector<2x128xf32>
    %53 = arith.addf %51, %52 : vector<2x128xf32>
    %54 = vector.extract_strided_slice %53 {offsets = [0, 0], sizes = [2, 96], strides = [1, 1]} : vector<2x128xf32> to vector<2x96xf32>
    %55 = arith.negf %54 : vector<2x96xf32>
    %56 = math.exp %55 : vector<2x96xf32>
    %cst_30 = arith.constant 1.000000e+00 : f32
    %57 = vector.broadcast %cst_30 : f32 to vector<2x96xf32>
    %58 = arith.addf %57, %56 : vector<2x96xf32>
    %59 = arith.divf %57, %58 : vector<2x96xf32>
    %60 = vector.extract_strided_slice %53 {offsets = [0, 96], sizes = [2, 32], strides = [1, 1]} : vector<2x128xf32> to vector<2x32xf32>
    %61 = math.tanh %60 : vector<2x32xf32>
    %62 = vector.extract_strided_slice %59 {offsets = [0, 32], sizes = [2, 32], strides = [1, 1]} : vector<2x96xf32> to vector<2x32xf32>
    %63 = arith.mulf %62, %18 : vector<2x32xf32>
    %64 = vector.extract_strided_slice %59 {offsets = [0, 0], sizes = [2, 32], strides = [1, 1]} : vector<2x96xf32> to vector<2x32xf32>
    %65 = arith.mulf %64, %61 : vector<2x32xf32>
    %66 = arith.addf %63, %65 : vector<2x32xf32>
    %67 = vector.extract_strided_slice %59 {offsets = [0, 64], sizes = [2, 32], strides = [1, 1]} : vector<2x96xf32> to vector<2x32xf32>
    %68 = math.tanh %66 : vector<2x32xf32>
    %69 = arith.mulf %67, %68 : vector<2x32xf32>
    %70 = arith.truncf %43 : vector<2x32xf32> to vector<2x32xbf16>
    %71 = arith.index_cast %c0_i32_23 : i32 to index
    %c0_31 = arith.constant 0 : index
    %c0_32 = arith.constant 0 : index
    %72 = vector.load %arg5[%71, %c0_31, %c0_32] : memref<6x2x32xbf16, #tpu.memory_space<vmem>>, vector<1x2x32xbf16>
    %73 = vector.shape_cast %72 : vector<1x2x32xbf16> to vector<2x32xbf16>
    %74 = vector.shape_cast %70 : vector<2x32xbf16> to vector<1x2x32xbf16>
    tpu.vector_store %arg5[%71, %c0_31, %c0_32], %74 {strides = array<i32>} : memref<6x2x32xbf16, #tpu.memory_space<vmem>>, vector<1x2x32xbf16>,
    %75 = arith.truncf %69 : vector<2x32xf32> to vector<2x32xbf16>
    %c5_i32_33 = arith.constant 5 : i32
    %76 = arith.subi %c5_i32_33, %c0_i32_23 : i32
    %77 = arith.index_cast %76 : i32 to index
    %c0_34 = arith.constant 0 : index
    %c0_35 = arith.constant 0 : index
    %78 = vector.load %arg6[%77, %c0_34, %c0_35] : memref<6x2x32xbf16, #tpu.memory_space<vmem>>, vector<1x2x32xbf16>
    %79 = vector.shape_cast %78 : vector<1x2x32xbf16> to vector<2x32xbf16>
    %80 = vector.shape_cast %75 : vector<2x32xbf16> to vector<1x2x32xbf16>
    tpu.vector_store %arg6[%77, %c0_34, %c0_35], %80 {strides = array<i32>} : memref<6x2x32xbf16, #tpu.memory_space<vmem>>, vector<1x2x32xbf16>,
    %c1_i32 = arith.constant 1 : i32
    %81 = arith.index_cast %c1_i32 : i32 to index
    %c0_36 = arith.constant 0 : index
    %c0_37 = arith.constant 0 : index
    %82 = vector.load %arg1[%81, %c0_36, %c0_37] : memref<6x2x128xbf16, #tpu.memory_space<vmem>>, vector<1x2x128xbf16>
    %83 = vector.shape_cast %82 : vector<1x2x128xbf16> to vector<2x128xbf16>
    %84 = arith.truncf %43 : vector<2x32xf32> to vector<2x32xbf16>
    %cst_38 = arith.constant dense<0.000000e+00> : vector<2x128xf32>
    %85 = tpu.matmul %84, %4, %cst_38 {dimension_numbers = #tpu.dot_dimension_numbers<[1], [0], [0], [1], [0, 0, 1, 1], [], []>} : vector<2x32xbf16>, vector<32x128xbf16>, vector<2x128xf32> -> vector<2x128xf32>
    %86 = arith.extf %83 : vector<2x128xbf16> to vector<2x128xf32>
    %87 = arith.addf %85, %86 : vector<2x128xf32>
    %88 = vector.broadcast %8 : vector<1x128xf32> to vector<2x128xf32>
    %89 = arith.addf %87, %88 : vector<2x128xf32>
    %90 = vector.extract_strided_slice %89 {offsets = [0, 0], sizes = [2, 96], strides = [1, 1]} : vector<2x128xf32> to vector<2x96xf32>
    %91 = arith.negf %90 : vector<2x96xf32>
    %92 = math.exp %91 : vector<2x96xf32>
    %cst_39 = arith.constant 1.000000e+00 : f32
    %93 = vector.broadcast %cst_39 : f32 to vector<2x96xf32>
    %94 = arith.addf %93, %92 : vector<2x96xf32>
    %95 = arith.divf %93, %94 : vector<2x96xf32>
    %96 = vector.extract_strided_slice %89 {offsets = [0, 96], sizes = [2, 32], strides = [1, 1]} : vector<2x128xf32> to vector<2x32xf32>
    %97 = math.tanh %96 : vector<2x32xf32>
    %98 = vector.extract_strided_slice %95 {offsets = [0, 32], sizes = [2, 32], strides = [1, 1]} : vector<2x96xf32> to vector<2x32xf32>
    %99 = arith.mulf %98, %40 : vector<2x32xf32>
    %100 = vector.extract_strided_slice %95 {offsets = [0, 0], sizes = [2, 32], strides = [1, 1]} : vector<2x96xf32> to vector<2x32xf32>
    %101 = arith.mulf %100, %97 : vector<2x32xf32>
    %102 = arith.addf %99, %101 : vector<2x32xf32>
    %103 = vector.extract_strided_slice %95 {offsets = [0, 64], sizes = [2, 32], strides = [1, 1]} : vector<2x96xf32> to vector<2x32xf32>
    %104 = math.tanh %102 : vector<2x32xf32>
    %105 = arith.mulf %103, %104 : vector<2x32xf32>
    %c5_i32_40 = arith.constant 5 : i32
    %106 = arith.subi %c5_i32_40, %c1_i32 : i32
    %107 = arith.index_cast %106 : i32 to index
    %c0_41 = arith.constant 0 : index
    %c0_42 = arith.constant 0 : index
    %108 = vector.load %arg2[%107, %c0_41, %c0_42] : memref<6x2x128xbf16, #tpu.memory_space<vmem>>, vector<1x2x128xbf16>
    %109 = vector.shape_cast %108 : vector<1x2x128xbf16> to vector<2x128xbf16>
    %110 = arith.truncf %69 : vector<2x32xf32> to vector<2x32xbf16>
    %cst_43 = arith.constant dense<0.000000e+00> : vector<2x128xf32>
    %111 = tpu.matmul %110, %6, %cst_43 {dimension_numbers = #tpu.dot_dimension_numbers<[1], [0], [0], [1], [0, 0, 1, 1], [], []>} : vector<2x32xbf16>, vector<32x128xbf16>, vector<2x128xf32> -> vector<2x128xf32>
    %112 = arith.extf %109 : vector<2x128xbf16> to vector<2x128xf32>
    %113 = arith.addf %111, %112 : vector<2x128xf32>
    %114 = vector.broadcast %10 : vector<1x128xf32> to vector<2x128xf32>
    %115 = arith.addf %113, %114 : vector<2x128xf32>
    %116 = vector.extract_strided_slice %115 {offsets = [0, 0], sizes = [2, 96], strides = [1, 1]} : vector<2x128xf32> to vector<2x96xf32>
    %117 = arith.negf %116 : vector<2x96xf32>
    %118 = math.exp %117 : vector<2x96xf32>
    %cst_44 = arith.constant 1.000000e+00 : f32
    %119 = vector.broadcast %cst_44 : f32 to vector<2x96xf32>
    %120 = arith.addf %119, %118 : vector<2x96xf32>
    %121 = arith.divf %119, %120 : vector<2x96xf32>
    %122 = vector.extract_strided_slice %115 {offsets = [0, 96], sizes = [2, 32], strides = [1, 1]} : vector<2x128xf32> to vector<2x32xf32>
    %123 = math.tanh %122 : vector<2x32xf32>
    %124 = vector.extract_strided_slice %121 {offsets = [0, 32], sizes = [2, 32], strides = [1, 1]} : vector<2x96xf32> to vector<2x32xf32>
    %125 = arith.mulf %124, %66 : vector<2x32xf32>
    %126 = vector.extract_strided_slice %121 {offsets = [0, 0], sizes = [2, 32], strides = [1, 1]} : vector<2x96xf32> to vector<2x32xf32>
    %127 = arith.mulf %126, %123 : vector<2x32xf32>
    %128 = arith.addf %125, %127 : vector<2x32xf32>
    %129 = vector.extract_strided_slice %121 {offsets = [0, 64], sizes = [2, 32], strides = [1, 1]} : vector<2x96xf32> to vector<2x32xf32>
    %130 = math.tanh %128 : vector<2x32xf32>
    %131 = arith.mulf %129, %130 : vector<2x32xf32>
    %132 = arith.truncf %105 : vector<2x32xf32> to vector<2x32xbf16>
    %133 = arith.index_cast %c1_i32 : i32 to index
    %c0_45 = arith.constant 0 : index
    %c0_46 = arith.constant 0 : index
    %134 = vector.load %arg5[%133, %c0_45, %c0_46] : memref<6x2x32xbf16, #tpu.memory_space<vmem>>, vector<1x2x32xbf16>
    %135 = vector.shape_cast %134 : vector<1x2x32xbf16> to vector<2x32xbf16>
    %136 = vector.shape_cast %132 : vector<2x32xbf16> to vector<1x2x32xbf16>
    tpu.vector_store %arg5[%133, %c0_45, %c0_46], %136 {strides = array<i32>} : memref<6x2x32xbf16, #tpu.memory_space<vmem>>, vector<1x2x32xbf16>,
    %137 = arith.truncf %131 : vector<2x32xf32> to vector<2x32xbf16>
    %c5_i32_47 = arith.constant 5 : i32
    %138 = arith.subi %c5_i32_47, %c1_i32 : i32
    %139 = arith.index_cast %138 : i32 to index
    %c0_48 = arith.constant 0 : index
    %c0_49 = arith.constant 0 : index
    %140 = vector.load %arg6[%139, %c0_48, %c0_49] : memref<6x2x32xbf16, #tpu.memory_space<vmem>>, vector<1x2x32xbf16>
    %141 = vector.shape_cast %140 : vector<1x2x32xbf16> to vector<2x32xbf16>
    %142 = vector.shape_cast %137 : vector<2x32xbf16> to vector<1x2x32xbf16>
    tpu.vector_store %arg6[%139, %c0_48, %c0_49], %142 {strides = array<i32>} : memref<6x2x32xbf16, #tpu.memory_space<vmem>>, vector<1x2x32xbf16>,
    %c2_i32 = arith.constant 2 : i32
    %143 = arith.index_cast %c2_i32 : i32 to index
    %c0_50 = arith.constant 0 : index
    %c0_51 = arith.constant 0 : index
    %144 = vector.load %arg1[%143, %c0_50, %c0_51] : memref<6x2x128xbf16, #tpu.memory_space<vmem>>, vector<1x2x128xbf16>
    %145 = vector.shape_cast %144 : vector<1x2x128xbf16> to vector<2x128xbf16>
    %146 = arith.truncf %105 : vector<2x32xf32> to vector<2x32xbf16>
    %cst_52 = arith.constant dense<0.000000e+00> : vector<2x128xf32>
    %147 = tpu.matmul %146, %4, %cst_52 {dimension_numbers = #tpu.dot_dimension_numbers<[1], [0], [0], [1], [0, 0, 1, 1], [], []>} : vector<2x32xbf16>, vector<32x128xbf16>, vector<2x128xf32> -> vector<2x128xf32>
    %148 = arith.extf %145 : vector<2x128xbf16> to vector<2x128xf32>
    %149 = arith.addf %147, %148 : vector<2x128xf32>
    %150 = vector.broadcast %8 : vector<1x128xf32> to vector<2x128xf32>
    %151 = arith.addf %149, %150 : vector<2x128xf32>
    %152 = vector.extract_strided_slice %151 {offsets = [0, 0], sizes = [2, 96], strides = [1, 1]} : vector<2x128xf32> to vector<2x96xf32>
    %153 = arith.negf %152 : vector<2x96xf32>
    %154 = math.exp %153 : vector<2x96xf32>
    %cst_53 = arith.constant 1.000000e+00 : f32
    %155 = vector.broadcast %cst_53 : f32 to vector<2x96xf32>
    %156 = arith.addf %155, %154 : vector<2x96xf32>
    %157 = arith.divf %155, %156 : vector<2x96xf32>
    %158 = vector.extract_strided_slice %151 {offsets = [0, 96], sizes = [2, 32], strides = [1, 1]} : vector<2x128xf32> to vector<2x32xf32>
    %159 = math.tanh %158 : vector<2x32xf32>
    %160 = vector.extract_strided_slice %157 {offsets = [0, 32], sizes = [2, 32], strides = [1, 1]} : vector<2x96xf32> to vector<2x32xf32>
    %161 = arith.mulf %160, %102 : vector<2x32xf32>
    %162 = vector.extract_strided_slice %157 {offsets = [0, 0], sizes = [2, 32], strides = [1, 1]} : vector<2x96xf32> to vector<2x32xf32>
    %163 = arith.mulf %162, %159 : vector<2x32xf32>
    %164 = arith.addf %161, %163 : vector<2x32xf32>
    %165 = vector.extract_strided_slice %157 {offsets = [0, 64], sizes = [2, 32], strides = [1, 1]} : vector<2x96xf32> to vector<2x32xf32>
    %166 = math.tanh %164 : vector<2x32xf32>
    %167 = arith.mulf %165, %166 : vector<2x32xf32>
    %c5_i32_54 = arith.constant 5 : i32
    %168 = arith.subi %c5_i32_54, %c2_i32 : i32
    %169 = arith.index_cast %168 : i32 to index
    %c0_55 = arith.constant 0 : index
    %c0_56 = arith.constant 0 : index
    %170 = vector.load %arg2[%169, %c0_55, %c0_56] : memref<6x2x128xbf16, #tpu.memory_space<vmem>>, vector<1x2x128xbf16>
    %171 = vector.shape_cast %170 : vector<1x2x128xbf16> to vector<2x128xbf16>
    %172 = arith.truncf %131 : vector<2x32xf32> to vector<2x32xbf16>
    %cst_57 = arith.constant dense<0.000000e+00> : vector<2x128xf32>
    %173 = tpu.matmul %172, %6, %cst_57 {dimension_numbers = #tpu.dot_dimension_numbers<[1], [0], [0], [1], [0, 0, 1, 1], [], []>} : vector<2x32xbf16>, vector<32x128xbf16>, vector<2x128xf32> -> vector<2x128xf32>
    %174 = arith.extf %171 : vector<2x128xbf16> to vector<2x128xf32>
    %175 = arith.addf %173, %174 : vector<2x128xf32>
    %176 = vector.broadcast %10 : vector<1x128xf32> to vector<2x128xf32>
    %177 = arith.addf %175, %176 : vector<2x128xf32>
    %178 = vector.extract_strided_slice %177 {offsets = [0, 0], sizes = [2, 96], strides = [1, 1]} : vector<2x128xf32> to vector<2x96xf32>
    %179 = arith.negf %178 : vector<2x96xf32>
    %180 = math.exp %179 : vector<2x96xf32>
    %cst_58 = arith.constant 1.000000e+00 : f32
    %181 = vector.broadcast %cst_58 : f32 to vector<2x96xf32>
    %182 = arith.addf %181, %180 : vector<2x96xf32>
    %183 = arith.divf %181, %182 : vector<2x96xf32>
    %184 = vector.extract_strided_slice %177 {offsets = [0, 96], sizes = [2, 32], strides = [1, 1]} : vector<2x128xf32> to vector<2x32xf32>
    %185 = math.tanh %184 : vector<2x32xf32>
    %186 = vector.extract_strided_slice %183 {offsets = [0, 32], sizes = [2, 32], strides = [1, 1]} : vector<2x96xf32> to vector<2x32xf32>
    %187 = arith.mulf %186, %128 : vector<2x32xf32>
    %188 = vector.extract_strided_slice %183 {offsets = [0, 0], sizes = [2, 32], strides = [1, 1]} : vector<2x96xf32> to vector<2x32xf32>
    %189 = arith.mulf %188, %185 : vector<2x32xf32>
    %190 = arith.addf %187, %189 : vector<2x32xf32>
    %191 = vector.extract_strided_slice %183 {offsets = [0, 64], sizes = [2, 32], strides = [1, 1]} : vector<2x96xf32> to vector<2x32xf32>
    %192 = math.tanh %190 : vector<2x32xf32>
    %193 = arith.mulf %191, %192 : vector<2x32xf32>
    %194 = arith.truncf %167 : vector<2x32xf32> to vector<2x32xbf16>
    %195 = arith.index_cast %c2_i32 : i32 to index
    %c0_59 = arith.constant 0 : index
    %c0_60 = arith.constant 0 : index
    %196 = vector.load %arg5[%195, %c0_59, %c0_60] : memref<6x2x32xbf16, #tpu.memory_space<vmem>>, vector<1x2x32xbf16>
    %197 = vector.shape_cast %196 : vector<1x2x32xbf16> to vector<2x32xbf16>
    %198 = vector.shape_cast %194 : vector<2x32xbf16> to vector<1x2x32xbf16>
    tpu.vector_store %arg5[%195, %c0_59, %c0_60], %198 {strides = array<i32>} : memref<6x2x32xbf16, #tpu.memory_space<vmem>>, vector<1x2x32xbf16>,
    %199 = arith.truncf %193 : vector<2x32xf32> to vector<2x32xbf16>
    %c5_i32_61 = arith.constant 5 : i32
    %200 = arith.subi %c5_i32_61, %c2_i32 : i32
    %201 = arith.index_cast %200 : i32 to index
    %c0_62 = arith.constant 0 : index
    %c0_63 = arith.constant 0 : index
    %202 = vector.load %arg6[%201, %c0_62, %c0_63] : memref<6x2x32xbf16, #tpu.memory_space<vmem>>, vector<1x2x32xbf16>
    %203 = vector.shape_cast %202 : vector<1x2x32xbf16> to vector<2x32xbf16>
    %204 = vector.shape_cast %199 : vector<2x32xbf16> to vector<1x2x32xbf16>
    tpu.vector_store %arg6[%201, %c0_62, %c0_63], %204 {strides = array<i32>} : memref<6x2x32xbf16, #tpu.memory_space<vmem>>, vector<1x2x32xbf16>,
    %c3_i32 = arith.constant 3 : i32
    %205 = arith.index_cast %c3_i32 : i32 to index
    %c0_64 = arith.constant 0 : index
    %c0_65 = arith.constant 0 : index
    %206 = vector.load %arg1[%205, %c0_64, %c0_65] : memref<6x2x128xbf16, #tpu.memory_space<vmem>>, vector<1x2x128xbf16>
    %207 = vector.shape_cast %206 : vector<1x2x128xbf16> to vector<2x128xbf16>
    %208 = arith.truncf %167 : vector<2x32xf32> to vector<2x32xbf16>
    %cst_66 = arith.constant dense<0.000000e+00> : vector<2x128xf32>
    %209 = tpu.matmul %208, %4, %cst_66 {dimension_numbers = #tpu.dot_dimension_numbers<[1], [0], [0], [1], [0, 0, 1, 1], [], []>} : vector<2x32xbf16>, vector<32x128xbf16>, vector<2x128xf32> -> vector<2x128xf32>
    %210 = arith.extf %207 : vector<2x128xbf16> to vector<2x128xf32>
    %211 = arith.addf %209, %210 : vector<2x128xf32>
    %212 = vector.broadcast %8 : vector<1x128xf32> to vector<2x128xf32>
    %213 = arith.addf %211, %212 : vector<2x128xf32>
    %214 = vector.extract_strided_slice %213 {offsets = [0, 0], sizes = [2, 96], strides = [1, 1]} : vector<2x128xf32> to vector<2x96xf32>
    %215 = arith.negf %214 : vector<2x96xf32>
    %216 = math.exp %215 : vector<2x96xf32>
    %cst_67 = arith.constant 1.000000e+00 : f32
    %217 = vector.broadcast %cst_67 : f32 to vector<2x96xf32>
    %218 = arith.addf %217, %216 : vector<2x96xf32>
    %219 = arith.divf %217, %218 : vector<2x96xf32>
    %220 = vector.extract_strided_slice %213 {offsets = [0, 96], sizes = [2, 32], strides = [1, 1]} : vector<2x128xf32> to vector<2x32xf32>
    %221 = math.tanh %220 : vector<2x32xf32>
    %222 = vector.extract_strided_slice %219 {offsets = [0, 32], sizes = [2, 32], strides = [1, 1]} : vector<2x96xf32> to vector<2x32xf32>
    %223 = arith.mulf %222, %164 : vector<2x32xf32>
    %224 = vector.extract_strided_slice %219 {offsets = [0, 0], sizes = [2, 32], strides = [1, 1]} : vector<2x96xf32> to vector<2x32xf32>
    %225 = arith.mulf %224, %221 : vector<2x32xf32>
    %226 = arith.addf %223, %225 : vector<2x32xf32>
    %227 = vector.extract_strided_slice %219 {offsets = [0, 64], sizes = [2, 32], strides = [1, 1]} : vector<2x96xf32> to vector<2x32xf32>
    %228 = math.tanh %226 : vector<2x32xf32>
    %229 = arith.mulf %227, %228 : vector<2x32xf32>
    %c5_i32_68 = arith.constant 5 : i32
    %230 = arith.subi %c5_i32_68, %c3_i32 : i32
    %231 = arith.index_cast %230 : i32 to index
    %c0_69 = arith.constant 0 : index
    %c0_70 = arith.constant 0 : index
    %232 = vector.load %arg2[%231, %c0_69, %c0_70] : memref<6x2x128xbf16, #tpu.memory_space<vmem>>, vector<1x2x128xbf16>
    %233 = vector.shape_cast %232 : vector<1x2x128xbf16> to vector<2x128xbf16>
    %234 = arith.truncf %193 : vector<2x32xf32> to vector<2x32xbf16>
    %cst_71 = arith.constant dense<0.000000e+00> : vector<2x128xf32>
    %235 = tpu.matmul %234, %6, %cst_71 {dimension_numbers = #tpu.dot_dimension_numbers<[1], [0], [0], [1], [0, 0, 1, 1], [], []>} : vector<2x32xbf16>, vector<32x128xbf16>, vector<2x128xf32> -> vector<2x128xf32>
    %236 = arith.extf %233 : vector<2x128xbf16> to vector<2x128xf32>
    %237 = arith.addf %235, %236 : vector<2x128xf32>
    %238 = vector.broadcast %10 : vector<1x128xf32> to vector<2x128xf32>
    %239 = arith.addf %237, %238 : vector<2x128xf32>
    %240 = vector.extract_strided_slice %239 {offsets = [0, 0], sizes = [2, 96], strides = [1, 1]} : vector<2x128xf32> to vector<2x96xf32>
    %241 = arith.negf %240 : vector<2x96xf32>
    %242 = math.exp %241 : vector<2x96xf32>
    %cst_72 = arith.constant 1.000000e+00 : f32
    %243 = vector.broadcast %cst_72 : f32 to vector<2x96xf32>
    %244 = arith.addf %243, %242 : vector<2x96xf32>
    %245 = arith.divf %243, %244 : vector<2x96xf32>
    %246 = vector.extract_strided_slice %239 {offsets = [0, 96], sizes = [2, 32], strides = [1, 1]} : vector<2x128xf32> to vector<2x32xf32>
    %247 = math.tanh %246 : vector<2x32xf32>
    %248 = vector.extract_strided_slice %245 {offsets = [0, 32], sizes = [2, 32], strides = [1, 1]} : vector<2x96xf32> to vector<2x32xf32>
    %249 = arith.mulf %248, %190 : vector<2x32xf32>
    %250 = vector.extract_strided_slice %245 {offsets = [0, 0], sizes = [2, 32], strides = [1, 1]} : vector<2x96xf32> to vector<2x32xf32>
    %251 = arith.mulf %250, %247 : vector<2x32xf32>
    %252 = arith.addf %249, %251 : vector<2x32xf32>
    %253 = vector.extract_strided_slice %245 {offsets = [0, 64], sizes = [2, 32], strides = [1, 1]} : vector<2x96xf32> to vector<2x32xf32>
    %254 = math.tanh %252 : vector<2x32xf32>
    %255 = arith.mulf %253, %254 : vector<2x32xf32>
    %256 = arith.truncf %229 : vector<2x32xf32> to vector<2x32xbf16>
    %257 = arith.index_cast %c3_i32 : i32 to index
    %c0_73 = arith.constant 0 : index
    %c0_74 = arith.constant 0 : index
    %258 = vector.load %arg5[%257, %c0_73, %c0_74] : memref<6x2x32xbf16, #tpu.memory_space<vmem>>, vector<1x2x32xbf16>
    %259 = vector.shape_cast %258 : vector<1x2x32xbf16> to vector<2x32xbf16>
    %260 = vector.shape_cast %256 : vector<2x32xbf16> to vector<1x2x32xbf16>
    tpu.vector_store %arg5[%257, %c0_73, %c0_74], %260 {strides = array<i32>} : memref<6x2x32xbf16, #tpu.memory_space<vmem>>, vector<1x2x32xbf16>,
    %261 = arith.truncf %255 : vector<2x32xf32> to vector<2x32xbf16>
    %c5_i32_75 = arith.constant 5 : i32
    %262 = arith.subi %c5_i32_75, %c3_i32 : i32
    %263 = arith.index_cast %262 : i32 to index
    %c0_76 = arith.constant 0 : index
    %c0_77 = arith.constant 0 : index
    %264 = vector.load %arg6[%263, %c0_76, %c0_77] : memref<6x2x32xbf16, #tpu.memory_space<vmem>>, vector<1x2x32xbf16>
    %265 = vector.shape_cast %264 : vector<1x2x32xbf16> to vector<2x32xbf16>
    %266 = vector.shape_cast %261 : vector<2x32xbf16> to vector<1x2x32xbf16>
    tpu.vector_store %arg6[%263, %c0_76, %c0_77], %266 {strides = array<i32>} : memref<6x2x32xbf16, #tpu.memory_space<vmem>>, vector<1x2x32xbf16>,
    %c4_i32 = arith.constant 4 : i32
    %267 = arith.index_cast %c4_i32 : i32 to index
    %c0_78 = arith.constant 0 : index
    %c0_79 = arith.constant 0 : index
    %268 = vector.load %arg1[%267, %c0_78, %c0_79] : memref<6x2x128xbf16, #tpu.memory_space<vmem>>, vector<1x2x128xbf16>
    %269 = vector.shape_cast %268 : vector<1x2x128xbf16> to vector<2x128xbf16>
    %270 = arith.truncf %229 : vector<2x32xf32> to vector<2x32xbf16>
    %cst_80 = arith.constant dense<0.000000e+00> : vector<2x128xf32>
    %271 = tpu.matmul %270, %4, %cst_80 {dimension_numbers = #tpu.dot_dimension_numbers<[1], [0], [0], [1], [0, 0, 1, 1], [], []>} : vector<2x32xbf16>, vector<32x128xbf16>, vector<2x128xf32> -> vector<2x128xf32>
    %272 = arith.extf %269 : vector<2x128xbf16> to vector<2x128xf32>
    %273 = arith.addf %271, %272 : vector<2x128xf32>
    %274 = vector.broadcast %8 : vector<1x128xf32> to vector<2x128xf32>
    %275 = arith.addf %273, %274 : vector<2x128xf32>
    %276 = vector.extract_strided_slice %275 {offsets = [0, 0], sizes = [2, 96], strides = [1, 1]} : vector<2x128xf32> to vector<2x96xf32>
    %277 = arith.negf %276 : vector<2x96xf32>
    %278 = math.exp %277 : vector<2x96xf32>
    %cst_81 = arith.constant 1.000000e+00 : f32
    %279 = vector.broadcast %cst_81 : f32 to vector<2x96xf32>
    %280 = arith.addf %279, %278 : vector<2x96xf32>
    %281 = arith.divf %279, %280 : vector<2x96xf32>
    %282 = vector.extract_strided_slice %275 {offsets = [0, 96], sizes = [2, 32], strides = [1, 1]} : vector<2x128xf32> to vector<2x32xf32>
    %283 = math.tanh %282 : vector<2x32xf32>
    %284 = vector.extract_strided_slice %281 {offsets = [0, 32], sizes = [2, 32], strides = [1, 1]} : vector<2x96xf32> to vector<2x32xf32>
    %285 = arith.mulf %284, %226 : vector<2x32xf32>
    %286 = vector.extract_strided_slice %281 {offsets = [0, 0], sizes = [2, 32], strides = [1, 1]} : vector<2x96xf32> to vector<2x32xf32>
    %287 = arith.mulf %286, %283 : vector<2x32xf32>
    %288 = arith.addf %285, %287 : vector<2x32xf32>
    %289 = vector.extract_strided_slice %281 {offsets = [0, 64], sizes = [2, 32], strides = [1, 1]} : vector<2x96xf32> to vector<2x32xf32>
    %290 = math.tanh %288 : vector<2x32xf32>
    %291 = arith.mulf %289, %290 : vector<2x32xf32>
    %c5_i32_82 = arith.constant 5 : i32
    %292 = arith.subi %c5_i32_82, %c4_i32 : i32
    %293 = arith.index_cast %292 : i32 to index
    %c0_83 = arith.constant 0 : index
    %c0_84 = arith.constant 0 : index
    %294 = vector.load %arg2[%293, %c0_83, %c0_84] : memref<6x2x128xbf16, #tpu.memory_space<vmem>>, vector<1x2x128xbf16>
    %295 = vector.shape_cast %294 : vector<1x2x128xbf16> to vector<2x128xbf16>
    %296 = arith.truncf %255 : vector<2x32xf32> to vector<2x32xbf16>
    %cst_85 = arith.constant dense<0.000000e+00> : vector<2x128xf32>
    %297 = tpu.matmul %296, %6, %cst_85 {dimension_numbers = #tpu.dot_dimension_numbers<[1], [0], [0], [1], [0, 0, 1, 1], [], []>} : vector<2x32xbf16>, vector<32x128xbf16>, vector<2x128xf32> -> vector<2x128xf32>
    %298 = arith.extf %295 : vector<2x128xbf16> to vector<2x128xf32>
    %299 = arith.addf %297, %298 : vector<2x128xf32>
    %300 = vector.broadcast %10 : vector<1x128xf32> to vector<2x128xf32>
    %301 = arith.addf %299, %300 : vector<2x128xf32>
    %302 = vector.extract_strided_slice %301 {offsets = [0, 0], sizes = [2, 96], strides = [1, 1]} : vector<2x128xf32> to vector<2x96xf32>
    %303 = arith.negf %302 : vector<2x96xf32>
    %304 = math.exp %303 : vector<2x96xf32>
    %cst_86 = arith.constant 1.000000e+00 : f32
    %305 = vector.broadcast %cst_86 : f32 to vector<2x96xf32>
    %306 = arith.addf %305, %304 : vector<2x96xf32>
    %307 = arith.divf %305, %306 : vector<2x96xf32>
    %308 = vector.extract_strided_slice %301 {offsets = [0, 96], sizes = [2, 32], strides = [1, 1]} : vector<2x128xf32> to vector<2x32xf32>
    %309 = math.tanh %308 : vector<2x32xf32>
    %310 = vector.extract_strided_slice %307 {offsets = [0, 32], sizes = [2, 32], strides = [1, 1]} : vector<2x96xf32> to vector<2x32xf32>
    %311 = arith.mulf %310, %252 : vector<2x32xf32>
    %312 = vector.extract_strided_slice %307 {offsets = [0, 0], sizes = [2, 32], strides = [1, 1]} : vector<2x96xf32> to vector<2x32xf32>
    %313 = arith.mulf %312, %309 : vector<2x32xf32>
    %314 = arith.addf %311, %313 : vector<2x32xf32>
    %315 = vector.extract_strided_slice %307 {offsets = [0, 64], sizes = [2, 32], strides = [1, 1]} : vector<2x96xf32> to vector<2x32xf32>
    %316 = math.tanh %314 : vector<2x32xf32>
    %317 = arith.mulf %315, %316 : vector<2x32xf32>
    %318 = arith.truncf %291 : vector<2x32xf32> to vector<2x32xbf16>
    %319 = arith.index_cast %c4_i32 : i32 to index
    %c0_87 = arith.constant 0 : index
    %c0_88 = arith.constant 0 : index
    %320 = vector.load %arg5[%319, %c0_87, %c0_88] : memref<6x2x32xbf16, #tpu.memory_space<vmem>>, vector<1x2x32xbf16>
    %321 = vector.shape_cast %320 : vector<1x2x32xbf16> to vector<2x32xbf16>
    %322 = vector.shape_cast %318 : vector<2x32xbf16> to vector<1x2x32xbf16>
    tpu.vector_store %arg5[%319, %c0_87, %c0_88], %322 {strides = array<i32>} : memref<6x2x32xbf16, #tpu.memory_space<vmem>>, vector<1x2x32xbf16>,
    %323 = arith.truncf %317 : vector<2x32xf32> to vector<2x32xbf16>
    %c5_i32_89 = arith.constant 5 : i32
    %324 = arith.subi %c5_i32_89, %c4_i32 : i32
    %325 = arith.index_cast %324 : i32 to index
    %c0_90 = arith.constant 0 : index
    %c0_91 = arith.constant 0 : index
    %326 = vector.load %arg6[%325, %c0_90, %c0_91] : memref<6x2x32xbf16, #tpu.memory_space<vmem>>, vector<1x2x32xbf16>
    %327 = vector.shape_cast %326 : vector<1x2x32xbf16> to vector<2x32xbf16>
    %328 = vector.shape_cast %323 : vector<2x32xbf16> to vector<1x2x32xbf16>
    tpu.vector_store %arg6[%325, %c0_90, %c0_91], %328 {strides = array<i32>} : memref<6x2x32xbf16, #tpu.memory_space<vmem>>, vector<1x2x32xbf16>,
    %c5_i32_92 = arith.constant 5 : i32
    %329 = arith.index_cast %c5_i32_92 : i32 to index
    %c0_93 = arith.constant 0 : index
    %c0_94 = arith.constant 0 : index
    %330 = vector.load %arg1[%329, %c0_93, %c0_94] : memref<6x2x128xbf16, #tpu.memory_space<vmem>>, vector<1x2x128xbf16>
    %331 = vector.shape_cast %330 : vector<1x2x128xbf16> to vector<2x128xbf16>
    %332 = arith.truncf %291 : vector<2x32xf32> to vector<2x32xbf16>
    %cst_95 = arith.constant dense<0.000000e+00> : vector<2x128xf32>
    %333 = tpu.matmul %332, %4, %cst_95 {dimension_numbers = #tpu.dot_dimension_numbers<[1], [0], [0], [1], [0, 0, 1, 1], [], []>} : vector<2x32xbf16>, vector<32x128xbf16>, vector<2x128xf32> -> vector<2x128xf32>
    %334 = arith.extf %331 : vector<2x128xbf16> to vector<2x128xf32>
    %335 = arith.addf %333, %334 : vector<2x128xf32>
    %336 = vector.broadcast %8 : vector<1x128xf32> to vector<2x128xf32>
    %337 = arith.addf %335, %336 : vector<2x128xf32>
    %338 = vector.extract_strided_slice %337 {offsets = [0, 0], sizes = [2, 96], strides = [1, 1]} : vector<2x128xf32> to vector<2x96xf32>
    %339 = arith.negf %338 : vector<2x96xf32>
    %340 = math.exp %339 : vector<2x96xf32>
    %cst_96 = arith.constant 1.000000e+00 : f32
    %341 = vector.broadcast %cst_96 : f32 to vector<2x96xf32>
    %342 = arith.addf %341, %340 : vector<2x96xf32>
    %343 = arith.divf %341, %342 : vector<2x96xf32>
    %344 = vector.extract_strided_slice %337 {offsets = [0, 96], sizes = [2, 32], strides = [1, 1]} : vector<2x128xf32> to vector<2x32xf32>
    %345 = math.tanh %344 : vector<2x32xf32>
    %346 = vector.extract_strided_slice %343 {offsets = [0, 32], sizes = [2, 32], strides = [1, 1]} : vector<2x96xf32> to vector<2x32xf32>
    %347 = arith.mulf %346, %288 : vector<2x32xf32>
    %348 = vector.extract_strided_slice %343 {offsets = [0, 0], sizes = [2, 32], strides = [1, 1]} : vector<2x96xf32> to vector<2x32xf32>
    %349 = arith.mulf %348, %345 : vector<2x32xf32>
    %350 = arith.addf %347, %349 : vector<2x32xf32>
    %351 = vector.extract_strided_slice %343 {offsets = [0, 64], sizes = [2, 32], strides = [1, 1]} : vector<2x96xf32> to vector<2x32xf32>
    %352 = math.tanh %350 : vector<2x32xf32>
    %353 = arith.mulf %351, %352 : vector<2x32xf32>
    %c5_i32_97 = arith.constant 5 : i32
    %354 = arith.subi %c5_i32_97, %c5_i32_92 : i32
    %355 = arith.index_cast %354 : i32 to index
    %c0_98 = arith.constant 0 : index
    %c0_99 = arith.constant 0 : index
    %356 = vector.load %arg2[%355, %c0_98, %c0_99] : memref<6x2x128xbf16, #tpu.memory_space<vmem>>, vector<1x2x128xbf16>
    %357 = vector.shape_cast %356 : vector<1x2x128xbf16> to vector<2x128xbf16>
    %358 = arith.truncf %317 : vector<2x32xf32> to vector<2x32xbf16>
    %cst_100 = arith.constant dense<0.000000e+00> : vector<2x128xf32>
    %359 = tpu.matmul %358, %6, %cst_100 {dimension_numbers = #tpu.dot_dimension_numbers<[1], [0], [0], [1], [0, 0, 1, 1], [], []>} : vector<2x32xbf16>, vector<32x128xbf16>, vector<2x128xf32> -> vector<2x128xf32>
    %360 = arith.extf %357 : vector<2x128xbf16> to vector<2x128xf32>
    %361 = arith.addf %359, %360 : vector<2x128xf32>
    %362 = vector.broadcast %10 : vector<1x128xf32> to vector<2x128xf32>
    %363 = arith.addf %361, %362 : vector<2x128xf32>
    %364 = vector.extract_strided_slice %363 {offsets = [0, 0], sizes = [2, 96], strides = [1, 1]} : vector<2x128xf32> to vector<2x96xf32>
    %365 = arith.negf %364 : vector<2x96xf32>
    %366 = math.exp %365 : vector<2x96xf32>
    %cst_101 = arith.constant 1.000000e+00 : f32
    %367 = vector.broadcast %cst_101 : f32 to vector<2x96xf32>
    %368 = arith.addf %367, %366 : vector<2x96xf32>
    %369 = arith.divf %367, %368 : vector<2x96xf32>
    %370 = vector.extract_strided_slice %363 {offsets = [0, 96], sizes = [2, 32], strides = [1, 1]} : vector<2x128xf32> to vector<2x32xf32>
    %371 = math.tanh %370 : vector<2x32xf32>
    %372 = vector.extract_strided_slice %369 {offsets = [0, 32], sizes = [2, 32], strides = [1, 1]} : vector<2x96xf32> to vector<2x32xf32>
    %373 = arith.mulf %372, %314 : vector<2x32xf32>
    %374 = vector.extract_strided_slice %369 {offsets = [0, 0], sizes = [2, 32], strides = [1, 1]} : vector<2x96xf32> to vector<2x32xf32>
    %375 = arith.mulf %374, %371 : vector<2x32xf32>
    %376 = arith.addf %373, %375 : vector<2x32xf32>
    %377 = vector.extract_strided_slice %369 {offsets = [0, 64], sizes = [2, 32], strides = [1, 1]} : vector<2x96xf32> to vector<2x32xf32>
    %378 = math.tanh %376 : vector<2x32xf32>
    %379 = arith.mulf %377, %378 : vector<2x32xf32>
    %380 = arith.truncf %353 : vector<2x32xf32> to vector<2x32xbf16>
    %381 = arith.index_cast %c5_i32_92 : i32 to index
    %c0_102 = arith.constant 0 : index
    %c0_103 = arith.constant 0 : index
    %382 = vector.load %arg5[%381, %c0_102, %c0_103] : memref<6x2x32xbf16, #tpu.memory_space<vmem>>, vector<1x2x32xbf16>
    %383 = vector.shape_cast %382 : vector<1x2x32xbf16> to vector<2x32xbf16>
    %384 = vector.shape_cast %380 : vector<2x32xbf16> to vector<1x2x32xbf16>
    tpu.vector_store %arg5[%381, %c0_102, %c0_103], %384 {strides = array<i32>} : memref<6x2x32xbf16, #tpu.memory_space<vmem>>, vector<1x2x32xbf16>,
    %385 = arith.truncf %379 : vector<2x32xf32> to vector<2x32xbf16>
    %c5_i32_104 = arith.constant 5 : i32
    %386 = arith.subi %c5_i32_104, %c5_i32_92 : i32
    %387 = arith.index_cast %386 : i32 to index
    %c0_105 = arith.constant 0 : index
    %c0_106 = arith.constant 0 : index
    %388 = vector.load %arg6[%387, %c0_105, %c0_106] : memref<6x2x32xbf16, #tpu.memory_space<vmem>>, vector<1x2x32xbf16>
    %389 = vector.shape_cast %388 : vector<1x2x32xbf16> to vector<2x32xbf16>
    %390 = vector.shape_cast %385 : vector<2x32xbf16> to vector<1x2x32xbf16>
    tpu.vector_store %arg6[%387, %c0_105, %c0_106], %390 {strides = array<i32>} : memref<6x2x32xbf16, #tpu.memory_space<vmem>>, vector<1x2x32xbf16>,
    %c6_i32 = arith.constant 6 : i32
    %c0_107 = arith.constant 0 : index
    %c0_108 = arith.constant 0 : index
    %c0_109 = arith.constant 0 : index
    %391 = vector.load %arg7[%c0_107, %c0_108, %c0_109] : memref<2x2x32xf32, #tpu.memory_space<vmem>>, vector<1x2x32xf32>
    %392 = vector.shape_cast %391 : vector<1x2x32xf32> to vector<2x32xf32>
    %393 = vector.shape_cast %353 : vector<2x32xf32> to vector<1x2x32xf32>
    tpu.vector_store %arg7[%c0_107, %c0_108, %c0_109], %393 {strides = array<i32>} : memref<2x2x32xf32, #tpu.memory_space<vmem>>, vector<1x2x32xf32>,
    %c0_110 = arith.constant 0 : index
    %c0_111 = arith.constant 0 : index
    %c0_112 = arith.constant 0 : index
    %394 = vector.load %arg8[%c0_110, %c0_111, %c0_112] : memref<2x2x32xf32, #tpu.memory_space<vmem>>, vector<1x2x32xf32>
    %395 = vector.shape_cast %394 : vector<1x2x32xf32> to vector<2x32xf32>
    %396 = vector.shape_cast %350 : vector<2x32xf32> to vector<1x2x32xf32>
    tpu.vector_store %arg8[%c0_110, %c0_111, %c0_112], %396 {strides = array<i32>} : memref<2x2x32xf32, #tpu.memory_space<vmem>>, vector<1x2x32xf32>,
    %c1_113 = arith.constant 1 : index
    %c0_114 = arith.constant 0 : index
    %c0_115 = arith.constant 0 : index
    %397 = vector.load %arg7[%c1_113, %c0_114, %c0_115] : memref<2x2x32xf32, #tpu.memory_space<vmem>>, vector<1x2x32xf32>
    %398 = vector.shape_cast %397 : vector<1x2x32xf32> to vector<2x32xf32>
    %399 = vector.shape_cast %379 : vector<2x32xf32> to vector<1x2x32xf32>
    tpu.vector_store %arg7[%c1_113, %c0_114, %c0_115], %399 {strides = array<i32>} : memref<2x2x32xf32, #tpu.memory_space<vmem>>, vector<1x2x32xf32>,
    %c1_116 = arith.constant 1 : index
    %c0_117 = arith.constant 0 : index
    %c0_118 = arith.constant 0 : index
    %400 = vector.load %arg8[%c1_116, %c0_117, %c0_118] : memref<2x2x32xf32, #tpu.memory_space<vmem>>, vector<1x2x32xf32>
    %401 = vector.shape_cast %400 : vector<1x2x32xf32> to vector<2x32xf32>
    %402 = vector.shape_cast %376 : vector<2x32xf32> to vector<1x2x32xf32>
    tpu.vector_store %arg8[%c1_116, %c0_117, %c0_118], %402 {strides = array<i32>} : memref<2x2x32xf32, #tpu.memory_space<vmem>>, vector<1x2x32xf32>,
    return
  }
  func.func @transform_0(%arg0: i32) -> (i32, i32, i32) {
    %c0_i32 = arith.constant 0 : i32
    %c0_i32_0 = arith.constant 0 : i32
    %c0_i32_1 = arith.constant 0 : i32
    return %arg0, %c0_i32, %c0_i32_0 : i32, i32, i32
  }
  func.func @transform_1(%arg0: i32) -> (i32, i32, i32) {
    %c0_i32 = arith.constant 0 : i32
    %0 = arith.subi %c0_i32, %arg0 : i32
    %c0_i32_0 = arith.constant 0 : i32
    %c0_i32_1 = arith.constant 0 : i32
    %c0_i32_2 = arith.constant 0 : i32
    return %0, %c0_i32_0, %c0_i32_1 : i32, i32, i32
  }
  func.func @transform_2(%arg0: i32) -> (i32, i32, i32) {
    %c0_i32 = arith.constant 0 : i32
    %c0_i32_0 = arith.constant 0 : i32
    %c0_i32_1 = arith.constant 0 : i32
    %c0_i32_2 = arith.constant 0 : i32
    return %c0_i32, %c0_i32_0, %c0_i32_1 : i32, i32, i32
  }
  func.func @transform_3(%arg0: i32) -> (i32, i32, i32) {
    %c0_i32 = arith.constant 0 : i32
    %c0_i32_0 = arith.constant 0 : i32
    %c0_i32_1 = arith.constant 0 : i32
    %c0_i32_2 = arith.constant 0 : i32
    return %c0_i32, %c0_i32_0, %c0_i32_1 : i32, i32, i32
  }
  func.func @transform_4(%arg0: i32) -> (i32, i32, i32) {
    %c0_i32 = arith.constant 0 : i32
    %c0_i32_0 = arith.constant 0 : i32
    %c0_i32_1 = arith.constant 0 : i32
    return %arg0, %c0_i32, %c0_i32_0 : i32, i32, i32
  }
  func.func @transform_5(%arg0: i32) -> (i32, i32, i32) {
    %c0_i32 = arith.constant 0 : i32
    %0 = arith.subi %c0_i32, %arg0 : i32
    %c0_i32_0 = arith.constant 0 : i32
    %c0_i32_1 = arith.constant 0 : i32
    %c0_i32_2 = arith.constant 0 : i32
    return %0, %c0_i32_0, %c0_i32_1 : i32, i32, i32
  }
}

module attributes {stable_mosaic.version = 11 : i64} {
  func.func @_bmm_nt_kernel(%arg0: i32, %arg1: memref<1x8x32xbf16, #tpu.memory_space<vmem>>, %arg2: memref<1x128x32xbf16, #tpu.memory_space<vmem>>, %arg3: memref<1x8x128xf32, #tpu.memory_space<vmem>>) attributes {dimension_semantics = [#tpu.dimension_semantics<parallel>], iteration_bounds = array<i64: 2>, scalar_prefetch = 0 : i64, scratch_operands = 0 : i64, tpu.core_type = #tpu.core_type<tc>, window_params = [{transform_indices = @transform_0, window_bounds = array<i64: 1, 8, 32>}, {transform_indices = @transform_1, window_bounds = array<i64: 1, 128, 32>}, {transform_indices = @transform_2, window_bounds = array<i64: 1, 8, 128>}]} {
    %c0 = arith.constant 0 : index
    %c0_0 = arith.constant 0 : index
    %c0_1 = arith.constant 0 : index
    %0 = vector.load %arg1[%c0, %c0_0, %c0_1] : memref<1x8x32xbf16, #tpu.memory_space<vmem>>, vector<1x8x32xbf16>
    %1 = vector.shape_cast %0 : vector<1x8x32xbf16> to vector<8x32xbf16>
    %c0_2 = arith.constant 0 : index
    %c0_3 = arith.constant 0 : index
    %c0_4 = arith.constant 0 : index
    %2 = vector.load %arg2[%c0_2, %c0_3, %c0_4] : memref<1x128x32xbf16, #tpu.memory_space<vmem>>, vector<1x128x32xbf16>
    %3 = vector.shape_cast %2 : vector<1x128x32xbf16> to vector<128x32xbf16>
    %cst = arith.constant dense<0.000000e+00> : vector<8x128xf32>
    %4 = tpu.matmul %1, %3, %cst {dimension_numbers = #tpu.dot_dimension_numbers<[1], [1], [0], [0], [0, 0, 1, 0], [], []>} : vector<8x32xbf16>, vector<128x32xbf16>, vector<8x128xf32> -> vector<8x128xf32>
    %c0_5 = arith.constant 0 : index
    %c0_6 = arith.constant 0 : index
    %c0_7 = arith.constant 0 : index
    %5 = vector.load %arg3[%c0_5, %c0_6, %c0_7] : memref<1x8x128xf32, #tpu.memory_space<vmem>>, vector<1x8x128xf32>
    %6 = vector.shape_cast %5 : vector<1x8x128xf32> to vector<8x128xf32>
    %7 = vector.shape_cast %4 : vector<8x128xf32> to vector<1x8x128xf32>
    tpu.vector_store %arg3[%c0_5, %c0_6, %c0_7], %7 {strides = array<i32>} : memref<1x8x128xf32, #tpu.memory_space<vmem>>, vector<1x8x128xf32>,
    return
  }
  func.func @transform_0(%arg0: i32) -> (i32, i32, i32) {
    %c0_i32 = arith.constant 0 : i32
    %c0_i32_0 = arith.constant 0 : i32
    %c0_i32_1 = arith.constant 0 : i32
    return %arg0, %c0_i32, %c0_i32_0 : i32, i32, i32
  }
  func.func @transform_1(%arg0: i32) -> (i32, i32, i32) {
    %c0_i32 = arith.constant 0 : i32
    %c0_i32_0 = arith.constant 0 : i32
    %c0_i32_1 = arith.constant 0 : i32
    return %arg0, %c0_i32, %c0_i32_0 : i32, i32, i32
  }
  func.func @transform_2(%arg0: i32) -> (i32, i32, i32) {
    %c0_i32 = arith.constant 0 : i32
    %c0_i32_0 = arith.constant 0 : i32
    %c0_i32_1 = arith.constant 0 : i32
    return %arg0, %c0_i32, %c0_i32_0 : i32, i32, i32
  }
}

module attributes {stable_mosaic.version = 11 : i64} {
  func.func @_bilstm_kernel(%arg0: i32, %arg1: memref<8x2x128xbf16, #tpu.memory_space<vmem>>, %arg2: memref<8x2x128xbf16, #tpu.memory_space<vmem>>, %arg3: memref<2x1x128xf32, #tpu.memory_space<vmem>>, %arg4: memref<2x32x128xbf16, #tpu.memory_space<vmem>>, %arg5: memref<8x2x32xbf16, #tpu.memory_space<vmem>>, %arg6: memref<8x2x32xbf16, #tpu.memory_space<vmem>>, %arg7: memref<2x2x32xf32, #tpu.memory_space<vmem>>, %arg8: memref<2x2x32xf32, #tpu.memory_space<vmem>>) attributes {dimension_semantics = [#tpu.dimension_semantics<arbitrary>], iteration_bounds = array<i64: 1>, scalar_prefetch = 0 : i64, scratch_operands = 2 : i64, tpu.core_type = #tpu.core_type<tc>, window_params = [{transform_indices = @transform_0, window_bounds = array<i64: 8, 2, 128>}, {transform_indices = @transform_1, window_bounds = array<i64: 8, 2, 128>}, {pipeline_mode = #tpu.pipeline_mode<synchronous>, transform_indices = @transform_2, window_bounds = array<i64: 2, 1, 128>}, {pipeline_mode = #tpu.pipeline_mode<synchronous>, transform_indices = @transform_3, window_bounds = array<i64: 2, 32, 128>}, {transform_indices = @transform_4, window_bounds = array<i64: 8, 2, 32>}, {transform_indices = @transform_5, window_bounds = array<i64: 8, 2, 32>}]} {
    %c0_i32 = arith.constant 0 : i32
    %0 = arith.cmpi eq, %arg0, %c0_i32 : i32
    %1 = arith.extui %0 : i1 to i32
    %c0_i32_0 = arith.constant 0 : i32
    %2 = arith.cmpi ne, %1, %c0_i32_0 : i32
    scf.if %2 {
      %cst_147 = arith.constant 0.000000e+00 : f32
      %527 = vector.broadcast %cst_147 : f32 to vector<2x2x32xf32>
      %c0_148 = arith.constant 0 : index
      %c0_149 = arith.constant 0 : index
      %c0_150 = arith.constant 0 : index
      %528 = vector.load %arg7[%c0_148, %c0_149, %c0_150] : memref<2x2x32xf32, #tpu.memory_space<vmem>>, vector<2x2x32xf32>
      tpu.vector_store %arg7[%c0_148, %c0_149, %c0_150], %527 {strides = array<i32>} : memref<2x2x32xf32, #tpu.memory_space<vmem>>, vector<2x2x32xf32>,
      %cst_151 = arith.constant 0.000000e+00 : f32
      %529 = vector.broadcast %cst_151 : f32 to vector<2x2x32xf32>
      %c0_152 = arith.constant 0 : index
      %c0_153 = arith.constant 0 : index
      %c0_154 = arith.constant 0 : index
      %530 = vector.load %arg8[%c0_152, %c0_153, %c0_154] : memref<2x2x32xf32, #tpu.memory_space<vmem>>, vector<2x2x32xf32>
      tpu.vector_store %arg8[%c0_152, %c0_153, %c0_154], %529 {strides = array<i32>} : memref<2x2x32xf32, #tpu.memory_space<vmem>>, vector<2x2x32xf32>,
    } else {
    }
    %c0 = arith.constant 0 : index
    %c0_1 = arith.constant 0 : index
    %c0_2 = arith.constant 0 : index
    %3 = vector.load %arg4[%c0, %c0_1, %c0_2] : memref<2x32x128xbf16, #tpu.memory_space<vmem>>, vector<1x32x128xbf16>
    %4 = vector.shape_cast %3 : vector<1x32x128xbf16> to vector<32x128xbf16>
    %c1 = arith.constant 1 : index
    %c0_3 = arith.constant 0 : index
    %c0_4 = arith.constant 0 : index
    %5 = vector.load %arg4[%c1, %c0_3, %c0_4] : memref<2x32x128xbf16, #tpu.memory_space<vmem>>, vector<1x32x128xbf16>
    %6 = vector.shape_cast %5 : vector<1x32x128xbf16> to vector<32x128xbf16>
    %c0_5 = arith.constant 0 : index
    %c0_6 = arith.constant 0 : index
    %c0_7 = arith.constant 0 : index
    %7 = vector.load %arg3[%c0_5, %c0_6, %c0_7] : memref<2x1x128xf32, #tpu.memory_space<vmem>>, vector<1x1x128xf32>
    %8 = vector.shape_cast %7 : vector<1x1x128xf32> to vector<1x128xf32>
    %c1_8 = arith.constant 1 : index
    %c0_9 = arith.constant 0 : index
    %c0_10 = arith.constant 0 : index
    %9 = vector.load %arg3[%c1_8, %c0_9, %c0_10] : memref<2x1x128xf32, #tpu.memory_space<vmem>>, vector<1x1x128xf32>
    %10 = vector.shape_cast %9 : vector<1x1x128xf32> to vector<1x128xf32>
    %c0_11 = arith.constant 0 : index
    %c0_12 = arith.constant 0 : index
    %c0_13 = arith.constant 0 : index
    %11 = vector.load %arg7[%c0_11, %c0_12, %c0_13] : memref<2x2x32xf32, #tpu.memory_space<vmem>>, vector<1x2x32xf32>
    %12 = vector.shape_cast %11 : vector<1x2x32xf32> to vector<2x32xf32>
    %c0_14 = arith.constant 0 : index
    %c0_15 = arith.constant 0 : index
    %c0_16 = arith.constant 0 : index
    %13 = vector.load %arg8[%c0_14, %c0_15, %c0_16] : memref<2x2x32xf32, #tpu.memory_space<vmem>>, vector<1x2x32xf32>
    %14 = vector.shape_cast %13 : vector<1x2x32xf32> to vector<2x32xf32>
    %c1_17 = arith.constant 1 : index
    %c0_18 = arith.constant 0 : index
    %c0_19 = arith.constant 0 : index
    %15 = vector.load %arg7[%c1_17, %c0_18, %c0_19] : memref<2x2x32xf32, #tpu.memory_space<vmem>>, vector<1x2x32xf32>
    %16 = vector.shape_cast %15 : vector<1x2x32xf32> to vector<2x32xf32>
    %c1_20 = arith.constant 1 : index
    %c0_21 = arith.constant 0 : index
    %c0_22 = arith.constant 0 : index
    %17 = vector.load %arg8[%c1_20, %c0_21, %c0_22] : memref<2x2x32xf32, #tpu.memory_space<vmem>>, vector<1x2x32xf32>
    %18 = vector.shape_cast %17 : vector<1x2x32xf32> to vector<2x32xf32>
    %c0_i32_23 = arith.constant 0 : i32
    %19 = arith.index_cast %c0_i32_23 : i32 to index
    %c0_24 = arith.constant 0 : index
    %c0_25 = arith.constant 0 : index
    %20 = vector.load %arg1[%19, %c0_24, %c0_25] : memref<8x2x128xbf16, #tpu.memory_space<vmem>>, vector<1x2x128xbf16>
    %21 = vector.shape_cast %20 : vector<1x2x128xbf16> to vector<2x128xbf16>
    %22 = arith.truncf %12 : vector<2x32xf32> to vector<2x32xbf16>
    %cst = arith.constant dense<0.000000e+00> : vector<2x128xf32>
    %23 = tpu.matmul %22, %4, %cst {dimension_numbers = #tpu.dot_dimension_numbers<[1], [0], [0], [1], [0, 0, 1, 1], [], []>} : vector<2x32xbf16>, vector<32x128xbf16>, vector<2x128xf32> -> vector<2x128xf32>
    %24 = arith.extf %21 : vector<2x128xbf16> to vector<2x128xf32>
    %25 = arith.addf %23, %24 : vector<2x128xf32>
    %26 = vector.broadcast %8 : vector<1x128xf32> to vector<2x128xf32>
    %27 = arith.addf %25, %26 : vector<2x128xf32>
    %28 = vector.extract_strided_slice %27 {offsets = [0, 0], sizes = [2, 96], strides = [1, 1]} : vector<2x128xf32> to vector<2x96xf32>
    %29 = arith.negf %28 : vector<2x96xf32>
    %30 = math.exp %29 : vector<2x96xf32>
    %cst_26 = arith.constant 1.000000e+00 : f32
    %31 = vector.broadcast %cst_26 : f32 to vector<2x96xf32>
    %32 = arith.addf %31, %30 : vector<2x96xf32>
    %33 = arith.divf %31, %32 : vector<2x96xf32>
    %34 = vector.extract_strided_slice %27 {offsets = [0, 96], sizes = [2, 32], strides = [1, 1]} : vector<2x128xf32> to vector<2x32xf32>
    %35 = math.tanh %34 : vector<2x32xf32>
    %36 = vector.extract_strided_slice %33 {offsets = [0, 32], sizes = [2, 32], strides = [1, 1]} : vector<2x96xf32> to vector<2x32xf32>
    %37 = arith.mulf %36, %14 : vector<2x32xf32>
    %38 = vector.extract_strided_slice %33 {offsets = [0, 0], sizes = [2, 32], strides = [1, 1]} : vector<2x96xf32> to vector<2x32xf32>
    %39 = arith.mulf %38, %35 : vector<2x32xf32>
    %40 = arith.addf %37, %39 : vector<2x32xf32>
    %41 = vector.extract_strided_slice %33 {offsets = [0, 64], sizes = [2, 32], strides = [1, 1]} : vector<2x96xf32> to vector<2x32xf32>
    %42 = math.tanh %40 : vector<2x32xf32>
    %43 = arith.mulf %41, %42 : vector<2x32xf32>
    %c7_i32 = arith.constant 7 : i32
    %44 = arith.subi %c7_i32, %c0_i32_23 : i32
    %45 = arith.index_cast %44 : i32 to index
    %c0_27 = arith.constant 0 : index
    %c0_28 = arith.constant 0 : index
    %46 = vector.load %arg2[%45, %c0_27, %c0_28] : memref<8x2x128xbf16, #tpu.memory_space<vmem>>, vector<1x2x128xbf16>
    %47 = vector.shape_cast %46 : vector<1x2x128xbf16> to vector<2x128xbf16>
    %48 = arith.truncf %16 : vector<2x32xf32> to vector<2x32xbf16>
    %cst_29 = arith.constant dense<0.000000e+00> : vector<2x128xf32>
    %49 = tpu.matmul %48, %6, %cst_29 {dimension_numbers = #tpu.dot_dimension_numbers<[1], [0], [0], [1], [0, 0, 1, 1], [], []>} : vector<2x32xbf16>, vector<32x128xbf16>, vector<2x128xf32> -> vector<2x128xf32>
    %50 = arith.extf %47 : vector<2x128xbf16> to vector<2x128xf32>
    %51 = arith.addf %49, %50 : vector<2x128xf32>
    %52 = vector.broadcast %10 : vector<1x128xf32> to vector<2x128xf32>
    %53 = arith.addf %51, %52 : vector<2x128xf32>
    %54 = vector.extract_strided_slice %53 {offsets = [0, 0], sizes = [2, 96], strides = [1, 1]} : vector<2x128xf32> to vector<2x96xf32>
    %55 = arith.negf %54 : vector<2x96xf32>
    %56 = math.exp %55 : vector<2x96xf32>
    %cst_30 = arith.constant 1.000000e+00 : f32
    %57 = vector.broadcast %cst_30 : f32 to vector<2x96xf32>
    %58 = arith.addf %57, %56 : vector<2x96xf32>
    %59 = arith.divf %57, %58 : vector<2x96xf32>
    %60 = vector.extract_strided_slice %53 {offsets = [0, 96], sizes = [2, 32], strides = [1, 1]} : vector<2x128xf32> to vector<2x32xf32>
    %61 = math.tanh %60 : vector<2x32xf32>
    %62 = vector.extract_strided_slice %59 {offsets = [0, 32], sizes = [2, 32], strides = [1, 1]} : vector<2x96xf32> to vector<2x32xf32>
    %63 = arith.mulf %62, %18 : vector<2x32xf32>
    %64 = vector.extract_strided_slice %59 {offsets = [0, 0], sizes = [2, 32], strides = [1, 1]} : vector<2x96xf32> to vector<2x32xf32>
    %65 = arith.mulf %64, %61 : vector<2x32xf32>
    %66 = arith.addf %63, %65 : vector<2x32xf32>
    %67 = vector.extract_strided_slice %59 {offsets = [0, 64], sizes = [2, 32], strides = [1, 1]} : vector<2x96xf32> to vector<2x32xf32>
    %68 = math.tanh %66 : vector<2x32xf32>
    %69 = arith.mulf %67, %68 : vector<2x32xf32>
    %70 = arith.truncf %43 : vector<2x32xf32> to vector<2x32xbf16>
    %71 = arith.index_cast %c0_i32_23 : i32 to index
    %c0_31 = arith.constant 0 : index
    %c0_32 = arith.constant 0 : index
    %72 = vector.load %arg5[%71, %c0_31, %c0_32] : memref<8x2x32xbf16, #tpu.memory_space<vmem>>, vector<1x2x32xbf16>
    %73 = vector.shape_cast %72 : vector<1x2x32xbf16> to vector<2x32xbf16>
    %74 = vector.shape_cast %70 : vector<2x32xbf16> to vector<1x2x32xbf16>
    tpu.vector_store %arg5[%71, %c0_31, %c0_32], %74 {strides = array<i32>} : memref<8x2x32xbf16, #tpu.memory_space<vmem>>, vector<1x2x32xbf16>,
    %75 = arith.truncf %69 : vector<2x32xf32> to vector<2x32xbf16>
    %c7_i32_33 = arith.constant 7 : i32
    %76 = arith.subi %c7_i32_33, %c0_i32_23 : i32
    %77 = arith.index_cast %76 : i32 to index
    %c0_34 = arith.constant 0 : index
    %c0_35 = arith.constant 0 : index
    %78 = vector.load %arg6[%77, %c0_34, %c0_35] : memref<8x2x32xbf16, #tpu.memory_space<vmem>>, vector<1x2x32xbf16>
    %79 = vector.shape_cast %78 : vector<1x2x32xbf16> to vector<2x32xbf16>
    %80 = vector.shape_cast %75 : vector<2x32xbf16> to vector<1x2x32xbf16>
    tpu.vector_store %arg6[%77, %c0_34, %c0_35], %80 {strides = array<i32>} : memref<8x2x32xbf16, #tpu.memory_space<vmem>>, vector<1x2x32xbf16>,
    %c1_i32 = arith.constant 1 : i32
    %81 = arith.index_cast %c1_i32 : i32 to index
    %c0_36 = arith.constant 0 : index
    %c0_37 = arith.constant 0 : index
    %82 = vector.load %arg1[%81, %c0_36, %c0_37] : memref<8x2x128xbf16, #tpu.memory_space<vmem>>, vector<1x2x128xbf16>
    %83 = vector.shape_cast %82 : vector<1x2x128xbf16> to vector<2x128xbf16>
    %84 = arith.truncf %43 : vector<2x32xf32> to vector<2x32xbf16>
    %cst_38 = arith.constant dense<0.000000e+00> : vector<2x128xf32>
    %85 = tpu.matmul %84, %4, %cst_38 {dimension_numbers = #tpu.dot_dimension_numbers<[1], [0], [0], [1], [0, 0, 1, 1], [], []>} : vector<2x32xbf16>, vector<32x128xbf16>, vector<2x128xf32> -> vector<2x128xf32>
    %86 = arith.extf %83 : vector<2x128xbf16> to vector<2x128xf32>
    %87 = arith.addf %85, %86 : vector<2x128xf32>
    %88 = vector.broadcast %8 : vector<1x128xf32> to vector<2x128xf32>
    %89 = arith.addf %87, %88 : vector<2x128xf32>
    %90 = vector.extract_strided_slice %89 {offsets = [0, 0], sizes = [2, 96], strides = [1, 1]} : vector<2x128xf32> to vector<2x96xf32>
    %91 = arith.negf %90 : vector<2x96xf32>
    %92 = math.exp %91 : vector<2x96xf32>
    %cst_39 = arith.constant 1.000000e+00 : f32
    %93 = vector.broadcast %cst_39 : f32 to vector<2x96xf32>
    %94 = arith.addf %93, %92 : vector<2x96xf32>
    %95 = arith.divf %93, %94 : vector<2x96xf32>
    %96 = vector.extract_strided_slice %89 {offsets = [0, 96], sizes = [2, 32], strides = [1, 1]} : vector<2x128xf32> to vector<2x32xf32>
    %97 = math.tanh %96 : vector<2x32xf32>
    %98 = vector.extract_strided_slice %95 {offsets = [0, 32], sizes = [2, 32], strides = [1, 1]} : vector<2x96xf32> to vector<2x32xf32>
    %99 = arith.mulf %98, %40 : vector<2x32xf32>
    %100 = vector.extract_strided_slice %95 {offsets = [0, 0], sizes = [2, 32], strides = [1, 1]} : vector<2x96xf32> to vector<2x32xf32>
    %101 = arith.mulf %100, %97 : vector<2x32xf32>
    %102 = arith.addf %99, %101 : vector<2x32xf32>
    %103 = vector.extract_strided_slice %95 {offsets = [0, 64], sizes = [2, 32], strides = [1, 1]} : vector<2x96xf32> to vector<2x32xf32>
    %104 = math.tanh %102 : vector<2x32xf32>
    %105 = arith.mulf %103, %104 : vector<2x32xf32>
    %c7_i32_40 = arith.constant 7 : i32
    %106 = arith.subi %c7_i32_40, %c1_i32 : i32
    %107 = arith.index_cast %106 : i32 to index
    %c0_41 = arith.constant 0 : index
    %c0_42 = arith.constant 0 : index
    %108 = vector.load %arg2[%107, %c0_41, %c0_42] : memref<8x2x128xbf16, #tpu.memory_space<vmem>>, vector<1x2x128xbf16>
    %109 = vector.shape_cast %108 : vector<1x2x128xbf16> to vector<2x128xbf16>
    %110 = arith.truncf %69 : vector<2x32xf32> to vector<2x32xbf16>
    %cst_43 = arith.constant dense<0.000000e+00> : vector<2x128xf32>
    %111 = tpu.matmul %110, %6, %cst_43 {dimension_numbers = #tpu.dot_dimension_numbers<[1], [0], [0], [1], [0, 0, 1, 1], [], []>} : vector<2x32xbf16>, vector<32x128xbf16>, vector<2x128xf32> -> vector<2x128xf32>
    %112 = arith.extf %109 : vector<2x128xbf16> to vector<2x128xf32>
    %113 = arith.addf %111, %112 : vector<2x128xf32>
    %114 = vector.broadcast %10 : vector<1x128xf32> to vector<2x128xf32>
    %115 = arith.addf %113, %114 : vector<2x128xf32>
    %116 = vector.extract_strided_slice %115 {offsets = [0, 0], sizes = [2, 96], strides = [1, 1]} : vector<2x128xf32> to vector<2x96xf32>
    %117 = arith.negf %116 : vector<2x96xf32>
    %118 = math.exp %117 : vector<2x96xf32>
    %cst_44 = arith.constant 1.000000e+00 : f32
    %119 = vector.broadcast %cst_44 : f32 to vector<2x96xf32>
    %120 = arith.addf %119, %118 : vector<2x96xf32>
    %121 = arith.divf %119, %120 : vector<2x96xf32>
    %122 = vector.extract_strided_slice %115 {offsets = [0, 96], sizes = [2, 32], strides = [1, 1]} : vector<2x128xf32> to vector<2x32xf32>
    %123 = math.tanh %122 : vector<2x32xf32>
    %124 = vector.extract_strided_slice %121 {offsets = [0, 32], sizes = [2, 32], strides = [1, 1]} : vector<2x96xf32> to vector<2x32xf32>
    %125 = arith.mulf %124, %66 : vector<2x32xf32>
    %126 = vector.extract_strided_slice %121 {offsets = [0, 0], sizes = [2, 32], strides = [1, 1]} : vector<2x96xf32> to vector<2x32xf32>
    %127 = arith.mulf %126, %123 : vector<2x32xf32>
    %128 = arith.addf %125, %127 : vector<2x32xf32>
    %129 = vector.extract_strided_slice %121 {offsets = [0, 64], sizes = [2, 32], strides = [1, 1]} : vector<2x96xf32> to vector<2x32xf32>
    %130 = math.tanh %128 : vector<2x32xf32>
    %131 = arith.mulf %129, %130 : vector<2x32xf32>
    %132 = arith.truncf %105 : vector<2x32xf32> to vector<2x32xbf16>
    %133 = arith.index_cast %c1_i32 : i32 to index
    %c0_45 = arith.constant 0 : index
    %c0_46 = arith.constant 0 : index
    %134 = vector.load %arg5[%133, %c0_45, %c0_46] : memref<8x2x32xbf16, #tpu.memory_space<vmem>>, vector<1x2x32xbf16>
    %135 = vector.shape_cast %134 : vector<1x2x32xbf16> to vector<2x32xbf16>
    %136 = vector.shape_cast %132 : vector<2x32xbf16> to vector<1x2x32xbf16>
    tpu.vector_store %arg5[%133, %c0_45, %c0_46], %136 {strides = array<i32>} : memref<8x2x32xbf16, #tpu.memory_space<vmem>>, vector<1x2x32xbf16>,
    %137 = arith.truncf %131 : vector<2x32xf32> to vector<2x32xbf16>
    %c7_i32_47 = arith.constant 7 : i32
    %138 = arith.subi %c7_i32_47, %c1_i32 : i32
    %139 = arith.index_cast %138 : i32 to index
    %c0_48 = arith.constant 0 : index
    %c0_49 = arith.constant 0 : index
    %140 = vector.load %arg6[%139, %c0_48, %c0_49] : memref<8x2x32xbf16, #tpu.memory_space<vmem>>, vector<1x2x32xbf16>
    %141 = vector.shape_cast %140 : vector<1x2x32xbf16> to vector<2x32xbf16>
    %142 = vector.shape_cast %137 : vector<2x32xbf16> to vector<1x2x32xbf16>
    tpu.vector_store %arg6[%139, %c0_48, %c0_49], %142 {strides = array<i32>} : memref<8x2x32xbf16, #tpu.memory_space<vmem>>, vector<1x2x32xbf16>,
    %c2_i32 = arith.constant 2 : i32
    %143 = arith.index_cast %c2_i32 : i32 to index
    %c0_50 = arith.constant 0 : index
    %c0_51 = arith.constant 0 : index
    %144 = vector.load %arg1[%143, %c0_50, %c0_51] : memref<8x2x128xbf16, #tpu.memory_space<vmem>>, vector<1x2x128xbf16>
    %145 = vector.shape_cast %144 : vector<1x2x128xbf16> to vector<2x128xbf16>
    %146 = arith.truncf %105 : vector<2x32xf32> to vector<2x32xbf16>
    %cst_52 = arith.constant dense<0.000000e+00> : vector<2x128xf32>
    %147 = tpu.matmul %146, %4, %cst_52 {dimension_numbers = #tpu.dot_dimension_numbers<[1], [0], [0], [1], [0, 0, 1, 1], [], []>} : vector<2x32xbf16>, vector<32x128xbf16>, vector<2x128xf32> -> vector<2x128xf32>
    %148 = arith.extf %145 : vector<2x128xbf16> to vector<2x128xf32>
    %149 = arith.addf %147, %148 : vector<2x128xf32>
    %150 = vector.broadcast %8 : vector<1x128xf32> to vector<2x128xf32>
    %151 = arith.addf %149, %150 : vector<2x128xf32>
    %152 = vector.extract_strided_slice %151 {offsets = [0, 0], sizes = [2, 96], strides = [1, 1]} : vector<2x128xf32> to vector<2x96xf32>
    %153 = arith.negf %152 : vector<2x96xf32>
    %154 = math.exp %153 : vector<2x96xf32>
    %cst_53 = arith.constant 1.000000e+00 : f32
    %155 = vector.broadcast %cst_53 : f32 to vector<2x96xf32>
    %156 = arith.addf %155, %154 : vector<2x96xf32>
    %157 = arith.divf %155, %156 : vector<2x96xf32>
    %158 = vector.extract_strided_slice %151 {offsets = [0, 96], sizes = [2, 32], strides = [1, 1]} : vector<2x128xf32> to vector<2x32xf32>
    %159 = math.tanh %158 : vector<2x32xf32>
    %160 = vector.extract_strided_slice %157 {offsets = [0, 32], sizes = [2, 32], strides = [1, 1]} : vector<2x96xf32> to vector<2x32xf32>
    %161 = arith.mulf %160, %102 : vector<2x32xf32>
    %162 = vector.extract_strided_slice %157 {offsets = [0, 0], sizes = [2, 32], strides = [1, 1]} : vector<2x96xf32> to vector<2x32xf32>
    %163 = arith.mulf %162, %159 : vector<2x32xf32>
    %164 = arith.addf %161, %163 : vector<2x32xf32>
    %165 = vector.extract_strided_slice %157 {offsets = [0, 64], sizes = [2, 32], strides = [1, 1]} : vector<2x96xf32> to vector<2x32xf32>
    %166 = math.tanh %164 : vector<2x32xf32>
    %167 = arith.mulf %165, %166 : vector<2x32xf32>
    %c7_i32_54 = arith.constant 7 : i32
    %168 = arith.subi %c7_i32_54, %c2_i32 : i32
    %169 = arith.index_cast %168 : i32 to index
    %c0_55 = arith.constant 0 : index
    %c0_56 = arith.constant 0 : index
    %170 = vector.load %arg2[%169, %c0_55, %c0_56] : memref<8x2x128xbf16, #tpu.memory_space<vmem>>, vector<1x2x128xbf16>
    %171 = vector.shape_cast %170 : vector<1x2x128xbf16> to vector<2x128xbf16>
    %172 = arith.truncf %131 : vector<2x32xf32> to vector<2x32xbf16>
    %cst_57 = arith.constant dense<0.000000e+00> : vector<2x128xf32>
    %173 = tpu.matmul %172, %6, %cst_57 {dimension_numbers = #tpu.dot_dimension_numbers<[1], [0], [0], [1], [0, 0, 1, 1], [], []>} : vector<2x32xbf16>, vector<32x128xbf16>, vector<2x128xf32> -> vector<2x128xf32>
    %174 = arith.extf %171 : vector<2x128xbf16> to vector<2x128xf32>
    %175 = arith.addf %173, %174 : vector<2x128xf32>
    %176 = vector.broadcast %10 : vector<1x128xf32> to vector<2x128xf32>
    %177 = arith.addf %175, %176 : vector<2x128xf32>
    %178 = vector.extract_strided_slice %177 {offsets = [0, 0], sizes = [2, 96], strides = [1, 1]} : vector<2x128xf32> to vector<2x96xf32>
    %179 = arith.negf %178 : vector<2x96xf32>
    %180 = math.exp %179 : vector<2x96xf32>
    %cst_58 = arith.constant 1.000000e+00 : f32
    %181 = vector.broadcast %cst_58 : f32 to vector<2x96xf32>
    %182 = arith.addf %181, %180 : vector<2x96xf32>
    %183 = arith.divf %181, %182 : vector<2x96xf32>
    %184 = vector.extract_strided_slice %177 {offsets = [0, 96], sizes = [2, 32], strides = [1, 1]} : vector<2x128xf32> to vector<2x32xf32>
    %185 = math.tanh %184 : vector<2x32xf32>
    %186 = vector.extract_strided_slice %183 {offsets = [0, 32], sizes = [2, 32], strides = [1, 1]} : vector<2x96xf32> to vector<2x32xf32>
    %187 = arith.mulf %186, %128 : vector<2x32xf32>
    %188 = vector.extract_strided_slice %183 {offsets = [0, 0], sizes = [2, 32], strides = [1, 1]} : vector<2x96xf32> to vector<2x32xf32>
    %189 = arith.mulf %188, %185 : vector<2x32xf32>
    %190 = arith.addf %187, %189 : vector<2x32xf32>
    %191 = vector.extract_strided_slice %183 {offsets = [0, 64], sizes = [2, 32], strides = [1, 1]} : vector<2x96xf32> to vector<2x32xf32>
    %192 = math.tanh %190 : vector<2x32xf32>
    %193 = arith.mulf %191, %192 : vector<2x32xf32>
    %194 = arith.truncf %167 : vector<2x32xf32> to vector<2x32xbf16>
    %195 = arith.index_cast %c2_i32 : i32 to index
    %c0_59 = arith.constant 0 : index
    %c0_60 = arith.constant 0 : index
    %196 = vector.load %arg5[%195, %c0_59, %c0_60] : memref<8x2x32xbf16, #tpu.memory_space<vmem>>, vector<1x2x32xbf16>
    %197 = vector.shape_cast %196 : vector<1x2x32xbf16> to vector<2x32xbf16>
    %198 = vector.shape_cast %194 : vector<2x32xbf16> to vector<1x2x32xbf16>
    tpu.vector_store %arg5[%195, %c0_59, %c0_60], %198 {strides = array<i32>} : memref<8x2x32xbf16, #tpu.memory_space<vmem>>, vector<1x2x32xbf16>,
    %199 = arith.truncf %193 : vector<2x32xf32> to vector<2x32xbf16>
    %c7_i32_61 = arith.constant 7 : i32
    %200 = arith.subi %c7_i32_61, %c2_i32 : i32
    %201 = arith.index_cast %200 : i32 to index
    %c0_62 = arith.constant 0 : index
    %c0_63 = arith.constant 0 : index
    %202 = vector.load %arg6[%201, %c0_62, %c0_63] : memref<8x2x32xbf16, #tpu.memory_space<vmem>>, vector<1x2x32xbf16>
    %203 = vector.shape_cast %202 : vector<1x2x32xbf16> to vector<2x32xbf16>
    %204 = vector.shape_cast %199 : vector<2x32xbf16> to vector<1x2x32xbf16>
    tpu.vector_store %arg6[%201, %c0_62, %c0_63], %204 {strides = array<i32>} : memref<8x2x32xbf16, #tpu.memory_space<vmem>>, vector<1x2x32xbf16>,
    %c3_i32 = arith.constant 3 : i32
    %205 = arith.index_cast %c3_i32 : i32 to index
    %c0_64 = arith.constant 0 : index
    %c0_65 = arith.constant 0 : index
    %206 = vector.load %arg1[%205, %c0_64, %c0_65] : memref<8x2x128xbf16, #tpu.memory_space<vmem>>, vector<1x2x128xbf16>
    %207 = vector.shape_cast %206 : vector<1x2x128xbf16> to vector<2x128xbf16>
    %208 = arith.truncf %167 : vector<2x32xf32> to vector<2x32xbf16>
    %cst_66 = arith.constant dense<0.000000e+00> : vector<2x128xf32>
    %209 = tpu.matmul %208, %4, %cst_66 {dimension_numbers = #tpu.dot_dimension_numbers<[1], [0], [0], [1], [0, 0, 1, 1], [], []>} : vector<2x32xbf16>, vector<32x128xbf16>, vector<2x128xf32> -> vector<2x128xf32>
    %210 = arith.extf %207 : vector<2x128xbf16> to vector<2x128xf32>
    %211 = arith.addf %209, %210 : vector<2x128xf32>
    %212 = vector.broadcast %8 : vector<1x128xf32> to vector<2x128xf32>
    %213 = arith.addf %211, %212 : vector<2x128xf32>
    %214 = vector.extract_strided_slice %213 {offsets = [0, 0], sizes = [2, 96], strides = [1, 1]} : vector<2x128xf32> to vector<2x96xf32>
    %215 = arith.negf %214 : vector<2x96xf32>
    %216 = math.exp %215 : vector<2x96xf32>
    %cst_67 = arith.constant 1.000000e+00 : f32
    %217 = vector.broadcast %cst_67 : f32 to vector<2x96xf32>
    %218 = arith.addf %217, %216 : vector<2x96xf32>
    %219 = arith.divf %217, %218 : vector<2x96xf32>
    %220 = vector.extract_strided_slice %213 {offsets = [0, 96], sizes = [2, 32], strides = [1, 1]} : vector<2x128xf32> to vector<2x32xf32>
    %221 = math.tanh %220 : vector<2x32xf32>
    %222 = vector.extract_strided_slice %219 {offsets = [0, 32], sizes = [2, 32], strides = [1, 1]} : vector<2x96xf32> to vector<2x32xf32>
    %223 = arith.mulf %222, %164 : vector<2x32xf32>
    %224 = vector.extract_strided_slice %219 {offsets = [0, 0], sizes = [2, 32], strides = [1, 1]} : vector<2x96xf32> to vector<2x32xf32>
    %225 = arith.mulf %224, %221 : vector<2x32xf32>
    %226 = arith.addf %223, %225 : vector<2x32xf32>
    %227 = vector.extract_strided_slice %219 {offsets = [0, 64], sizes = [2, 32], strides = [1, 1]} : vector<2x96xf32> to vector<2x32xf32>
    %228 = math.tanh %226 : vector<2x32xf32>
    %229 = arith.mulf %227, %228 : vector<2x32xf32>
    %c7_i32_68 = arith.constant 7 : i32
    %230 = arith.subi %c7_i32_68, %c3_i32 : i32
    %231 = arith.index_cast %230 : i32 to index
    %c0_69 = arith.constant 0 : index
    %c0_70 = arith.constant 0 : index
    %232 = vector.load %arg2[%231, %c0_69, %c0_70] : memref<8x2x128xbf16, #tpu.memory_space<vmem>>, vector<1x2x128xbf16>
    %233 = vector.shape_cast %232 : vector<1x2x128xbf16> to vector<2x128xbf16>
    %234 = arith.truncf %193 : vector<2x32xf32> to vector<2x32xbf16>
    %cst_71 = arith.constant dense<0.000000e+00> : vector<2x128xf32>
    %235 = tpu.matmul %234, %6, %cst_71 {dimension_numbers = #tpu.dot_dimension_numbers<[1], [0], [0], [1], [0, 0, 1, 1], [], []>} : vector<2x32xbf16>, vector<32x128xbf16>, vector<2x128xf32> -> vector<2x128xf32>
    %236 = arith.extf %233 : vector<2x128xbf16> to vector<2x128xf32>
    %237 = arith.addf %235, %236 : vector<2x128xf32>
    %238 = vector.broadcast %10 : vector<1x128xf32> to vector<2x128xf32>
    %239 = arith.addf %237, %238 : vector<2x128xf32>
    %240 = vector.extract_strided_slice %239 {offsets = [0, 0], sizes = [2, 96], strides = [1, 1]} : vector<2x128xf32> to vector<2x96xf32>
    %241 = arith.negf %240 : vector<2x96xf32>
    %242 = math.exp %241 : vector<2x96xf32>
    %cst_72 = arith.constant 1.000000e+00 : f32
    %243 = vector.broadcast %cst_72 : f32 to vector<2x96xf32>
    %244 = arith.addf %243, %242 : vector<2x96xf32>
    %245 = arith.divf %243, %244 : vector<2x96xf32>
    %246 = vector.extract_strided_slice %239 {offsets = [0, 96], sizes = [2, 32], strides = [1, 1]} : vector<2x128xf32> to vector<2x32xf32>
    %247 = math.tanh %246 : vector<2x32xf32>
    %248 = vector.extract_strided_slice %245 {offsets = [0, 32], sizes = [2, 32], strides = [1, 1]} : vector<2x96xf32> to vector<2x32xf32>
    %249 = arith.mulf %248, %190 : vector<2x32xf32>
    %250 = vector.extract_strided_slice %245 {offsets = [0, 0], sizes = [2, 32], strides = [1, 1]} : vector<2x96xf32> to vector<2x32xf32>
    %251 = arith.mulf %250, %247 : vector<2x32xf32>
    %252 = arith.addf %249, %251 : vector<2x32xf32>
    %253 = vector.extract_strided_slice %245 {offsets = [0, 64], sizes = [2, 32], strides = [1, 1]} : vector<2x96xf32> to vector<2x32xf32>
    %254 = math.tanh %252 : vector<2x32xf32>
    %255 = arith.mulf %253, %254 : vector<2x32xf32>
    %256 = arith.truncf %229 : vector<2x32xf32> to vector<2x32xbf16>
    %257 = arith.index_cast %c3_i32 : i32 to index
    %c0_73 = arith.constant 0 : index
    %c0_74 = arith.constant 0 : index
    %258 = vector.load %arg5[%257, %c0_73, %c0_74] : memref<8x2x32xbf16, #tpu.memory_space<vmem>>, vector<1x2x32xbf16>
    %259 = vector.shape_cast %258 : vector<1x2x32xbf16> to vector<2x32xbf16>
    %260 = vector.shape_cast %256 : vector<2x32xbf16> to vector<1x2x32xbf16>
    tpu.vector_store %arg5[%257, %c0_73, %c0_74], %260 {strides = array<i32>} : memref<8x2x32xbf16, #tpu.memory_space<vmem>>, vector<1x2x32xbf16>,
    %261 = arith.truncf %255 : vector<2x32xf32> to vector<2x32xbf16>
    %c7_i32_75 = arith.constant 7 : i32
    %262 = arith.subi %c7_i32_75, %c3_i32 : i32
    %263 = arith.index_cast %262 : i32 to index
    %c0_76 = arith.constant 0 : index
    %c0_77 = arith.constant 0 : index
    %264 = vector.load %arg6[%263, %c0_76, %c0_77] : memref<8x2x32xbf16, #tpu.memory_space<vmem>>, vector<1x2x32xbf16>
    %265 = vector.shape_cast %264 : vector<1x2x32xbf16> to vector<2x32xbf16>
    %266 = vector.shape_cast %261 : vector<2x32xbf16> to vector<1x2x32xbf16>
    tpu.vector_store %arg6[%263, %c0_76, %c0_77], %266 {strides = array<i32>} : memref<8x2x32xbf16, #tpu.memory_space<vmem>>, vector<1x2x32xbf16>,
    %c4_i32 = arith.constant 4 : i32
    %267 = arith.index_cast %c4_i32 : i32 to index
    %c0_78 = arith.constant 0 : index
    %c0_79 = arith.constant 0 : index
    %268 = vector.load %arg1[%267, %c0_78, %c0_79] : memref<8x2x128xbf16, #tpu.memory_space<vmem>>, vector<1x2x128xbf16>
    %269 = vector.shape_cast %268 : vector<1x2x128xbf16> to vector<2x128xbf16>
    %270 = arith.truncf %229 : vector<2x32xf32> to vector<2x32xbf16>
    %cst_80 = arith.constant dense<0.000000e+00> : vector<2x128xf32>
    %271 = tpu.matmul %270, %4, %cst_80 {dimension_numbers = #tpu.dot_dimension_numbers<[1], [0], [0], [1], [0, 0, 1, 1], [], []>} : vector<2x32xbf16>, vector<32x128xbf16>, vector<2x128xf32> -> vector<2x128xf32>
    %272 = arith.extf %269 : vector<2x128xbf16> to vector<2x128xf32>
    %273 = arith.addf %271, %272 : vector<2x128xf32>
    %274 = vector.broadcast %8 : vector<1x128xf32> to vector<2x128xf32>
    %275 = arith.addf %273, %274 : vector<2x128xf32>
    %276 = vector.extract_strided_slice %275 {offsets = [0, 0], sizes = [2, 96], strides = [1, 1]} : vector<2x128xf32> to vector<2x96xf32>
    %277 = arith.negf %276 : vector<2x96xf32>
    %278 = math.exp %277 : vector<2x96xf32>
    %cst_81 = arith.constant 1.000000e+00 : f32
    %279 = vector.broadcast %cst_81 : f32 to vector<2x96xf32>
    %280 = arith.addf %279, %278 : vector<2x96xf32>
    %281 = arith.divf %279, %280 : vector<2x96xf32>
    %282 = vector.extract_strided_slice %275 {offsets = [0, 96], sizes = [2, 32], strides = [1, 1]} : vector<2x128xf32> to vector<2x32xf32>
    %283 = math.tanh %282 : vector<2x32xf32>
    %284 = vector.extract_strided_slice %281 {offsets = [0, 32], sizes = [2, 32], strides = [1, 1]} : vector<2x96xf32> to vector<2x32xf32>
    %285 = arith.mulf %284, %226 : vector<2x32xf32>
    %286 = vector.extract_strided_slice %281 {offsets = [0, 0], sizes = [2, 32], strides = [1, 1]} : vector<2x96xf32> to vector<2x32xf32>
    %287 = arith.mulf %286, %283 : vector<2x32xf32>
    %288 = arith.addf %285, %287 : vector<2x32xf32>
    %289 = vector.extract_strided_slice %281 {offsets = [0, 64], sizes = [2, 32], strides = [1, 1]} : vector<2x96xf32> to vector<2x32xf32>
    %290 = math.tanh %288 : vector<2x32xf32>
    %291 = arith.mulf %289, %290 : vector<2x32xf32>
    %c7_i32_82 = arith.constant 7 : i32
    %292 = arith.subi %c7_i32_82, %c4_i32 : i32
    %293 = arith.index_cast %292 : i32 to index
    %c0_83 = arith.constant 0 : index
    %c0_84 = arith.constant 0 : index
    %294 = vector.load %arg2[%293, %c0_83, %c0_84] : memref<8x2x128xbf16, #tpu.memory_space<vmem>>, vector<1x2x128xbf16>
    %295 = vector.shape_cast %294 : vector<1x2x128xbf16> to vector<2x128xbf16>
    %296 = arith.truncf %255 : vector<2x32xf32> to vector<2x32xbf16>
    %cst_85 = arith.constant dense<0.000000e+00> : vector<2x128xf32>
    %297 = tpu.matmul %296, %6, %cst_85 {dimension_numbers = #tpu.dot_dimension_numbers<[1], [0], [0], [1], [0, 0, 1, 1], [], []>} : vector<2x32xbf16>, vector<32x128xbf16>, vector<2x128xf32> -> vector<2x128xf32>
    %298 = arith.extf %295 : vector<2x128xbf16> to vector<2x128xf32>
    %299 = arith.addf %297, %298 : vector<2x128xf32>
    %300 = vector.broadcast %10 : vector<1x128xf32> to vector<2x128xf32>
    %301 = arith.addf %299, %300 : vector<2x128xf32>
    %302 = vector.extract_strided_slice %301 {offsets = [0, 0], sizes = [2, 96], strides = [1, 1]} : vector<2x128xf32> to vector<2x96xf32>
    %303 = arith.negf %302 : vector<2x96xf32>
    %304 = math.exp %303 : vector<2x96xf32>
    %cst_86 = arith.constant 1.000000e+00 : f32
    %305 = vector.broadcast %cst_86 : f32 to vector<2x96xf32>
    %306 = arith.addf %305, %304 : vector<2x96xf32>
    %307 = arith.divf %305, %306 : vector<2x96xf32>
    %308 = vector.extract_strided_slice %301 {offsets = [0, 96], sizes = [2, 32], strides = [1, 1]} : vector<2x128xf32> to vector<2x32xf32>
    %309 = math.tanh %308 : vector<2x32xf32>
    %310 = vector.extract_strided_slice %307 {offsets = [0, 32], sizes = [2, 32], strides = [1, 1]} : vector<2x96xf32> to vector<2x32xf32>
    %311 = arith.mulf %310, %252 : vector<2x32xf32>
    %312 = vector.extract_strided_slice %307 {offsets = [0, 0], sizes = [2, 32], strides = [1, 1]} : vector<2x96xf32> to vector<2x32xf32>
    %313 = arith.mulf %312, %309 : vector<2x32xf32>
    %314 = arith.addf %311, %313 : vector<2x32xf32>
    %315 = vector.extract_strided_slice %307 {offsets = [0, 64], sizes = [2, 32], strides = [1, 1]} : vector<2x96xf32> to vector<2x32xf32>
    %316 = math.tanh %314 : vector<2x32xf32>
    %317 = arith.mulf %315, %316 : vector<2x32xf32>
    %318 = arith.truncf %291 : vector<2x32xf32> to vector<2x32xbf16>
    %319 = arith.index_cast %c4_i32 : i32 to index
    %c0_87 = arith.constant 0 : index
    %c0_88 = arith.constant 0 : index
    %320 = vector.load %arg5[%319, %c0_87, %c0_88] : memref<8x2x32xbf16, #tpu.memory_space<vmem>>, vector<1x2x32xbf16>
    %321 = vector.shape_cast %320 : vector<1x2x32xbf16> to vector<2x32xbf16>
    %322 = vector.shape_cast %318 : vector<2x32xbf16> to vector<1x2x32xbf16>
    tpu.vector_store %arg5[%319, %c0_87, %c0_88], %322 {strides = array<i32>} : memref<8x2x32xbf16, #tpu.memory_space<vmem>>, vector<1x2x32xbf16>,
    %323 = arith.truncf %317 : vector<2x32xf32> to vector<2x32xbf16>
    %c7_i32_89 = arith.constant 7 : i32
    %324 = arith.subi %c7_i32_89, %c4_i32 : i32
    %325 = arith.index_cast %324 : i32 to index
    %c0_90 = arith.constant 0 : index
    %c0_91 = arith.constant 0 : index
    %326 = vector.load %arg6[%325, %c0_90, %c0_91] : memref<8x2x32xbf16, #tpu.memory_space<vmem>>, vector<1x2x32xbf16>
    %327 = vector.shape_cast %326 : vector<1x2x32xbf16> to vector<2x32xbf16>
    %328 = vector.shape_cast %323 : vector<2x32xbf16> to vector<1x2x32xbf16>
    tpu.vector_store %arg6[%325, %c0_90, %c0_91], %328 {strides = array<i32>} : memref<8x2x32xbf16, #tpu.memory_space<vmem>>, vector<1x2x32xbf16>,
    %c5_i32 = arith.constant 5 : i32
    %329 = arith.index_cast %c5_i32 : i32 to index
    %c0_92 = arith.constant 0 : index
    %c0_93 = arith.constant 0 : index
    %330 = vector.load %arg1[%329, %c0_92, %c0_93] : memref<8x2x128xbf16, #tpu.memory_space<vmem>>, vector<1x2x128xbf16>
    %331 = vector.shape_cast %330 : vector<1x2x128xbf16> to vector<2x128xbf16>
    %332 = arith.truncf %291 : vector<2x32xf32> to vector<2x32xbf16>
    %cst_94 = arith.constant dense<0.000000e+00> : vector<2x128xf32>
    %333 = tpu.matmul %332, %4, %cst_94 {dimension_numbers = #tpu.dot_dimension_numbers<[1], [0], [0], [1], [0, 0, 1, 1], [], []>} : vector<2x32xbf16>, vector<32x128xbf16>, vector<2x128xf32> -> vector<2x128xf32>
    %334 = arith.extf %331 : vector<2x128xbf16> to vector<2x128xf32>
    %335 = arith.addf %333, %334 : vector<2x128xf32>
    %336 = vector.broadcast %8 : vector<1x128xf32> to vector<2x128xf32>
    %337 = arith.addf %335, %336 : vector<2x128xf32>
    %338 = vector.extract_strided_slice %337 {offsets = [0, 0], sizes = [2, 96], strides = [1, 1]} : vector<2x128xf32> to vector<2x96xf32>
    %339 = arith.negf %338 : vector<2x96xf32>
    %340 = math.exp %339 : vector<2x96xf32>
    %cst_95 = arith.constant 1.000000e+00 : f32
    %341 = vector.broadcast %cst_95 : f32 to vector<2x96xf32>
    %342 = arith.addf %341, %340 : vector<2x96xf32>
    %343 = arith.divf %341, %342 : vector<2x96xf32>
    %344 = vector.extract_strided_slice %337 {offsets = [0, 96], sizes = [2, 32], strides = [1, 1]} : vector<2x128xf32> to vector<2x32xf32>
    %345 = math.tanh %344 : vector<2x32xf32>
    %346 = vector.extract_strided_slice %343 {offsets = [0, 32], sizes = [2, 32], strides = [1, 1]} : vector<2x96xf32> to vector<2x32xf32>
    %347 = arith.mulf %346, %288 : vector<2x32xf32>
    %348 = vector.extract_strided_slice %343 {offsets = [0, 0], sizes = [2, 32], strides = [1, 1]} : vector<2x96xf32> to vector<2x32xf32>
    %349 = arith.mulf %348, %345 : vector<2x32xf32>
    %350 = arith.addf %347, %349 : vector<2x32xf32>
    %351 = vector.extract_strided_slice %343 {offsets = [0, 64], sizes = [2, 32], strides = [1, 1]} : vector<2x96xf32> to vector<2x32xf32>
    %352 = math.tanh %350 : vector<2x32xf32>
    %353 = arith.mulf %351, %352 : vector<2x32xf32>
    %c7_i32_96 = arith.constant 7 : i32
    %354 = arith.subi %c7_i32_96, %c5_i32 : i32
    %355 = arith.index_cast %354 : i32 to index
    %c0_97 = arith.constant 0 : index
    %c0_98 = arith.constant 0 : index
    %356 = vector.load %arg2[%355, %c0_97, %c0_98] : memref<8x2x128xbf16, #tpu.memory_space<vmem>>, vector<1x2x128xbf16>
    %357 = vector.shape_cast %356 : vector<1x2x128xbf16> to vector<2x128xbf16>
    %358 = arith.truncf %317 : vector<2x32xf32> to vector<2x32xbf16>
    %cst_99 = arith.constant dense<0.000000e+00> : vector<2x128xf32>
    %359 = tpu.matmul %358, %6, %cst_99 {dimension_numbers = #tpu.dot_dimension_numbers<[1], [0], [0], [1], [0, 0, 1, 1], [], []>} : vector<2x32xbf16>, vector<32x128xbf16>, vector<2x128xf32> -> vector<2x128xf32>
    %360 = arith.extf %357 : vector<2x128xbf16> to vector<2x128xf32>
    %361 = arith.addf %359, %360 : vector<2x128xf32>
    %362 = vector.broadcast %10 : vector<1x128xf32> to vector<2x128xf32>
    %363 = arith.addf %361, %362 : vector<2x128xf32>
    %364 = vector.extract_strided_slice %363 {offsets = [0, 0], sizes = [2, 96], strides = [1, 1]} : vector<2x128xf32> to vector<2x96xf32>
    %365 = arith.negf %364 : vector<2x96xf32>
    %366 = math.exp %365 : vector<2x96xf32>
    %cst_100 = arith.constant 1.000000e+00 : f32
    %367 = vector.broadcast %cst_100 : f32 to vector<2x96xf32>
    %368 = arith.addf %367, %366 : vector<2x96xf32>
    %369 = arith.divf %367, %368 : vector<2x96xf32>
    %370 = vector.extract_strided_slice %363 {offsets = [0, 96], sizes = [2, 32], strides = [1, 1]} : vector<2x128xf32> to vector<2x32xf32>
    %371 = math.tanh %370 : vector<2x32xf32>
    %372 = vector.extract_strided_slice %369 {offsets = [0, 32], sizes = [2, 32], strides = [1, 1]} : vector<2x96xf32> to vector<2x32xf32>
    %373 = arith.mulf %372, %314 : vector<2x32xf32>
    %374 = vector.extract_strided_slice %369 {offsets = [0, 0], sizes = [2, 32], strides = [1, 1]} : vector<2x96xf32> to vector<2x32xf32>
    %375 = arith.mulf %374, %371 : vector<2x32xf32>
    %376 = arith.addf %373, %375 : vector<2x32xf32>
    %377 = vector.extract_strided_slice %369 {offsets = [0, 64], sizes = [2, 32], strides = [1, 1]} : vector<2x96xf32> to vector<2x32xf32>
    %378 = math.tanh %376 : vector<2x32xf32>
    %379 = arith.mulf %377, %378 : vector<2x32xf32>
    %380 = arith.truncf %353 : vector<2x32xf32> to vector<2x32xbf16>
    %381 = arith.index_cast %c5_i32 : i32 to index
    %c0_101 = arith.constant 0 : index
    %c0_102 = arith.constant 0 : index
    %382 = vector.load %arg5[%381, %c0_101, %c0_102] : memref<8x2x32xbf16, #tpu.memory_space<vmem>>, vector<1x2x32xbf16>
    %383 = vector.shape_cast %382 : vector<1x2x32xbf16> to vector<2x32xbf16>
    %384 = vector.shape_cast %380 : vector<2x32xbf16> to vector<1x2x32xbf16>
    tpu.vector_store %arg5[%381, %c0_101, %c0_102], %384 {strides = array<i32>} : memref<8x2x32xbf16, #tpu.memory_space<vmem>>, vector<1x2x32xbf16>,
    %385 = arith.truncf %379 : vector<2x32xf32> to vector<2x32xbf16>
    %c7_i32_103 = arith.constant 7 : i32
    %386 = arith.subi %c7_i32_103, %c5_i32 : i32
    %387 = arith.index_cast %386 : i32 to index
    %c0_104 = arith.constant 0 : index
    %c0_105 = arith.constant 0 : index
    %388 = vector.load %arg6[%387, %c0_104, %c0_105] : memref<8x2x32xbf16, #tpu.memory_space<vmem>>, vector<1x2x32xbf16>
    %389 = vector.shape_cast %388 : vector<1x2x32xbf16> to vector<2x32xbf16>
    %390 = vector.shape_cast %385 : vector<2x32xbf16> to vector<1x2x32xbf16>
    tpu.vector_store %arg6[%387, %c0_104, %c0_105], %390 {strides = array<i32>} : memref<8x2x32xbf16, #tpu.memory_space<vmem>>, vector<1x2x32xbf16>,
    %c6_i32 = arith.constant 6 : i32
    %391 = arith.index_cast %c6_i32 : i32 to index
    %c0_106 = arith.constant 0 : index
    %c0_107 = arith.constant 0 : index
    %392 = vector.load %arg1[%391, %c0_106, %c0_107] : memref<8x2x128xbf16, #tpu.memory_space<vmem>>, vector<1x2x128xbf16>
    %393 = vector.shape_cast %392 : vector<1x2x128xbf16> to vector<2x128xbf16>
    %394 = arith.truncf %353 : vector<2x32xf32> to vector<2x32xbf16>
    %cst_108 = arith.constant dense<0.000000e+00> : vector<2x128xf32>
    %395 = tpu.matmul %394, %4, %cst_108 {dimension_numbers = #tpu.dot_dimension_numbers<[1], [0], [0], [1], [0, 0, 1, 1], [], []>} : vector<2x32xbf16>, vector<32x128xbf16>, vector<2x128xf32> -> vector<2x128xf32>
    %396 = arith.extf %393 : vector<2x128xbf16> to vector<2x128xf32>
    %397 = arith.addf %395, %396 : vector<2x128xf32>
    %398 = vector.broadcast %8 : vector<1x128xf32> to vector<2x128xf32>
    %399 = arith.addf %397, %398 : vector<2x128xf32>
    %400 = vector.extract_strided_slice %399 {offsets = [0, 0], sizes = [2, 96], strides = [1, 1]} : vector<2x128xf32> to vector<2x96xf32>
    %401 = arith.negf %400 : vector<2x96xf32>
    %402 = math.exp %401 : vector<2x96xf32>
    %cst_109 = arith.constant 1.000000e+00 : f32
    %403 = vector.broadcast %cst_109 : f32 to vector<2x96xf32>
    %404 = arith.addf %403, %402 : vector<2x96xf32>
    %405 = arith.divf %403, %404 : vector<2x96xf32>
    %406 = vector.extract_strided_slice %399 {offsets = [0, 96], sizes = [2, 32], strides = [1, 1]} : vector<2x128xf32> to vector<2x32xf32>
    %407 = math.tanh %406 : vector<2x32xf32>
    %408 = vector.extract_strided_slice %405 {offsets = [0, 32], sizes = [2, 32], strides = [1, 1]} : vector<2x96xf32> to vector<2x32xf32>
    %409 = arith.mulf %408, %350 : vector<2x32xf32>
    %410 = vector.extract_strided_slice %405 {offsets = [0, 0], sizes = [2, 32], strides = [1, 1]} : vector<2x96xf32> to vector<2x32xf32>
    %411 = arith.mulf %410, %407 : vector<2x32xf32>
    %412 = arith.addf %409, %411 : vector<2x32xf32>
    %413 = vector.extract_strided_slice %405 {offsets = [0, 64], sizes = [2, 32], strides = [1, 1]} : vector<2x96xf32> to vector<2x32xf32>
    %414 = math.tanh %412 : vector<2x32xf32>
    %415 = arith.mulf %413, %414 : vector<2x32xf32>
    %c7_i32_110 = arith.constant 7 : i32
    %416 = arith.subi %c7_i32_110, %c6_i32 : i32
    %417 = arith.index_cast %416 : i32 to index
    %c0_111 = arith.constant 0 : index
    %c0_112 = arith.constant 0 : index
    %418 = vector.load %arg2[%417, %c0_111, %c0_112] : memref<8x2x128xbf16, #tpu.memory_space<vmem>>, vector<1x2x128xbf16>
    %419 = vector.shape_cast %418 : vector<1x2x128xbf16> to vector<2x128xbf16>
    %420 = arith.truncf %379 : vector<2x32xf32> to vector<2x32xbf16>
    %cst_113 = arith.constant dense<0.000000e+00> : vector<2x128xf32>
    %421 = tpu.matmul %420, %6, %cst_113 {dimension_numbers = #tpu.dot_dimension_numbers<[1], [0], [0], [1], [0, 0, 1, 1], [], []>} : vector<2x32xbf16>, vector<32x128xbf16>, vector<2x128xf32> -> vector<2x128xf32>
    %422 = arith.extf %419 : vector<2x128xbf16> to vector<2x128xf32>
    %423 = arith.addf %421, %422 : vector<2x128xf32>
    %424 = vector.broadcast %10 : vector<1x128xf32> to vector<2x128xf32>
    %425 = arith.addf %423, %424 : vector<2x128xf32>
    %426 = vector.extract_strided_slice %425 {offsets = [0, 0], sizes = [2, 96], strides = [1, 1]} : vector<2x128xf32> to vector<2x96xf32>
    %427 = arith.negf %426 : vector<2x96xf32>
    %428 = math.exp %427 : vector<2x96xf32>
    %cst_114 = arith.constant 1.000000e+00 : f32
    %429 = vector.broadcast %cst_114 : f32 to vector<2x96xf32>
    %430 = arith.addf %429, %428 : vector<2x96xf32>
    %431 = arith.divf %429, %430 : vector<2x96xf32>
    %432 = vector.extract_strided_slice %425 {offsets = [0, 96], sizes = [2, 32], strides = [1, 1]} : vector<2x128xf32> to vector<2x32xf32>
    %433 = math.tanh %432 : vector<2x32xf32>
    %434 = vector.extract_strided_slice %431 {offsets = [0, 32], sizes = [2, 32], strides = [1, 1]} : vector<2x96xf32> to vector<2x32xf32>
    %435 = arith.mulf %434, %376 : vector<2x32xf32>
    %436 = vector.extract_strided_slice %431 {offsets = [0, 0], sizes = [2, 32], strides = [1, 1]} : vector<2x96xf32> to vector<2x32xf32>
    %437 = arith.mulf %436, %433 : vector<2x32xf32>
    %438 = arith.addf %435, %437 : vector<2x32xf32>
    %439 = vector.extract_strided_slice %431 {offsets = [0, 64], sizes = [2, 32], strides = [1, 1]} : vector<2x96xf32> to vector<2x32xf32>
    %440 = math.tanh %438 : vector<2x32xf32>
    %441 = arith.mulf %439, %440 : vector<2x32xf32>
    %442 = arith.truncf %415 : vector<2x32xf32> to vector<2x32xbf16>
    %443 = arith.index_cast %c6_i32 : i32 to index
    %c0_115 = arith.constant 0 : index
    %c0_116 = arith.constant 0 : index
    %444 = vector.load %arg5[%443, %c0_115, %c0_116] : memref<8x2x32xbf16, #tpu.memory_space<vmem>>, vector<1x2x32xbf16>
    %445 = vector.shape_cast %444 : vector<1x2x32xbf16> to vector<2x32xbf16>
    %446 = vector.shape_cast %442 : vector<2x32xbf16> to vector<1x2x32xbf16>
    tpu.vector_store %arg5[%443, %c0_115, %c0_116], %446 {strides = array<i32>} : memref<8x2x32xbf16, #tpu.memory_space<vmem>>, vector<1x2x32xbf16>,
    %447 = arith.truncf %441 : vector<2x32xf32> to vector<2x32xbf16>
    %c7_i32_117 = arith.constant 7 : i32
    %448 = arith.subi %c7_i32_117, %c6_i32 : i32
    %449 = arith.index_cast %448 : i32 to index
    %c0_118 = arith.constant 0 : index
    %c0_119 = arith.constant 0 : index
    %450 = vector.load %arg6[%449, %c0_118, %c0_119] : memref<8x2x32xbf16, #tpu.memory_space<vmem>>, vector<1x2x32xbf16>
    %451 = vector.shape_cast %450 : vector<1x2x32xbf16> to vector<2x32xbf16>
    %452 = vector.shape_cast %447 : vector<2x32xbf16> to vector<1x2x32xbf16>
    tpu.vector_store %arg6[%449, %c0_118, %c0_119], %452 {strides = array<i32>} : memref<8x2x32xbf16, #tpu.memory_space<vmem>>, vector<1x2x32xbf16>,
    %c7_i32_120 = arith.constant 7 : i32
    %453 = arith.index_cast %c7_i32_120 : i32 to index
    %c0_121 = arith.constant 0 : index
    %c0_122 = arith.constant 0 : index
    %454 = vector.load %arg1[%453, %c0_121, %c0_122] : memref<8x2x128xbf16, #tpu.memory_space<vmem>>, vector<1x2x128xbf16>
    %455 = vector.shape_cast %454 : vector<1x2x128xbf16> to vector<2x128xbf16>
    %456 = arith.truncf %415 : vector<2x32xf32> to vector<2x32xbf16>
    %cst_123 = arith.constant dense<0.000000e+00> : vector<2x128xf32>
    %457 = tpu.matmul %456, %4, %cst_123 {dimension_numbers = #tpu.dot_dimension_numbers<[1], [0], [0], [1], [0, 0, 1, 1], [], []>} : vector<2x32xbf16>, vector<32x128xbf16>, vector<2x128xf32> -> vector<2x128xf32>
    %458 = arith.extf %455 : vector<2x128xbf16> to vector<2x128xf32>
    %459 = arith.addf %457, %458 : vector<2x128xf32>
    %460 = vector.broadcast %8 : vector<1x128xf32> to vector<2x128xf32>
    %461 = arith.addf %459, %460 : vector<2x128xf32>
    %462 = vector.extract_strided_slice %461 {offsets = [0, 0], sizes = [2, 96], strides = [1, 1]} : vector<2x128xf32> to vector<2x96xf32>
    %463 = arith.negf %462 : vector<2x96xf32>
    %464 = math.exp %463 : vector<2x96xf32>
    %cst_124 = arith.constant 1.000000e+00 : f32
    %465 = vector.broadcast %cst_124 : f32 to vector<2x96xf32>
    %466 = arith.addf %465, %464 : vector<2x96xf32>
    %467 = arith.divf %465, %466 : vector<2x96xf32>
    %468 = vector.extract_strided_slice %461 {offsets = [0, 96], sizes = [2, 32], strides = [1, 1]} : vector<2x128xf32> to vector<2x32xf32>
    %469 = math.tanh %468 : vector<2x32xf32>
    %470 = vector.extract_strided_slice %467 {offsets = [0, 32], sizes = [2, 32], strides = [1, 1]} : vector<2x96xf32> to vector<2x32xf32>
    %471 = arith.mulf %470, %412 : vector<2x32xf32>
    %472 = vector.extract_strided_slice %467 {offsets = [0, 0], sizes = [2, 32], strides = [1, 1]} : vector<2x96xf32> to vector<2x32xf32>
    %473 = arith.mulf %472, %469 : vector<2x32xf32>
    %474 = arith.addf %471, %473 : vector<2x32xf32>
    %475 = vector.extract_strided_slice %467 {offsets = [0, 64], sizes = [2, 32], strides = [1, 1]} : vector<2x96xf32> to vector<2x32xf32>
    %476 = math.tanh %474 : vector<2x32xf32>
    %477 = arith.mulf %475, %476 : vector<2x32xf32>
    %c7_i32_125 = arith.constant 7 : i32
    %478 = arith.subi %c7_i32_125, %c7_i32_120 : i32
    %479 = arith.index_cast %478 : i32 to index
    %c0_126 = arith.constant 0 : index
    %c0_127 = arith.constant 0 : index
    %480 = vector.load %arg2[%479, %c0_126, %c0_127] : memref<8x2x128xbf16, #tpu.memory_space<vmem>>, vector<1x2x128xbf16>
    %481 = vector.shape_cast %480 : vector<1x2x128xbf16> to vector<2x128xbf16>
    %482 = arith.truncf %441 : vector<2x32xf32> to vector<2x32xbf16>
    %cst_128 = arith.constant dense<0.000000e+00> : vector<2x128xf32>
    %483 = tpu.matmul %482, %6, %cst_128 {dimension_numbers = #tpu.dot_dimension_numbers<[1], [0], [0], [1], [0, 0, 1, 1], [], []>} : vector<2x32xbf16>, vector<32x128xbf16>, vector<2x128xf32> -> vector<2x128xf32>
    %484 = arith.extf %481 : vector<2x128xbf16> to vector<2x128xf32>
    %485 = arith.addf %483, %484 : vector<2x128xf32>
    %486 = vector.broadcast %10 : vector<1x128xf32> to vector<2x128xf32>
    %487 = arith.addf %485, %486 : vector<2x128xf32>
    %488 = vector.extract_strided_slice %487 {offsets = [0, 0], sizes = [2, 96], strides = [1, 1]} : vector<2x128xf32> to vector<2x96xf32>
    %489 = arith.negf %488 : vector<2x96xf32>
    %490 = math.exp %489 : vector<2x96xf32>
    %cst_129 = arith.constant 1.000000e+00 : f32
    %491 = vector.broadcast %cst_129 : f32 to vector<2x96xf32>
    %492 = arith.addf %491, %490 : vector<2x96xf32>
    %493 = arith.divf %491, %492 : vector<2x96xf32>
    %494 = vector.extract_strided_slice %487 {offsets = [0, 96], sizes = [2, 32], strides = [1, 1]} : vector<2x128xf32> to vector<2x32xf32>
    %495 = math.tanh %494 : vector<2x32xf32>
    %496 = vector.extract_strided_slice %493 {offsets = [0, 32], sizes = [2, 32], strides = [1, 1]} : vector<2x96xf32> to vector<2x32xf32>
    %497 = arith.mulf %496, %438 : vector<2x32xf32>
    %498 = vector.extract_strided_slice %493 {offsets = [0, 0], sizes = [2, 32], strides = [1, 1]} : vector<2x96xf32> to vector<2x32xf32>
    %499 = arith.mulf %498, %495 : vector<2x32xf32>
    %500 = arith.addf %497, %499 : vector<2x32xf32>
    %501 = vector.extract_strided_slice %493 {offsets = [0, 64], sizes = [2, 32], strides = [1, 1]} : vector<2x96xf32> to vector<2x32xf32>
    %502 = math.tanh %500 : vector<2x32xf32>
    %503 = arith.mulf %501, %502 : vector<2x32xf32>
    %504 = arith.truncf %477 : vector<2x32xf32> to vector<2x32xbf16>
    %505 = arith.index_cast %c7_i32_120 : i32 to index
    %c0_130 = arith.constant 0 : index
    %c0_131 = arith.constant 0 : index
    %506 = vector.load %arg5[%505, %c0_130, %c0_131] : memref<8x2x32xbf16, #tpu.memory_space<vmem>>, vector<1x2x32xbf16>
    %507 = vector.shape_cast %506 : vector<1x2x32xbf16> to vector<2x32xbf16>
    %508 = vector.shape_cast %504 : vector<2x32xbf16> to vector<1x2x32xbf16>
    tpu.vector_store %arg5[%505, %c0_130, %c0_131], %508 {strides = array<i32>} : memref<8x2x32xbf16, #tpu.memory_space<vmem>>, vector<1x2x32xbf16>,
    %509 = arith.truncf %503 : vector<2x32xf32> to vector<2x32xbf16>
    %c7_i32_132 = arith.constant 7 : i32
    %510 = arith.subi %c7_i32_132, %c7_i32_120 : i32
    %511 = arith.index_cast %510 : i32 to index
    %c0_133 = arith.constant 0 : index
    %c0_134 = arith.constant 0 : index
    %512 = vector.load %arg6[%511, %c0_133, %c0_134] : memref<8x2x32xbf16, #tpu.memory_space<vmem>>, vector<1x2x32xbf16>
    %513 = vector.shape_cast %512 : vector<1x2x32xbf16> to vector<2x32xbf16>
    %514 = vector.shape_cast %509 : vector<2x32xbf16> to vector<1x2x32xbf16>
    tpu.vector_store %arg6[%511, %c0_133, %c0_134], %514 {strides = array<i32>} : memref<8x2x32xbf16, #tpu.memory_space<vmem>>, vector<1x2x32xbf16>,
    %c8_i32 = arith.constant 8 : i32
    %c0_135 = arith.constant 0 : index
    %c0_136 = arith.constant 0 : index
    %c0_137 = arith.constant 0 : index
    %515 = vector.load %arg7[%c0_135, %c0_136, %c0_137] : memref<2x2x32xf32, #tpu.memory_space<vmem>>, vector<1x2x32xf32>
    %516 = vector.shape_cast %515 : vector<1x2x32xf32> to vector<2x32xf32>
    %517 = vector.shape_cast %477 : vector<2x32xf32> to vector<1x2x32xf32>
    tpu.vector_store %arg7[%c0_135, %c0_136, %c0_137], %517 {strides = array<i32>} : memref<2x2x32xf32, #tpu.memory_space<vmem>>, vector<1x2x32xf32>,
    %c0_138 = arith.constant 0 : index
    %c0_139 = arith.constant 0 : index
    %c0_140 = arith.constant 0 : index
    %518 = vector.load %arg8[%c0_138, %c0_139, %c0_140] : memref<2x2x32xf32, #tpu.memory_space<vmem>>, vector<1x2x32xf32>
    %519 = vector.shape_cast %518 : vector<1x2x32xf32> to vector<2x32xf32>
    %520 = vector.shape_cast %474 : vector<2x32xf32> to vector<1x2x32xf32>
    tpu.vector_store %arg8[%c0_138, %c0_139, %c0_140], %520 {strides = array<i32>} : memref<2x2x32xf32, #tpu.memory_space<vmem>>, vector<1x2x32xf32>,
    %c1_141 = arith.constant 1 : index
    %c0_142 = arith.constant 0 : index
    %c0_143 = arith.constant 0 : index
    %521 = vector.load %arg7[%c1_141, %c0_142, %c0_143] : memref<2x2x32xf32, #tpu.memory_space<vmem>>, vector<1x2x32xf32>
    %522 = vector.shape_cast %521 : vector<1x2x32xf32> to vector<2x32xf32>
    %523 = vector.shape_cast %503 : vector<2x32xf32> to vector<1x2x32xf32>
    tpu.vector_store %arg7[%c1_141, %c0_142, %c0_143], %523 {strides = array<i32>} : memref<2x2x32xf32, #tpu.memory_space<vmem>>, vector<1x2x32xf32>,
    %c1_144 = arith.constant 1 : index
    %c0_145 = arith.constant 0 : index
    %c0_146 = arith.constant 0 : index
    %524 = vector.load %arg8[%c1_144, %c0_145, %c0_146] : memref<2x2x32xf32, #tpu.memory_space<vmem>>, vector<1x2x32xf32>
    %525 = vector.shape_cast %524 : vector<1x2x32xf32> to vector<2x32xf32>
    %526 = vector.shape_cast %500 : vector<2x32xf32> to vector<1x2x32xf32>
    tpu.vector_store %arg8[%c1_144, %c0_145, %c0_146], %526 {strides = array<i32>} : memref<2x2x32xf32, #tpu.memory_space<vmem>>, vector<1x2x32xf32>,
    return
  }
  func.func @transform_0(%arg0: i32) -> (i32, i32, i32) {
    %c0_i32 = arith.constant 0 : i32
    %c0_i32_0 = arith.constant 0 : i32
    %c0_i32_1 = arith.constant 0 : i32
    return %arg0, %c0_i32, %c0_i32_0 : i32, i32, i32
  }
  func.func @transform_1(%arg0: i32) -> (i32, i32, i32) {
    %c0_i32 = arith.constant 0 : i32
    %0 = arith.subi %c0_i32, %arg0 : i32
    %c0_i32_0 = arith.constant 0 : i32
    %c0_i32_1 = arith.constant 0 : i32
    %c0_i32_2 = arith.constant 0 : i32
    return %0, %c0_i32_0, %c0_i32_1 : i32, i32, i32
  }
  func.func @transform_2(%arg0: i32) -> (i32, i32, i32) {
    %c0_i32 = arith.constant 0 : i32
    %c0_i32_0 = arith.constant 0 : i32
    %c0_i32_1 = arith.constant 0 : i32
    %c0_i32_2 = arith.constant 0 : i32
    return %c0_i32, %c0_i32_0, %c0_i32_1 : i32, i32, i32
  }
  func.func @transform_3(%arg0: i32) -> (i32, i32, i32) {
    %c0_i32 = arith.constant 0 : i32
    %c0_i32_0 = arith.constant 0 : i32
    %c0_i32_1 = arith.constant 0 : i32
    %c0_i32_2 = arith.constant 0 : i32
    return %c0_i32, %c0_i32_0, %c0_i32_1 : i32, i32, i32
  }
  func.func @transform_4(%arg0: i32) -> (i32, i32, i32) {
    %c0_i32 = arith.constant 0 : i32
    %c0_i32_0 = arith.constant 0 : i32
    %c0_i32_1 = arith.constant 0 : i32
    return %arg0, %c0_i32, %c0_i32_0 : i32, i32, i32
  }
  func.func @transform_5(%arg0: i32) -> (i32, i32, i32) {
    %c0_i32 = arith.constant 0 : i32
    %0 = arith.subi %c0_i32, %arg0 : i32
    %c0_i32_0 = arith.constant 0 : i32
    %c0_i32_1 = arith.constant 0 : i32
    %c0_i32_2 = arith.constant 0 : i32
    return %0, %c0_i32_0, %c0_i32_1 : i32, i32, i32
  }
}

</mosaic_0001>

<bundles_post_ra>
// kernel: inference_network_forward.5
= control target key start
LH: loop header
LB: loop body
LE: loop exit
PB: predicated region body
PF: predicated region fallthrough
CT: control target
= control target key end

     0   :  { %s444_s9 = smov 0   ;;  %s478_s0 = inlined_call_operand.vmem [shape: bf16[2,8,32], index: 0, kind: input, shape index: {}]   ;;  %s479_s1 = inlined_call_operand.vmem [shape: bf16[2,128,32], index: 1, kind: input, shape index: {}]   ;;  %s480_s2 = inlined_call_operand.vmem [shape: f32[2,8,128], index: 2, kind: output, shape index: {}]  }
   0x1 LB: > { %s351_s10 = sadd.s32 4294967295, %s425_s9   ;;  %p355_p0 = scmp.ge.s32.totalorder %s425_s9, 1  ;;  %s425_s9 = sphi %s444_s9, %s12_s9  }
   0x2   : > { %p121_p1 = scmp.lt.s32.totalorder %s425_s9, 3 }
   0x4   : > { %p122_p2 = pnand %p355_p0, %p121_p1 }
   0x5   : > { %p146_p3 = scmp.lt.s32.totalorder (!%p122_p2), %s351_s10, 1  ;;  %v427_v0 = vmov (!%p122_p2), 0.0   ;;  %vm428_vm0 = vmmov (!%p122_p2), 0   ;;  %vm217_vm1 = vcmask (!%p122_p2), 261120  }
   0x6   : > { %125 = sbr.rel (%p122_p2) target bundleno = 296 (0x128), region = 28  ;;  %381 = vmatprep.subr.bf16.mxu0 (!%p122_p2), %v427_v0  ;;  %397 = vmatprep.mubr.msk.bf16.mxu0 (!%p122_p2), %vm428_vm0, %v427_v0 }
   0xd   : > { %s482_s10 = smov (!%p146_p3, %s351_s10), 1 }
   0xe   : > { %s371_s11 = sshll.u32 %s482_s10, 6  ;;  %s356_s15 = sshll.u32 %s482_s10, 2 }
   0xf   : > { %s154_s14 = scalar_lea.vmem %s479_s1, %s371_s11  ;;  %s149_s18 = scalar_lea.vmem %s478_s0, %s356_s15 }
  0x10   : > { %v411_v1 = vld [vmem:[%s154_s14] sm:$0xff]   ;;  %v412_v3 = vld [vmem:[%s154_s14 + $0x8] sm:$0xff]   ;;  %v413_v5 = vld [vmem:[%s154_s14 + $0x10] sm:$0xff]   ;;  %s359_s19 = sshll.u32 %s482_s10, 3 }
  0x11   : > { %v222_v2 = vsel %vm217_vm1, %v411_v1, 0  ;;  %v225_v4 = vsel %vm217_vm1, %v412_v3, 0  ;;  %v228_v6 = vsel %vm217_vm1, %v413_v5, 0  ;;  %v414_v7 = vld [vmem:[%s154_s14 + $0x18] sm:$0xff]   ;;  %v415_v9 = vld [vmem:[%s154_s14 + $0x20] sm:$0xff]   ;;  %v416_v11 = vld [vmem:[%s154_s14 + $0x28] sm:$0xff]   ;;  %s158_s22 = scalar_lea.vmem %s480_s2, %s359_s19 }
  0x12   : > { %382 = vmatpush3.bf16.xpose.msra.mxu0 %v222_v2  ;;  %v231_v8 = vsel %vm217_vm1, %v414_v7, 0  ;;  %v234_v10 = vsel %vm217_vm1, %v415_v9, 0  ;;  %v237_v12 = vsel %vm217_vm1, %v416_v11, 0  ;;  %v417_v13 = vld [vmem:[%s154_s14 + $0x30] sm:$0xff]   ;;  %v418_v15 = vld [vmem:[%s154_s14 + $0x38] sm:$0xff]  }
  0x13   : > { %383 = vmatprep.subr.bf16.mxu0 %v427_v0  ;;  %v240_v14 = vsel %vm217_vm1, %v417_v13, 0  ;;  %v243_v16 = vsel %vm217_vm1, %v418_v15, 0  ;;  %v160_v17 = vld [vmem:[%s149_s18] sm:$0xf] }
  0x1a   : > { %384 = vmatpush3.bf16.xpose.msra.mxu0 %v225_v4 }
  0x1b   : > { %385 = vmatprep.subr.bf16.mxu0 %v427_v0 }
  0x22   : > { %386 = vmatpush3.bf16.xpose.msra.mxu0 %v228_v6 }
  0x23   : > { %387 = vmatprep.subr.bf16.mxu0 %v427_v0 }
  0x2a   : > { %388 = vmatpush3.bf16.xpose.msra.mxu0 %v231_v8 }
  0x2b   : > { %389 = vmatprep.subr.bf16.mxu0 %v427_v0 }
  0x32   : > { %390 = vmatpush3.bf16.xpose.msra.mxu0 %v234_v10 }
  0x33   : > { %391 = vmatprep.subr.bf16.mxu0 %v427_v0 }
  0x3a   : > { %392 = vmatpush3.bf16.xpose.msra.mxu0 %v237_v12 }
  0x3b   : > { %393 = vmatprep.subr.bf16.mxu0 %v427_v0 }
  0x42   : > { %394 = vmatpush3.bf16.xpose.msra.mxu0 %v240_v14 }
  0x43   : > { %395 = vmatprep.subr.bf16.mxu0 %v427_v0 }
  0x4a   : > { %396 = vmatpush3.bf16.xpose.msra.mxu0 %v243_v16 }
  0x51   : > { %398 = vmatmul.mubr.msk.bf16.vlgmr.msra.gmra.mrb[0].mxu0 %vm217_vm1, %v160_v17 }
 0x124   : > { %v279_v18 = vpop.f32.mrb[0].mxu0 }
 0x125   : > { %285 = vst [vmem:[%s158_s22] sm:$0xff] %v279_v18  ;;  %v399_v19 = vpop.f32.mrb[1].mxu0 }
 0x126   : > { %v282_v20 = vpop.f32.mrb[2].mxu0 }
 0x127   : > { %v400_v21 = vpop.f32.mrb[3].mxu0 }
 0x128 PF: > { %s12_s9 = sadd.s32 1, %s425_s9  }
 0x129   : > { %p9_p4 = scmp.ge.s32.totalorder %s12_s9, 4  }
 0x12b   :  { %11 = sbr.rel (!%p9_p4) target bundleno = 1 (0x1), region = 61 }

// kernel: inference_network_forward.4
= control target key start
LH: loop header
LB: loop body
LE: loop exit
PB: predicated region body
PF: predicated region fallthrough
CT: control target
= control target key end

     0   :  { %vm55_vm0 = vcmask 254976   ;;  %v1587_v0 = vmov 0.0   ;;  %vm1588_vm1 = vmmov 0   ;;  %vm93_vm2 = vcmask 261120   ;;  %s1589_s26 = smov 32   ;;  %s1994_s3 = inlined_call_operand.vmem [shape: bf16[2,32,128], index: 3, kind: input, shape index: {}]   ;;  %s1995_s0 = inlined_call_operand.vmem [shape: bf16[6,2,128], index: 0, kind: input, shape index: {}]   ;;  %s1996_s1 = inlined_call_operand.vmem [shape: bf16[6,2,128], index: 1, kind: input, shape index: {}]   ;;  %s1997_s2 = inlined_call_operand.vmem [shape: f32[2,1,128], index: 2, kind: input, shape index: {}]   ;;  %s1998_s4 = inlined_call_operand.vmem [shape: bf16[6,2,32], index: 4, kind: output, shape index: {0}]   ;;  %s1999_s5 = inlined_call_operand.vmem [shape: bf16[6,2,32], index: 5, kind: output, shape index: {1}]  }
   0x1   :  { %1385 = vmatprep.subr.bf16.mxu0 %v1587_v0  ;;  %v1627_v1 = vld [vmem:[%s1994_s3] sm:$0xff]   ;;  %1393 = vmatprep.subr.bf16.mxu1 %v1587_v0  ;;  %56 = vst.msk [vmem:[#allocation2] sm:$0x3] %vm55_vm0, %v1587_v0  ;;  %57 = vst.msk [vmem:[#allocation2 + $0x2] sm:$0x3] %vm55_vm0, %v1587_v0  ;;  %v1641_v2 = vld [vmem:[%s1994_s3 + $0x10] sm:$0xff]  }
   0x2   :  { %58 = vst.msk [vmem:[#allocation3] sm:$0x3] %vm55_vm0, %v1587_v0  ;;  %59 = vst.msk [vmem:[#allocation3 + $0x2] sm:$0x3] %vm55_vm0, %v1587_v0  ;;  %1389 = vmatprep.mubr.msk.bf16.mxu0 %vm1588_vm1, %v1587_v0  ;;  %1397 = vmatprep.mubr.msk.bf16.mxu1 %vm1588_vm1, %v1587_v0  ;;  %v1651_v3 = vld [vmem:[%s1994_s3 + $0x8] sm:$0xff]   ;;  %v1658_v4 = vld [vmem:[%s1994_s3 + $0x18] sm:$0xff]  }
   0x3   :  { %1386 = vmatpush3.bf16.msra.mxu0 %v1627_v1  ;;  %1394 = vmatpush3.bf16.msra.mxu1 %v1641_v2  ;;  %v78_v11 = vld [vmem:[%s1995_s0] sm:$0x1]  ;;  %v1304_v12 = vld [vmem:[%s1996_s1 + $0x5] sm:$0x1]  ;;  %v1695_v17 = vld [vmem:[%s1997_s2 + $0x1] ss:$0 sm:$0xff] }
   0x4   :  { %1387 = vmatprep.subr.bf16.mxu0 %v1587_v0  ;;  %1395 = vmatprep.subr.bf16.mxu1 %v1587_v0  ;;  %v80_v13 = vunpack.c.l.bf16 %v78_v11  ;;  %v175_v14 = vunpack.c.l.bf16 %v1304_v12  ;;  %v1690_v15 = vld [vmem:[%s1997_s2] ss:$0 sm:$0xff]  ;;  %s1590_s2 = smov 64   ;;  %v1311_v61 = vld [vmem:[%s1995_s0 + $0x1] sm:$0x1]  ;;  %vm285_vm3 = vcmask 253952  }
   0x5   :  { %v310_v62 = vunpack.c.l.bf16 %v1311_v61  ;;  %v1314_v63 = vld [vmem:[%s1996_s1 + $0x4] sm:$0x1] }
   0x7   :  { %1388 = vmatpush3.bf16.msra.mxu0 %v1651_v3  ;;  %1396 = vmatpush3.bf16.msra.mxu1 %v1658_v4 }
   0x8   :  { %v72_v5 = vld [vmem:[#allocation2] sm:$0x3]  ;;  %v75_v6 = vld [vmem:[#allocation2 + $0x2] sm:$0x3]  ;;  %1401 = vmatprep.subr.bf16.mxu0 %v1587_v0  ;;  %1409 = vmatprep.subr.bf16.mxu1 %v1587_v0 }
   0x9   :  { %v73_v7 = vld [vmem:[#allocation3] sm:$0x3]  ;;  %v79_v8 = vpack.c.bf16 %v72_v5, %v72_v5  ;;  %v174_v9 = vpack.c.bf16 %v75_v6, %v75_v6  ;;  %v77_v10 = vld [vmem:[#allocation3 + $0x2] sm:$0x3] }
   0xa   :  { %152 = vrot.lane.b32.xlu1 %v73_v7, %s1589_s26 }
   0xb   :  { %1390 = vmatmul.mubr.msk.bf16.vlgmr.msra.gmra.mrb[0].mxu0 %vm93_vm2, %v79_v8  ;;  %1398 = vmatmul.mubr.msk.bf16.vlgmr.msra.gmra.mrb[0].mxu1 %vm93_vm2, %v174_v9  ;;  %v383_v8 = vunpack.c.l.bf16 %v1314_v63 }
   0xc   :  { %1402 = vmatpush3.bf16.msra.mxu0 %v1627_v1  ;;  %1410 = vmatpush3.bf16.msra.mxu1 %v1641_v2 }
   0xd   :  { %1403 = vmatprep.subr.bf16.mxu0 %v1587_v0  ;;  %1405 = vmatprep.mubr.msk.bf16.mxu0 %vm1588_vm1, %v1587_v0 }
   0xe   :  { %246 = vrot.lane.b32.xlu1 %v77_v10, %s1589_s26  ;;  %1411 = vmatprep.subr.bf16.mxu1 %v1587_v0 }
   0xf   :  { %1413 = vmatprep.mubr.msk.bf16.mxu1 %vm1588_vm1, %v1587_v0 }
  0x10   :  { %1404 = vmatpush3.bf16.msra.mxu0 %v1651_v3  ;;  %1412 = vmatpush3.bf16.msra.mxu1 %v1658_v4 }
  0x11   :  { %1417 = vmatprep.subr.bf16.mxu0 %v1587_v0  ;;  %1425 = vmatprep.subr.bf16.mxu1 %v1587_v0 }
  0x7c   :  { %v153_v43 = vpop.permute.xlu1 %152 }
  0x80   :  { %v247_v45 = vpop.permute.xlu1 %246 }
  0xde   :  { %v131_v16 = vpop.f32.mrb[0].mxu0  ;;  %v225_v18 = vpop.f32.mrb[0].mxu1 }
  0xdf   :  { %v132_v19 = vadd.f32 %v131_v16, %v80_v13  ;;  %v1391_v20 = vpop.f32.mrb[1].mxu0  ;;  %v226_v21 = vadd.f32 %v225_v18, %v175_v14  ;;  %v1399_v22 = vpop.f32.mrb[1].mxu1 }
  0xe0   :  { %v134_v23 = vpop.f32.mrb[2].mxu0  ;;  %v228_v24 = vpop.f32.mrb[2].mxu1 }
  0xe1   :  { %v143_v25 = vadd.f32 %v1690_v15, %v132_v19  ;;  %v237_v26 = vadd.f32 %v1695_v17, %v226_v21  ;;  %v1392_v27 = vpop.f32.mrb[3].mxu0  ;;  %v1400_v28 = vpop.f32.mrb[3].mxu1 }
  0xe3   :  { %1491 = vtanh.f32 %v143_v25  ;;  %v1303_v31 = vmul.f32 -1.442695, %v143_v25  ;;  %v1309_v32 = vmul.f32 -1.442695, %v237_v26 }
  0xe4   :  { %1493 = vtanh.f32 %v237_v26 }
  0xe5   :  { %1495 = vpow2.f32 %v1303_v31 }
  0xe6   :  { %1497 = vpow2.f32 %v1309_v32 }
  0xed   :  { %v1492_v29 = vpop.eup %1491 }
  0xee   :  { %157 = vrot.lane.b32.xlu0 %v1492_v29, %s1589_s26  ;;  %v1494_v30 = vpop.eup %1493 }
  0xef   :  { %v1496_v33 = vpop.eup %1495 }
  0xf0   :  { %v147_v34 = vadd.f32 1.0, %v1496_v33  ;;  %v1498_v35 = vpop.eup %1497 }
  0xf1   :  { %v241_v36 = vadd.f32 1.0, %v1498_v35 }
  0xf2   :  { %251 = vrot.lane.b32.xlu0 %v1494_v30, %s1589_s26  ;;  %1499 = vrcp.f32 %v147_v34 }
  0xf3   :  { %1501 = vrcp.f32 %v241_v36 }
  0xfc   :  { %v1500_v37 = vpop.eup %1499 }
  0xfd   :  { %v1502_v40 = vpop.eup %1501  ;;  %v155_v44 = vmul.f32 %v1500_v37, %v153_v43 }
  0xfe   :  { %v249_v48 = vmul.f32 %v1502_v40, %v247_v45 }
 0x160   :  { %v158_v38 = vpop.permute.xlu0 %157 }
 0x161   :  { %v160_v39 = vmul.f32 %v1500_v37, %v158_v38 }
 0x163   :  { %162 = vrot.lane.b32.xlu0 %v160_v39, %s1589_s26 }
 0x164   :  { %v252_v41 = vpop.permute.xlu0 %251 }
 0x165   :  { %v254_v42 = vmul.f32 %v1502_v40, %v252_v41 }
 0x167   :  { %256 = vrot.lane.b32.xlu1 %v254_v42, %s1589_s26 }
 0x1d5   :  { %v163_v46 = vpop.permute.xlu0 %162 }
 0x1d6   :  { %v1703_v47 = vadd.f32 %v163_v46, %v155_v44 }
 0x1d8   :  { %1503 = vtanh.f32 %v1703_v47 }
 0x1d9   :  { %v257_v49 = vpop.permute.xlu1 %256 }
 0x1da   :  { %v1706_v50 = vadd.f32 %v257_v49, %v249_v48 }
 0x1dc   :  { %1505 = vtanh.f32 %v1706_v50 }
 0x1e2   :  { %v1504_v51 = vpop.eup %1503 }
 0x1e3   :  { %168 = vrot.lane.b32.xlu0 %v1504_v51, %s1589_s26 }
 0x1e6   :  { %v1506_v52 = vpop.eup %1505 }
 0x1e7   :  { %262 = vrot.lane.b32.xlu1 %v1506_v52, %s1589_s26  ;;  %v1322_v52 = vld [vmem:[%s1996_s1 + $0x3] sm:$0x1] }
 0x255   :  { %v169_v53 = vpop.permute.xlu0 %168 }
 0x256   :  { %v171_v54 = vmul.f32 %v1500_v37, %v169_v53 }
 0x258   :  { %v1711_v55 = vpack.c.bf16 %v171_v54, %v171_v54 }
 0x259   :  { %v263_v56 = vpop.permute.xlu1 %262 }
 0x25a   :  { %v265_v57 = vmul.f32 %v1502_v40, %v263_v56  ;;  %311 = vrot.lane.b32.xlu0 %v1711_v55, %s1590_s2 }
 0x25c   :  { %v1715_v58 = vpack.c.bf16 %v265_v57, %v265_v57  ;;  %v571_v57 = vunpack.c.l.bf16 %v1322_v52 }
 0x25e   :  { %384 = vrot.lane.b32.xlu1 %v1715_v58, %s1590_s2 }
 0x2cc   :  { %v312_v59 = vpop.permute.xlu0 %311 }
 0x2cd   :  { %1406 = vmatmul.mubr.msk.bf16.vlgmr.msra.gmra.mrb[4].mxu0 %vm93_vm2, %v312_v59 }
 0x2ce   :  { %1418 = vmatpush3.bf16.msra.mxu0 %v1627_v1  ;;  %1421 = vmatprep.mubr.msk.bf16.mxu0 %vm1588_vm1, %v1587_v0 }
 0x2cf   :  { %1419 = vmatprep.subr.bf16.mxu0 %v1587_v0 }
 0x2d0   :  { %v385_v60 = vpop.permute.xlu1 %384 }
 0x2d1   :  { %1414 = vmatmul.mubr.msk.bf16.vlgmr.msra.gmra.mrb[4].mxu1 %vm93_vm2, %v385_v60 }
 0x2d2   :  { %1426 = vmatpush3.bf16.msra.mxu1 %v1641_v2  ;;  %1420 = vmatpush3.bf16.msra.mxu0 %v1651_v3 }
 0x2d3   :  { %1427 = vmatprep.subr.bf16.mxu1 %v1587_v0  ;;  %1429 = vmatprep.mubr.msk.bf16.mxu1 %vm1588_vm1, %v1587_v0 }
 0x2d4   :  { %1433 = vmatprep.subr.bf16.mxu0 %v1587_v0 }
 0x2d6   :  { %1428 = vmatpush3.bf16.msra.mxu1 %v1658_v4 }
 0x2d7   :  { %1441 = vmatprep.subr.bf16.mxu1 %v1587_v0 }
 0x3a0   :  { %v350_v5 = vpop.f32.mrb[4].mxu0 }
 0x3a1   :  { %v351_v6 = vadd.f32 %v350_v5, %v310_v62  ;;  %v1407_v7 = vpop.f32.mrb[5].mxu0 }
 0x3a2   :  { %v353_v9 = vpop.f32.mrb[6].mxu0 }
 0x3a3   :  { %v356_v10 = vadd.f32 %v1690_v15, %v351_v6  ;;  %v1408_v11 = vpop.f32.mrb[7].mxu0 }
 0x3a4   :  { %v423_v12 = vpop.f32.mrb[4].mxu1 }
 0x3a5   :  { %1507 = vtanh.f32 %v356_v10  ;;  %v424_v13 = vadd.f32 %v423_v12, %v383_v8  ;;  %v1415_v14 = vpop.f32.mrb[5].mxu1  ;;  %v1313_v22 = vmul.f32 -1.442695, %v356_v10 }
 0x3a6   :  { %v426_v16 = vpop.f32.mrb[6].mxu1 }
 0x3a7   :  { %v429_v18 = vadd.f32 %v1695_v17, %v424_v13  ;;  %v1416_v19 = vpop.f32.mrb[7].mxu1 }
 0x3a9   :  { %1509 = vtanh.f32 %v429_v18  ;;  %v1316_v23 = vmul.f32 -1.442695, %v429_v18 }
 0x3aa   :  { %1511 = vpow2.f32 %v1313_v22 }
 0x3ab   :  { %1513 = vpow2.f32 %v1316_v23 }
 0x3af   :  { %v1508_v20 = vpop.eup %1507 }
 0x3b0   :  { %366 = vrot.lane.b32.xlu0 %v1508_v20, %s1589_s26 }
 0x3b3   :  { %v1510_v21 = vpop.eup %1509 }
 0x3b4   :  { %439 = vrot.lane.b32.xlu1 %v1510_v21, %s1589_s26  ;;  %v1512_v24 = vpop.eup %1511 }
 0x3b5   :  { %v360_v25 = vadd.f32 1.0, %v1512_v24  ;;  %v1514_v26 = vpop.eup %1513 }
 0x3b6   :  { %v433_v27 = vadd.f32 1.0, %v1514_v26 }
 0x3b7   :  { %1515 = vrcp.f32 %v360_v25 }
 0x3b8   :  { %1517 = vrcp.f32 %v433_v27 }
 0x3c1   :  { %v1516_v28 = vpop.eup %1515 }
 0x3c2   :  { %v1518_v31 = vpop.eup %1517  ;;  %v364_v34 = vmul.f32 %v1516_v28, %v1703_v47 }
 0x3c3   :  { %v437_v37 = vmul.f32 %v1518_v31, %v1706_v50  ;;  %v1319_v50 = vld [vmem:[%s1995_s0 + $0x2] sm:$0x1] }
 0x3c4   :  { %v498_v51 = vunpack.c.l.bf16 %v1319_v50 }
 0x422   :  { %v367_v29 = vpop.permute.xlu0 %366 }
 0x423   :  { %v369_v30 = vmul.f32 %v1516_v28, %v367_v29 }
 0x425   :  { %371 = vrot.lane.b32.xlu0 %v369_v30, %s1589_s26 }
 0x426   :  { %v440_v32 = vpop.permute.xlu1 %439 }
 0x427   :  { %v442_v33 = vmul.f32 %v1518_v31, %v440_v32 }
 0x429   :  { %444 = vrot.lane.b32.xlu1 %v442_v33, %s1589_s26 }
 0x497   :  { %v372_v35 = vpop.permute.xlu0 %371 }
 0x498   :  { %v1746_v36 = vadd.f32 %v372_v35, %v364_v34 }
 0x49a   :  { %1519 = vtanh.f32 %v1746_v36 }
 0x49b   :  { %v445_v38 = vpop.permute.xlu1 %444 }
 0x49c   :  { %v1750_v39 = vadd.f32 %v445_v38, %v437_v37 }
 0x49e   :  { %1521 = vtanh.f32 %v1750_v39 }
 0x4a4   :  { %v1520_v40 = vpop.eup %1519 }
 0x4a5   :  { %377 = vrot.lane.b32.xlu0 %v1520_v40, %s1589_s26 }
 0x4a8   :  { %v1522_v41 = vpop.eup %1521 }
 0x4a9   :  { %450 = vrot.lane.b32.xlu1 %v1522_v41, %s1589_s26  ;;  %v1327_v41 = vld [vmem:[%s1995_s0 + $0x3] sm:$0x1] }
 0x517   :  { %v378_v42 = vpop.permute.xlu0 %377 }
 0x518   :  { %v380_v43 = vmul.f32 %v1516_v28, %v378_v42  ;;  %v686_v42 = vunpack.c.l.bf16 %v1327_v41 }
 0x51a   :  { %v1755_v44 = vpack.c.bf16 %v380_v43, %v380_v43  ;;  %v1330_v43 = vld [vmem:[%s1996_s1 + $0x2] sm:$0x1] }
 0x51b   :  { %v451_v45 = vpop.permute.xlu1 %450 }
 0x51c   :  { %v453_v46 = vmul.f32 %v1518_v31, %v451_v45  ;;  %499 = vrot.lane.b32.xlu0 %v1755_v44, %s1590_s2 }
 0x51e   :  { %v1759_v47 = vpack.c.bf16 %v453_v46, %v453_v46 }
 0x520   :  { %572 = vrot.lane.b32.xlu1 %v1759_v47, %s1590_s2 }
 0x58e   :  { %v500_v48 = vpop.permute.xlu0 %499 }
 0x58f   :  { %1422 = vmatmul.mubr.msk.bf16.vlgmr.msra.gmra.mrb[8].mxu0 %vm93_vm2, %v500_v48 }
 0x590   :  { %1434 = vmatpush3.bf16.msra.mxu0 %v1627_v1  ;;  %1437 = vmatprep.mubr.msk.bf16.mxu0 %vm1588_vm1, %v1587_v0 }
 0x591   :  { %1435 = vmatprep.subr.bf16.mxu0 %v1587_v0 }
 0x592   :  { %v573_v49 = vpop.permute.xlu1 %572 }
 0x593   :  { %1430 = vmatmul.mubr.msk.bf16.vlgmr.msra.gmra.mrb[8].mxu1 %vm93_vm2, %v573_v49  ;;  %v759_v49 = vunpack.c.l.bf16 %v1330_v43 }
 0x594   :  { %1442 = vmatpush3.bf16.msra.mxu1 %v1641_v2  ;;  %1436 = vmatpush3.bf16.msra.mxu0 %v1651_v3 }
 0x595   :  { %1443 = vmatprep.subr.bf16.mxu1 %v1587_v0  ;;  %1445 = vmatprep.mubr.msk.bf16.mxu1 %vm1588_vm1, %v1587_v0 }
 0x596   :  { %1449 = vmatprep.subr.bf16.mxu0 %v1587_v0 }
 0x598   :  { %1444 = vmatpush3.bf16.msra.mxu1 %v1658_v4 }
 0x599   :  { %1457 = vmatprep.subr.bf16.mxu1 %v1587_v0 }
 0x662   :  { %v538_v53 = vpop.f32.mrb[8].mxu0 }
 0x663   :  { %v539_v54 = vadd.f32 %v538_v53, %v498_v51  ;;  %v1423_v56 = vpop.f32.mrb[9].mxu0 }
 0x664   :  { %v541_v59 = vpop.f32.mrb[10].mxu0 }
 0x665   :  { %v544_v60 = vadd.f32 %v1690_v15, %v539_v54  ;;  %v1424_v61 = vpop.f32.mrb[11].mxu0 }
 0x666   :  { %v611_v62 = vpop.f32.mrb[8].mxu1 }
 0x667   :  { %1523 = vtanh.f32 %v544_v60  ;;  %v612_v63 = vadd.f32 %v611_v62, %v571_v57  ;;  %v1431_v5 = vpop.f32.mrb[9].mxu1  ;;  %v1321_v11 = vmul.f32 -1.442695, %v544_v60 }
 0x668   :  { %v614_v6 = vpop.f32.mrb[10].mxu1 }
 0x669   :  { %v617_v7 = vadd.f32 %v1695_v17, %v612_v63  ;;  %v1432_v8 = vpop.f32.mrb[11].mxu1 }
 0x66b   :  { %1525 = vtanh.f32 %v617_v7  ;;  %v1324_v12 = vmul.f32 -1.442695, %v617_v7 }
 0x66c   :  { %1527 = vpow2.f32 %v1321_v11 }
 0x66d   :  { %1529 = vpow2.f32 %v1324_v12 }
 0x671   :  { %v1524_v9 = vpop.eup %1523 }
 0x672   :  { %554 = vrot.lane.b32.xlu0 %v1524_v9, %s1589_s26 }
 0x675   :  { %v1526_v10 = vpop.eup %1525 }
 0x676   :  { %627 = vrot.lane.b32.xlu1 %v1526_v10, %s1589_s26  ;;  %v1528_v13 = vpop.eup %1527 }
 0x677   :  { %v548_v14 = vadd.f32 1.0, %v1528_v13  ;;  %v1530_v16 = vpop.eup %1529 }
 0x678   :  { %v621_v18 = vadd.f32 1.0, %v1530_v16 }
 0x679   :  { %1531 = vrcp.f32 %v548_v14 }
 0x67a   :  { %1533 = vrcp.f32 %v621_v18 }
 0x683   :  { %v1532_v19 = vpop.eup %1531 }
 0x684   :  { %v1534_v22 = vpop.eup %1533  ;;  %v552_v25 = vmul.f32 %v1532_v19, %v1746_v36 }
 0x685   :  { %v625_v28 = vmul.f32 %v1534_v22, %v1750_v39 }
 0x6e4   :  { %v555_v20 = vpop.permute.xlu0 %554 }
 0x6e5   :  { %v557_v21 = vmul.f32 %v1532_v19, %v555_v20 }
 0x6e7   :  { %559 = vrot.lane.b32.xlu0 %v557_v21, %s1589_s26 }
 0x6e8   :  { %v628_v23 = vpop.permute.xlu1 %627 }
 0x6e9   :  { %v630_v24 = vmul.f32 %v1534_v22, %v628_v23 }
 0x6eb   :  { %632 = vrot.lane.b32.xlu1 %v630_v24, %s1589_s26 }
 0x759   :  { %v560_v26 = vpop.permute.xlu0 %559 }
 0x75a   :  { %v1790_v27 = vadd.f32 %v560_v26, %v552_v25 }
 0x75c   :  { %1535 = vtanh.f32 %v1790_v27 }
 0x75d   :  { %v633_v29 = vpop.permute.xlu1 %632 }
 0x75e   :  { %v1794_v30 = vadd.f32 %v633_v29, %v625_v28 }
 0x760   :  { %1537 = vtanh.f32 %v1794_v30 }
 0x766   :  { %v1536_v31 = vpop.eup %1535 }
 0x767   :  { %565 = vrot.lane.b32.xlu0 %v1536_v31, %s1589_s26 }
 0x76a   :  { %v1538_v32 = vpop.eup %1537 }
 0x76b   :  { %638 = vrot.lane.b32.xlu1 %v1538_v32, %s1589_s26 }
 0x7d9   :  { %v566_v33 = vpop.permute.xlu0 %565 }
 0x7da   :  { %v568_v34 = vmul.f32 %v1532_v19, %v566_v33 }
 0x7dc   :  { %v1799_v35 = vpack.c.bf16 %v568_v34, %v568_v34 }
 0x7dd   :  { %v639_v36 = vpop.permute.xlu1 %638 }
 0x7de   :  { %v641_v37 = vmul.f32 %v1534_v22, %v639_v36  ;;  %687 = vrot.lane.b32.xlu0 %v1799_v35, %s1590_s2  ;;  %v1338_v36 = vld [vmem:[%s1996_s1 + $0x1] sm:$0x1] }
 0x7e0   :  { %v1803_v38 = vpack.c.bf16 %v641_v37, %v641_v37 }
 0x7e2   :  { %760 = vrot.lane.b32.xlu1 %v1803_v38, %s1590_s2 }
 0x850   :  { %v688_v39 = vpop.permute.xlu0 %687 }
 0x851   :  { %1438 = vmatmul.mubr.msk.bf16.vlgmr.msra.gmra.mrb[12].mxu0 %vm93_vm2, %v688_v39 }
 0x852   :  { %1450 = vmatpush3.bf16.msra.mxu0 %v1627_v1  ;;  %1453 = vmatprep.mubr.msk.bf16.mxu0 %vm1588_vm1, %v1587_v0 }
 0x853   :  { %1451 = vmatprep.subr.bf16.mxu0 %v1587_v0 }
 0x854   :  { %v761_v40 = vpop.permute.xlu1 %760 }
 0x855   :  { %1446 = vmatmul.mubr.msk.bf16.vlgmr.msra.gmra.mrb[12].mxu1 %vm93_vm2, %v761_v40 }
 0x856   :  { %1458 = vmatpush3.bf16.msra.mxu1 %v1641_v2  ;;  %1452 = vmatpush3.bf16.msra.mxu0 %v1651_v3 }
 0x857   :  { %1459 = vmatprep.subr.bf16.mxu1 %v1587_v0  ;;  %1461 = vmatprep.mubr.msk.bf16.mxu1 %vm1588_vm1, %v1587_v0 }
 0x858   :  { %1465 = vmatprep.subr.bf16.mxu0 %v1587_v0 }
 0x85a   :  { %1460 = vmatpush3.bf16.msra.mxu1 %v1658_v4 }
 0x85b   :  { %1473 = vmatprep.subr.bf16.mxu1 %v1587_v0 }
 0x924   :  { %v726_v45 = vpop.f32.mrb[12].mxu0 }
 0x925   :  { %v727_v46 = vadd.f32 %v726_v45, %v686_v42  ;;  %v1439_v48 = vpop.f32.mrb[13].mxu0 }
 0x926   :  { %v729_v50 = vpop.f32.mrb[14].mxu0 }
 0x927   :  { %v732_v51 = vadd.f32 %v1690_v15, %v727_v46  ;;  %v1440_v52 = vpop.f32.mrb[15].mxu0 }
 0x928   :  { %v799_v53 = vpop.f32.mrb[12].mxu1 }
 0x929   :  { %1539 = vtanh.f32 %v732_v51  ;;  %v800_v54 = vadd.f32 %v799_v53, %v759_v49  ;;  %v1447_v56 = vpop.f32.mrb[13].mxu1  ;;  %v1329_v63 = vmul.f32 -1.442695, %v732_v51 }
 0x92a   :  { %v802_v57 = vpop.f32.mrb[14].mxu1 }
 0x92b   :  { %v805_v59 = vadd.f32 %v1695_v17, %v800_v54  ;;  %v1448_v60 = vpop.f32.mrb[15].mxu1 }
 0x92d   :  { %1541 = vtanh.f32 %v805_v59  ;;  %v1332_v5 = vmul.f32 -1.442695, %v805_v59 }
 0x92e   :  { %1543 = vpow2.f32 %v1329_v63 }
 0x92f   :  { %1545 = vpow2.f32 %v1332_v5 }
 0x933   :  { %v1540_v61 = vpop.eup %1539 }
 0x934   :  { %742 = vrot.lane.b32.xlu0 %v1540_v61, %s1589_s26 }
 0x937   :  { %v1542_v62 = vpop.eup %1541 }
 0x938   :  { %815 = vrot.lane.b32.xlu1 %v1542_v62, %s1589_s26  ;;  %v1544_v6 = vpop.eup %1543 }
 0x939   :  { %v736_v7 = vadd.f32 1.0, %v1544_v6  ;;  %v1546_v8 = vpop.eup %1545 }
 0x93a   :  { %v809_v9 = vadd.f32 1.0, %v1546_v8 }
 0x93b   :  { %1547 = vrcp.f32 %v736_v7 }
 0x93c   :  { %1549 = vrcp.f32 %v809_v9 }
 0x945   :  { %v1548_v10 = vpop.eup %1547 }
 0x946   :  { %v1550_v13 = vpop.eup %1549  ;;  %v740_v18 = vmul.f32 %v1548_v10, %v1790_v27 }
 0x947   :  { %v813_v21 = vmul.f32 %v1550_v13, %v1794_v30 }
 0x9a6   :  { %v743_v11 = vpop.permute.xlu0 %742 }
 0x9a7   :  { %v745_v12 = vmul.f32 %v1548_v10, %v743_v11 }
 0x9a9   :  { %747 = vrot.lane.b32.xlu0 %v745_v12, %s1589_s26 }
 0x9aa   :  { %v816_v14 = vpop.permute.xlu1 %815 }
 0x9ab   :  { %v818_v16 = vmul.f32 %v1550_v13, %v816_v14 }
 0x9ad   :  { %820 = vrot.lane.b32.xlu1 %v818_v16, %s1589_s26 }
 0xa1b   :  { %v748_v19 = vpop.permute.xlu0 %747 }
 0xa1c   :  { %v1834_v20 = vadd.f32 %v748_v19, %v740_v18 }
 0xa1e   :  { %1551 = vtanh.f32 %v1834_v20 }
 0xa1f   :  { %v821_v22 = vpop.permute.xlu1 %820 }
 0xa20   :  { %v1838_v23 = vadd.f32 %v821_v22, %v813_v21 }
 0xa22   :  { %1553 = vtanh.f32 %v1838_v23 }
 0xa28   :  { %v1552_v24 = vpop.eup %1551 }
 0xa29   :  { %753 = vrot.lane.b32.xlu0 %v1552_v24, %s1589_s26  ;;  %v1343_v24 = vld [vmem:[%s1995_s0 + $0x5] sm:$0x1] }
 0xa2c   :  { %v1554_v25 = vpop.eup %1553 }
 0xa2d   :  { %826 = vrot.lane.b32.xlu1 %v1554_v25, %s1589_s26  ;;  %v1062_v25 = vunpack.c.l.bf16 %v1343_v24 }
 0xa9b   :  { %v754_v26 = vpop.permute.xlu0 %753 }
 0xa9c   :  { %v756_v27 = vmul.f32 %v1548_v10, %v754_v26  ;;  %v1133_v26 = vld [vmem:[%s1996_s1] sm:$0x1] }
 0xa9e   :  { %v1843_v28 = vpack.c.bf16 %v756_v27, %v756_v27 }
 0xa9f   :  { %v827_v29 = vpop.permute.xlu1 %826 }
 0xaa0   :  { %v829_v31 = vmul.f32 %v1550_v13, %v827_v29  ;;  %875 = vrot.lane.b32.xlu0 %v1843_v28, %s1590_s2 }
 0xaa2   :  { %v1847_v30 = vpack.c.bf16 %v829_v31, %v829_v31 }
 0xaa4   :  { %948 = vrot.lane.b32.xlu1 %v1847_v30, %s1590_s2 }
 0xb12   :  { %v876_v32 = vpop.permute.xlu0 %875 }
 0xb13   :  { %1454 = vmatmul.mubr.msk.bf16.vlgmr.msra.gmra.mrb[16].mxu0 %vm93_vm2, %v876_v32  ;;  %v1134_v32 = vunpack.c.l.bf16 %v1133_v26 }
 0xb14   :  { %1466 = vmatpush3.bf16.msra.mxu0 %v1627_v1  ;;  %1469 = vmatprep.mubr.msk.bf16.mxu0 %vm1588_vm1, %v1587_v0  ;;  %v1335_v1 = vld [vmem:[%s1995_s0 + $0x4] sm:$0x1]  ;;  %s1592_s0 = smov 96  }
 0xb15   :  { %1467 = vmatprep.subr.bf16.mxu0 %v1587_v0  ;;  %v874_v34 = vunpack.c.l.bf16 %v1335_v1 }
 0xb16   :  { %v949_v33 = vpop.permute.xlu1 %948 }
 0xb17   :  { %1462 = vmatmul.mubr.msk.bf16.vlgmr.msra.gmra.mrb[16].mxu1 %vm93_vm2, %v949_v33 }
 0xb18   :  { %1474 = vmatpush3.bf16.msra.mxu1 %v1641_v2  ;;  %1468 = vmatpush3.bf16.msra.mxu0 %v1651_v3  ;;  %v947_v3 = vunpack.c.l.bf16 %v1338_v36 }
 0xb19   :  { %1475 = vmatprep.subr.bf16.mxu1 %v1587_v0  ;;  %1477 = vmatprep.mubr.msk.bf16.mxu1 %vm1588_vm1, %v1587_v0 }
 0xb1c   :  { %1476 = vmatpush3.bf16.msra.mxu1 %v1658_v4 }
 0xbe6   :  { %v914_v37 = vpop.f32.mrb[16].mxu0 }
 0xbe7   :  { %v915_v2 = vadd.f32 %v914_v37, %v874_v34  ;;  %v1455_v39 = vpop.f32.mrb[17].mxu0 }
 0xbe8   :  { %v917_v40 = vpop.f32.mrb[18].mxu0 }
 0xbe9   :  { %v920_v41 = vadd.f32 %v1690_v15, %v915_v2  ;;  %v1456_v42 = vpop.f32.mrb[19].mxu0 }
 0xbea   :  { %v987_v0 = vpop.f32.mrb[16].mxu1 }
 0xbeb   :  { %1555 = vtanh.f32 %v920_v41  ;;  %v988_v4 = vadd.f32 %v987_v0, %v947_v3  ;;  %v1463_v43 = vpop.f32.mrb[17].mxu1  ;;  %v1337_v51 = vmul.f32 -1.442695, %v920_v41 }
 0xbec   :  { %v990_v45 = vpop.f32.mrb[18].mxu1 }
 0xbed   :  { %v993_v46 = vadd.f32 %v1695_v17, %v988_v4  ;;  %v1464_v48 = vpop.f32.mrb[19].mxu1 }
 0xbef   :  { %1557 = vtanh.f32 %v993_v46  ;;  %v1340_v52 = vmul.f32 -1.442695, %v993_v46 }
 0xbf0   :  { %1559 = vpow2.f32 %v1337_v51 }
 0xbf1   :  { %1561 = vpow2.f32 %v1340_v52 }
 0xbf5   :  { %v1556_v49 = vpop.eup %1555 }
 0xbf6   :  { %930 = vrot.lane.b32.xlu0 %v1556_v49, %s1589_s26 }
 0xbf9   :  { %v1558_v50 = vpop.eup %1557 }
 0xbfa   :  { %1003 = vrot.lane.b32.xlu1 %v1558_v50, %s1589_s26  ;;  %v1560_v53 = vpop.eup %1559 }
 0xbfb   :  { %v924_v54 = vadd.f32 1.0, %v1560_v53  ;;  %v1562_v56 = vpop.eup %1561 }
 0xbfc   :  { %v997_v57 = vadd.f32 1.0, %v1562_v56 }
 0xbfd   :  { %1563 = vrcp.f32 %v924_v54  ;;  %v1591_v54 = vmov 1966171168  }
 0xbfe   :  { %1565 = vrcp.f32 %v997_v57  ;;  %v269_v56 = vunpack.c.l.s4 %v1591_v54  ;;  %v271_v57 = vlaneseq }
 0xc07   :  { %v1564_v59 = vpop.eup %1563 }
 0xc08   :  { %v1566_v62 = vpop.eup %1565  ;;  %v928_v6 = vmul.f32 %v1564_v59, %v1834_v20 }
 0xc09   :  { %v1001_v9 = vmul.f32 %v1566_v62, %v1838_v23 }
 0xc68   :  { %v931_v60 = vpop.permute.xlu0 %930 }
 0xc69   :  { %v933_v61 = vmul.f32 %v1564_v59, %v931_v60 }
 0xc6b   :  { %935 = vrot.lane.b32.xlu0 %v933_v61, %s1589_s26 }
 0xc6c   :  { %v1004_v63 = vpop.permute.xlu1 %1003 }
 0xc6d   :  { %v1006_v5 = vmul.f32 %v1566_v62, %v1004_v63  ;;  %v272_v63 = vshrl.u32 %v271_v57, 7 }
 0xc6f   :  { %1008 = vrot.lane.b32.xlu1 %v1006_v5, %s1589_s26 }
 0xcdd   :  { %v936_v7 = vpop.permute.xlu0 %935 }
 0xcde   :  { %v938_v8 = vadd.f32 %v936_v7, %v928_v6 }
 0xce0   :  { %1567 = vtanh.f32 %v938_v8 }
 0xce1   :  { %v1009_v10 = vpop.permute.xlu1 %1008 }
 0xce2   :  { %v1877_v11 = vadd.f32 %v1009_v10, %v1001_v9 }
 0xce4   :  { %1569 = vtanh.f32 %v1877_v11 }
 0xcea   :  { %v1568_v12 = vpop.eup %1567 }
 0xceb   :  { %941 = vrot.lane.b32.xlu0 %v1568_v12, %s1589_s26 }
 0xcee   :  { %v1570_v13 = vpop.eup %1569 }
 0xcef   :  { %1014 = vrot.lane.b32.xlu1 %v1570_v13, %s1589_s26 }
 0xd5d   :  { %v942_v14 = vpop.permute.xlu0 %941 }
 0xd5e   :  { %v944_v16 = vmul.f32 %v1564_v59, %v942_v14 }
 0xd60   :  { %v1882_v18 = vpack.c.bf16 %v944_v16, %v944_v16 }
 0xd61   :  { %v1015_v19 = vpop.permute.xlu1 %1014 }
 0xd62   :  { %v1017_v20 = vmul.f32 %v1566_v62, %v1015_v19  ;;  %1063 = vrot.lane.b32.xlu0 %v1882_v18, %s1590_s2  ;;  %v270_v62 = vunpack.c.0.s8 %v269_v56 }
 0xd64   :  { %v1886_v21 = vpack.c.bf16 %v1017_v20, %v1017_v20  ;;  %v273_v7 = vsub.s32 %v270_v62, %v272_v63 }
 0xd66   :  { %1135 = vrot.lane.b32.xlu1 %v1886_v21, %s1590_s2  ;;  %v274_v9 = vrot.slane %v1711_v55, %v273_v7  ;;  %v295_v10 = vrot.slane %v1715_v58, %v273_v7  ;;  %v462_v12 = vrot.slane %v1755_v44, %v273_v7  ;;  %v650_v16 = vrot.slane %v1799_v35, %v273_v7 }
 0xd67   :  { %v671_v55 = vrot.slane %v1803_v38, %v273_v7  ;;  %v838_v58 = vrot.slane %v1843_v28, %v273_v7  ;;  %v1026_v35 = vrot.slane %v1882_v18, %v273_v7  ;;  %v1047_v38 = vrot.slane %v1886_v21, %v273_v7 }
 0xd68   :  { %v281_v13 = vrot.slane %v274_v9, %v273_v7  ;;  %v302_v19 = vrot.slane %v295_v10, %v273_v7  ;;  %v469_v20 = vrot.slane %v462_v12, %v273_v7 }
 0xd69   :  { %v845_v24 = vrot.slane %v838_v58, %v273_v7  ;;  %v1033_v28 = vrot.slane %v1026_v35, %v273_v7  ;;  %v1054_v26 = vrot.slane %v1047_v38, %v273_v7 }
 0xdd4   :  { %v1064_v22 = vpop.permute.xlu0 %1063 }
 0xdd5   :  { %1470 = vmatmul.mubr.msk.bf16.vlgmr.msra.gmra.mrb[20].mxu0 %vm93_vm2, %v1064_v22  ;;  %v657_v22 = vrot.slane %v650_v16, %v273_v7 }
 0xdd8   :  { %v1136_v23 = vpop.permute.xlu1 %1135 }
 0xdd9   :  { %1478 = vmatmul.mubr.msk.bf16.vlgmr.msra.gmra.mrb[20].mxu1 %vm93_vm2, %v1136_v23  ;;  %v678_v23 = vrot.slane %v671_v55, %v273_v7 }
 0xea8   :  { %v1102_v27 = vpop.f32.mrb[20].mxu0 }
 0xea9   :  { %v1103_v29 = vadd.f32 %v1102_v27, %v1062_v25  ;;  %v1471_v31 = vpop.f32.mrb[21].mxu0 }
 0xeaa   :  { %v1105_v33 = vpop.f32.mrb[22].mxu0 }
 0xeab   :  { %v1108_v1 = vadd.f32 %v1690_v15, %v1103_v29  ;;  %v1472_v34 = vpop.f32.mrb[23].mxu0 }
 0xeac   :  { %v1174_v36 = vpop.f32.mrb[20].mxu1 }
 0xead   :  { %1571 = vtanh.f32 %v1108_v1  ;;  %v1175_v37 = vadd.f32 %v1174_v36, %v1134_v32  ;;  %v1479_v2 = vpop.f32.mrb[21].mxu1  ;;  %v1345_v0 = vmul.f32 -1.442695, %v1108_v1 }
 0xeae   :  { %v1177_v39 = vpop.f32.mrb[22].mxu1 }
 0xeaf   :  { %v1180_v3 = vadd.f32 %v1695_v17, %v1175_v37  ;;  %v1480_v40 = vpop.f32.mrb[23].mxu1 }
 0xeb1   :  { %1573 = vtanh.f32 %v1180_v3  ;;  %v1347_v4 = vmul.f32 -1.442695, %v1180_v3 }
 0xeb2   :  { %1575 = vpow2.f32 %v1345_v0 }
 0xeb3   :  { %1577 = vpow2.f32 %v1347_v4 }
 0xeb7   :  { %v1572_v41 = vpop.eup %1571 }
 0xeb8   :  { %1118 = vrot.lane.b32.xlu0 %v1572_v41, %s1589_s26 }
 0xebb   :  { %v1574_v42 = vpop.eup %1573 }
 0xebc   :  { %1190 = vrot.lane.b32.xlu1 %v1574_v42, %s1589_s26  ;;  %v1576_v15 = vpop.eup %1575 }
 0xebd   :  { %v1112_v43 = vadd.f32 1.0, %v1576_v15  ;;  %v1578_v45 = vpop.eup %1577 }
 0xebe   :  { %v1184_v46 = vadd.f32 1.0, %v1578_v45 }
 0xebf   :  { %1579 = vrcp.f32 %v1112_v43 }
 0xec0   :  { %1581 = vrcp.f32 %v1184_v46 }
 0xec9   :  { %v1580_v48 = vpop.eup %1579 }
 0xeca   :  { %v1903_v50 = vpop.eup %1581  ;;  %v1116_v53 = vmul.f32 %v1580_v48, %v938_v8 }
 0xecb   :  { %v1188_v61 = vmul.f32 %v1903_v50, %v1877_v11  ;;  %v483_v11 = vrot.slane %v1759_v47, %v273_v7  ;;  %v859_v47 = vrot.slane %v1847_v30, %v273_v7 }
 0xecd   :  { %v490_v44 = vrot.slane %v483_v11, %v273_v7  ;;  %v866_v25 = vrot.slane %v859_v47, %v273_v7 }
 0xf2a   :  { %v1119_v17 = vpop.permute.xlu0 %1118 }
 0xf2b   :  { %v1121_v49 = vmul.f32 %v1580_v48, %v1119_v17 }
 0xf2d   :  { %1123 = vrot.lane.b32.xlu0 %v1121_v49, %s1589_s26 }
 0xf2e   :  { %v1191_v51 = vpop.permute.xlu1 %1190 }
 0xf2f   :  { %v1193_v52 = vmul.f32 %v1903_v50, %v1191_v51 }
 0xf31   :  { %1195 = vrot.lane.b32.xlu1 %v1193_v52, %s1589_s26 }
 0xf9f   :  { %v1124_v59 = vpop.permute.xlu0 %1123 }
 0xfa0   :  { %v1126_v60 = vadd.f32 %v1124_v59, %v1116_v53 }
 0xfa2   :  { %1583 = vtanh.f32 %v1126_v60 }
 0xfa3   :  { %v1196_v5 = vpop.permute.xlu1 %1195 }
 0xfa4   :  { %v1909_v6 = vadd.f32 %v1196_v5, %v1188_v61 }
 0xfa6   :  { %1585 = vtanh.f32 %v1909_v6 }
 0xfac   :  { %v1584_v8 = vpop.eup %1583 }
 0xfad   :  { %1129 = vrot.lane.b32.xlu0 %v1584_v8, %s1589_s26 }
 0xfb0   :  { %v1586_v14 = vpop.eup %1585 }
 0xfb1   :  { %1201 = vrot.lane.b32.xlu1 %v1586_v14, %s1589_s26  ;;  %282 = vrot.lane.b32.xlu0 %v281_v13, %s1590_s2 }
 0xfb5   :  { %303 = vrot.lane.b32.xlu1 %v302_v19, %s1590_s2  ;;  %470 = vrot.lane.b32.xlu0 %v469_v20, %s1590_s2 }
 0xfb9   :  { %491 = vrot.lane.b32.xlu1 %v490_v44, %s1590_s2  ;;  %658 = vrot.lane.b32.xlu0 %v657_v22, %s1590_s2 }
 0xfbd   :  { %679 = vrot.lane.b32.xlu1 %v678_v23, %s1590_s2  ;;  %846 = vrot.lane.b32.xlu0 %v845_v24, %s1590_s2 }
 0xfc1   :  { %867 = vrot.lane.b32.xlu1 %v866_v25, %s1590_s2  ;;  %1034 = vrot.lane.b32.xlu0 %v1033_v28, %s1590_s2 }
 0xfc5   :  { %1055 = vrot.lane.b32.xlu1 %v1054_v26, %s1590_s2 }
 0xfc9   :  { %1253 = vrot.lane.b32.xlu1 %v1126_v60, %s1592_s0 }
0x101f   :  { %v1130_v30 = vpop.permute.xlu0 %1129 }
0x1020   :  { %v1132_v18 = vmul.f32 %v1580_v48, %v1130_v30 }
0x1022   :  { %v1205_v27 = vpack.c.bf16 %v1132_v18, %v1132_v18  ;;  %1247 = vrot.lane.b32.xlu0 %v1132_v18, %s1590_s2 }
0x1023   :  { %v1202_v29 = vpop.permute.xlu1 %1201  ;;  %v283_v21 = vpop.permute.xlu0 %282 }
0x1024   :  { %v1213_v31 = vrot.slane %v1205_v27, %v273_v7  ;;  %v1204_v32 = vmul.f32 %v1903_v50, %v1202_v29  ;;  %286 = vst.msk [vmem:[%s1998_s4] sm:$0x1] %vm285_vm3, %v283_v21 }
0x1026   :  { %v1226_v33 = vpack.c.bf16 %v1204_v32, %v1204_v32  ;;  %v1220_v1 = vrot.slane %v1213_v31, %v273_v7 }
0x1027   :  { %v304_v34 = vpop.permute.xlu1 %303  ;;  %v471_v36 = vpop.permute.xlu0 %470 }
0x1028   :  { %v1234_v37 = vrot.slane %v1226_v33, %v273_v7  ;;  %1310 = vst.msk [vmem:[%s1999_s5 + $0x5] sm:$0x1] %vm285_vm3, %v304_v34  ;;  %1317 = vst.msk [vmem:[%s1998_s4 + $0x1] sm:$0x1] %vm285_vm3, %v471_v36  ;;  %1221 = vrot.lane.b32.xlu0 %v1220_v1, %s1590_s2 }
0x102a   :  { %v1241_v2 = vrot.slane %v1234_v37, %v273_v7 }
0x102b   :  { %v492_v39 = vpop.permute.xlu1 %491  ;;  %v659_v3 = vpop.permute.xlu0 %658 }
0x102c   :  { %1318 = vst.msk [vmem:[%s1999_s5 + $0x4] sm:$0x1] %vm285_vm3, %v492_v39  ;;  %1325 = vst.msk [vmem:[%s1998_s4 + $0x2] sm:$0x1] %vm285_vm3, %v659_v3  ;;  %1242 = vrot.lane.b32.xlu1 %v1241_v2, %s1590_s2  ;;  %1258 = vrot.lane.b32.xlu0 %v1204_v32, %s1590_s2 }
0x102f   :  { %v680_v40 = vpop.permute.xlu1 %679  ;;  %v847_v41 = vpop.permute.xlu0 %846 }
0x1030   :  { %1326 = vst.msk [vmem:[%s1999_s5 + $0x3] sm:$0x1] %vm285_vm3, %v680_v40  ;;  %1333 = vst.msk [vmem:[%s1998_s4 + $0x3] sm:$0x1] %vm285_vm3, %v847_v41  ;;  %1263 = vrot.lane.b32.xlu1 %v1909_v6, %s1592_s0 }
0x1033   :  { %v868_v42 = vpop.permute.xlu1 %867  ;;  %v1035_v0 = vpop.permute.xlu0 %1034 }
0x1034   :  { %1334 = vst.msk [vmem:[%s1999_s5 + $0x2] sm:$0x1] %vm285_vm3, %v868_v42  ;;  %1341 = vst.msk [vmem:[%s1998_s4 + $0x4] sm:$0x1] %vm285_vm3, %v1035_v0 }
0x1037   :  { %v1056_v4 = vpop.permute.xlu1 %1055 }
0x1038   :  { %1342 = vst.msk [vmem:[%s1999_s5 + $0x1] sm:$0x1] %vm285_vm3, %v1056_v4 }
0x103b   :  { %v1254_v15 = vpop.permute.xlu1 %1253 }
0x103c   :  { %1256 = vst.msk [vmem:[#allocation3] sm:$0x3] %vm55_vm0, %v1254_v15 }
0x1094   :  { %v1248_v43 = vpop.permute.xlu0 %1247 }
0x1095   :  { %1251 = vst.msk [vmem:[#allocation2] sm:$0x3] %vm55_vm0, %v1248_v43 }
0x109a   :  { %v1222_v45 = vpop.permute.xlu0 %1221 }
0x109b   :  { %1348 = vst.msk [vmem:[%s1998_s4 + $0x5] sm:$0x1] %vm285_vm3, %v1222_v45 }
0x109e   :  { %v1243_v46 = vpop.permute.xlu1 %1242  ;;  %v1259_v48 = vpop.permute.xlu0 %1258 }
0x109f   :  { %1245 = vst.msk [vmem:[%s1999_s5] sm:$0x1] %vm285_vm3, %v1243_v46 }
0x10a0   :  { %1261 = vst.msk [vmem:[#allocation2 + $0x2] sm:$0x3] %vm55_vm0, %v1259_v48 }
0x10a2   :  { %v1264_v17 = vpop.permute.xlu1 %1263 }
0x10a3   :  { %1266 = vst.msk [vmem:[#allocation3 + $0x2] sm:$0x3] %vm55_vm0, %v1264_v17 }

// kernel: inference_network_forward.3
= control target key start
LH: loop header
LB: loop body
LE: loop exit
PB: predicated region body
PF: predicated region fallthrough
CT: control target
= control target key end

     0   :  { %vm55_vm0 = vcmask 254976   ;;  %v2057_v0 = vmov 0.0   ;;  %vm2058_vm1 = vmmov 0   ;;  %vm93_vm2 = vcmask 261120   ;;  %s2059_s26 = smov 32   ;;  %s2060_s9 = smov 64   ;;  %s2623_s3 = inlined_call_operand.vmem [shape: bf16[2,32,128], index: 3, kind: input, shape index: {}]   ;;  %s2624_s0 = inlined_call_operand.vmem [shape: bf16[8,2,128], index: 0, kind: input, shape index: {}]   ;;  %s2625_s1 = inlined_call_operand.vmem [shape: bf16[8,2,128], index: 1, kind: input, shape index: {}]   ;;  %s2626_s2 = inlined_call_operand.vmem [shape: f32[2,1,128], index: 2, kind: input, shape index: {}]   ;;  %s2627_s4 = inlined_call_operand.vmem [shape: bf16[8,2,32], index: 4, kind: output, shape index: {0}]   ;;  %s2628_s5 = inlined_call_operand.vmem [shape: bf16[8,2,32], index: 5, kind: output, shape index: {1}]  }
   0x1   :  { %1789 = vmatprep.subr.bf16.mxu0 %v2057_v0  ;;  %v2097_v1 = vld [vmem:[%s2623_s3] sm:$0xff]   ;;  %1797 = vmatprep.subr.bf16.mxu1 %v2057_v0  ;;  %56 = vst.msk [vmem:[#allocation2] sm:$0x3] %vm55_vm0, %v2057_v0  ;;  %57 = vst.msk [vmem:[#allocation2 + $0x2] sm:$0x3] %vm55_vm0, %v2057_v0  ;;  %v2111_v2 = vld [vmem:[%s2623_s3 + $0x10] sm:$0xff]  }
   0x2   :  { %58 = vst.msk [vmem:[#allocation3] sm:$0x3] %vm55_vm0, %v2057_v0  ;;  %59 = vst.msk [vmem:[#allocation3 + $0x2] sm:$0x3] %vm55_vm0, %v2057_v0  ;;  %1793 = vmatprep.mubr.msk.bf16.mxu0 %vm2058_vm1, %v2057_v0  ;;  %1801 = vmatprep.mubr.msk.bf16.mxu1 %vm2058_vm1, %v2057_v0  ;;  %v2121_v3 = vld [vmem:[%s2623_s3 + $0x8] sm:$0xff]   ;;  %v2128_v4 = vld [vmem:[%s2623_s3 + $0x18] sm:$0xff]  }
   0x3   :  { %1790 = vmatpush3.bf16.msra.mxu0 %v2097_v1  ;;  %1798 = vmatpush3.bf16.msra.mxu1 %v2111_v2  ;;  %v78_v11 = vld [vmem:[%s2624_s0] sm:$0x1]  ;;  %v1680_v12 = vld [vmem:[%s2625_s1 + $0x7] sm:$0x1]  ;;  %v2165_v17 = vld [vmem:[%s2626_s2 + $0x1] ss:$0 sm:$0xff] }
   0x4   :  { %1791 = vmatprep.subr.bf16.mxu0 %v2057_v0  ;;  %1799 = vmatprep.subr.bf16.mxu1 %v2057_v0  ;;  %v80_v13 = vunpack.c.l.bf16 %v78_v11  ;;  %v175_v14 = vunpack.c.l.bf16 %v1680_v12  ;;  %v2160_v15 = vld [vmem:[%s2626_s2] ss:$0 sm:$0xff]  ;;  %v1687_v61 = vld [vmem:[%s2624_s0 + $0x1] sm:$0x1]  ;;  %v1690_v63 = vld [vmem:[%s2625_s1 + $0x6] sm:$0x1] }
   0x5   :  { %v310_v62 = vunpack.c.l.bf16 %v1687_v61  ;;  %vm285_vm3 = vcmask 253952  }
   0x7   :  { %1792 = vmatpush3.bf16.msra.mxu0 %v2121_v3  ;;  %1800 = vmatpush3.bf16.msra.mxu1 %v2128_v4 }
   0x8   :  { %v72_v5 = vld [vmem:[#allocation2] sm:$0x3]  ;;  %v75_v6 = vld [vmem:[#allocation2 + $0x2] sm:$0x3]  ;;  %1805 = vmatprep.subr.bf16.mxu0 %v2057_v0  ;;  %1813 = vmatprep.subr.bf16.mxu1 %v2057_v0 }
   0x9   :  { %v73_v7 = vld [vmem:[#allocation3] sm:$0x3]  ;;  %v79_v8 = vpack.c.bf16 %v72_v5, %v72_v5  ;;  %v174_v9 = vpack.c.bf16 %v75_v6, %v75_v6  ;;  %v77_v10 = vld [vmem:[#allocation3 + $0x2] sm:$0x3] }
   0xa   :  { %152 = vrot.lane.b32.xlu1 %v73_v7, %s2059_s26 }
   0xb   :  { %1794 = vmatmul.mubr.msk.bf16.vlgmr.msra.gmra.mrb[0].mxu0 %vm93_vm2, %v79_v8  ;;  %1802 = vmatmul.mubr.msk.bf16.vlgmr.msra.gmra.mrb[0].mxu1 %vm93_vm2, %v174_v9  ;;  %v383_v8 = vunpack.c.l.bf16 %v1690_v63 }
   0xc   :  { %1806 = vmatpush3.bf16.msra.mxu0 %v2097_v1  ;;  %1814 = vmatpush3.bf16.msra.mxu1 %v2111_v2 }
   0xd   :  { %1807 = vmatprep.subr.bf16.mxu0 %v2057_v0  ;;  %1809 = vmatprep.mubr.msk.bf16.mxu0 %vm2058_vm1, %v2057_v0 }
   0xe   :  { %246 = vrot.lane.b32.xlu1 %v77_v10, %s2059_s26  ;;  %1815 = vmatprep.subr.bf16.mxu1 %v2057_v0 }
   0xf   :  { %1817 = vmatprep.mubr.msk.bf16.mxu1 %vm2058_vm1, %v2057_v0 }
  0x10   :  { %1808 = vmatpush3.bf16.msra.mxu0 %v2121_v3  ;;  %1816 = vmatpush3.bf16.msra.mxu1 %v2128_v4 }
  0x11   :  { %1821 = vmatprep.subr.bf16.mxu0 %v2057_v0  ;;  %1829 = vmatprep.subr.bf16.mxu1 %v2057_v0 }
  0x7c   :  { %v153_v43 = vpop.permute.xlu1 %152 }
  0x80   :  { %v247_v45 = vpop.permute.xlu1 %246 }
  0xde   :  { %v131_v16 = vpop.f32.mrb[0].mxu0  ;;  %v225_v18 = vpop.f32.mrb[0].mxu1 }
  0xdf   :  { %v132_v19 = vadd.f32 %v131_v16, %v80_v13  ;;  %v1795_v20 = vpop.f32.mrb[1].mxu0  ;;  %v226_v21 = vadd.f32 %v225_v18, %v175_v14  ;;  %v1803_v22 = vpop.f32.mrb[1].mxu1 }
  0xe0   :  { %v134_v23 = vpop.f32.mrb[2].mxu0  ;;  %v228_v24 = vpop.f32.mrb[2].mxu1 }
  0xe1   :  { %v143_v25 = vadd.f32 %v2160_v15, %v132_v19  ;;  %v237_v26 = vadd.f32 %v2165_v17, %v226_v21  ;;  %v1796_v27 = vpop.f32.mrb[3].mxu0  ;;  %v1804_v28 = vpop.f32.mrb[3].mxu1 }
  0xe3   :  { %1927 = vtanh.f32 %v143_v25  ;;  %v1679_v31 = vmul.f32 -1.442695, %v143_v25  ;;  %v1685_v32 = vmul.f32 -1.442695, %v237_v26 }
  0xe4   :  { %1929 = vtanh.f32 %v237_v26 }
  0xe5   :  { %1931 = vpow2.f32 %v1679_v31 }
  0xe6   :  { %1933 = vpow2.f32 %v1685_v32 }
  0xed   :  { %v1928_v29 = vpop.eup %1927 }
  0xee   :  { %157 = vrot.lane.b32.xlu0 %v1928_v29, %s2059_s26  ;;  %v1930_v30 = vpop.eup %1929 }
  0xef   :  { %v1932_v33 = vpop.eup %1931 }
  0xf0   :  { %v147_v34 = vadd.f32 1.0, %v1932_v33  ;;  %v1934_v35 = vpop.eup %1933 }
  0xf1   :  { %v241_v36 = vadd.f32 1.0, %v1934_v35 }
  0xf2   :  { %251 = vrot.lane.b32.xlu0 %v1930_v30, %s2059_s26  ;;  %1935 = vrcp.f32 %v147_v34 }
  0xf3   :  { %1937 = vrcp.f32 %v241_v36 }
  0xfc   :  { %v1936_v37 = vpop.eup %1935 }
  0xfd   :  { %v1938_v40 = vpop.eup %1937  ;;  %v155_v44 = vmul.f32 %v1936_v37, %v153_v43 }
  0xfe   :  { %v249_v48 = vmul.f32 %v1938_v40, %v247_v45 }
 0x160   :  { %v158_v38 = vpop.permute.xlu0 %157 }
 0x161   :  { %v160_v39 = vmul.f32 %v1936_v37, %v158_v38 }
 0x163   :  { %162 = vrot.lane.b32.xlu0 %v160_v39, %s2059_s26 }
 0x164   :  { %v252_v41 = vpop.permute.xlu0 %251 }
 0x165   :  { %v254_v42 = vmul.f32 %v1938_v40, %v252_v41 }
 0x167   :  { %256 = vrot.lane.b32.xlu1 %v254_v42, %s2059_s26 }
 0x1d5   :  { %v163_v46 = vpop.permute.xlu0 %162 }
 0x1d6   :  { %v2173_v47 = vadd.f32 %v163_v46, %v155_v44 }
 0x1d8   :  { %1939 = vtanh.f32 %v2173_v47 }
 0x1d9   :  { %v257_v49 = vpop.permute.xlu1 %256 }
 0x1da   :  { %v2176_v50 = vadd.f32 %v257_v49, %v249_v48 }
 0x1dc   :  { %1941 = vtanh.f32 %v2176_v50 }
 0x1e2   :  { %v1940_v51 = vpop.eup %1939 }
 0x1e3   :  { %168 = vrot.lane.b32.xlu0 %v1940_v51, %s2059_s26 }
 0x1e6   :  { %v1942_v52 = vpop.eup %1941 }
 0x1e7   :  { %262 = vrot.lane.b32.xlu1 %v1942_v52, %s2059_s26  ;;  %v1698_v52 = vld [vmem:[%s2625_s1 + $0x5] sm:$0x1] }
 0x255   :  { %v169_v53 = vpop.permute.xlu0 %168 }
 0x256   :  { %v171_v54 = vmul.f32 %v1936_v37, %v169_v53 }
 0x258   :  { %v2181_v55 = vpack.c.bf16 %v171_v54, %v171_v54 }
 0x259   :  { %v263_v56 = vpop.permute.xlu1 %262 }
 0x25a   :  { %v265_v57 = vmul.f32 %v1938_v40, %v263_v56  ;;  %311 = vrot.lane.b32.xlu0 %v2181_v55, %s2060_s9 }
 0x25c   :  { %v2185_v58 = vpack.c.bf16 %v265_v57, %v265_v57  ;;  %v571_v57 = vunpack.c.l.bf16 %v1698_v52 }
 0x25e   :  { %384 = vrot.lane.b32.xlu1 %v2185_v58, %s2060_s9 }
 0x2cc   :  { %v312_v59 = vpop.permute.xlu0 %311 }
 0x2cd   :  { %1810 = vmatmul.mubr.msk.bf16.vlgmr.msra.gmra.mrb[4].mxu0 %vm93_vm2, %v312_v59 }
 0x2ce   :  { %1822 = vmatpush3.bf16.msra.mxu0 %v2097_v1  ;;  %1825 = vmatprep.mubr.msk.bf16.mxu0 %vm2058_vm1, %v2057_v0 }
 0x2cf   :  { %1823 = vmatprep.subr.bf16.mxu0 %v2057_v0 }
 0x2d0   :  { %v385_v60 = vpop.permute.xlu1 %384 }
 0x2d1   :  { %1818 = vmatmul.mubr.msk.bf16.vlgmr.msra.gmra.mrb[4].mxu1 %vm93_vm2, %v385_v60 }
 0x2d2   :  { %1830 = vmatpush3.bf16.msra.mxu1 %v2111_v2  ;;  %1824 = vmatpush3.bf16.msra.mxu0 %v2121_v3 }
 0x2d3   :  { %1831 = vmatprep.subr.bf16.mxu1 %v2057_v0  ;;  %1833 = vmatprep.mubr.msk.bf16.mxu1 %vm2058_vm1, %v2057_v0 }
 0x2d4   :  { %1837 = vmatprep.subr.bf16.mxu0 %v2057_v0 }
 0x2d6   :  { %1832 = vmatpush3.bf16.msra.mxu1 %v2128_v4 }
 0x2d7   :  { %1845 = vmatprep.subr.bf16.mxu1 %v2057_v0 }
 0x3a0   :  { %v350_v5 = vpop.f32.mrb[4].mxu0 }
 0x3a1   :  { %v351_v6 = vadd.f32 %v350_v5, %v310_v62  ;;  %v1811_v7 = vpop.f32.mrb[5].mxu0 }
 0x3a2   :  { %v353_v9 = vpop.f32.mrb[6].mxu0 }
 0x3a3   :  { %v356_v10 = vadd.f32 %v2160_v15, %v351_v6  ;;  %v1812_v11 = vpop.f32.mrb[7].mxu0 }
 0x3a4   :  { %v423_v12 = vpop.f32.mrb[4].mxu1 }
 0x3a5   :  { %1943 = vtanh.f32 %v356_v10  ;;  %v424_v13 = vadd.f32 %v423_v12, %v383_v8  ;;  %v1819_v14 = vpop.f32.mrb[5].mxu1  ;;  %v1689_v22 = vmul.f32 -1.442695, %v356_v10 }
 0x3a6   :  { %v426_v16 = vpop.f32.mrb[6].mxu1 }
 0x3a7   :  { %v429_v18 = vadd.f32 %v2165_v17, %v424_v13  ;;  %v1820_v19 = vpop.f32.mrb[7].mxu1 }
 0x3a9   :  { %1945 = vtanh.f32 %v429_v18  ;;  %v1692_v23 = vmul.f32 -1.442695, %v429_v18 }
 0x3aa   :  { %1947 = vpow2.f32 %v1689_v22 }
 0x3ab   :  { %1949 = vpow2.f32 %v1692_v23 }
 0x3af   :  { %v1944_v20 = vpop.eup %1943 }
 0x3b0   :  { %366 = vrot.lane.b32.xlu0 %v1944_v20, %s2059_s26 }
 0x3b3   :  { %v1946_v21 = vpop.eup %1945 }
 0x3b4   :  { %439 = vrot.lane.b32.xlu1 %v1946_v21, %s2059_s26  ;;  %v1948_v24 = vpop.eup %1947 }
 0x3b5   :  { %v360_v25 = vadd.f32 1.0, %v1948_v24  ;;  %v1950_v26 = vpop.eup %1949 }
 0x3b6   :  { %v433_v27 = vadd.f32 1.0, %v1950_v26 }
 0x3b7   :  { %1951 = vrcp.f32 %v360_v25 }
 0x3b8   :  { %1953 = vrcp.f32 %v433_v27 }
 0x3c1   :  { %v1952_v28 = vpop.eup %1951 }
 0x3c2   :  { %v1954_v31 = vpop.eup %1953  ;;  %v364_v34 = vmul.f32 %v1952_v28, %v2173_v47 }
 0x3c3   :  { %v437_v37 = vmul.f32 %v1954_v31, %v2176_v50  ;;  %v1695_v50 = vld [vmem:[%s2624_s0 + $0x2] sm:$0x1] }
 0x3c4   :  { %v498_v51 = vunpack.c.l.bf16 %v1695_v50 }
 0x422   :  { %v367_v29 = vpop.permute.xlu0 %366 }
 0x423   :  { %v369_v30 = vmul.f32 %v1952_v28, %v367_v29 }
 0x425   :  { %371 = vrot.lane.b32.xlu0 %v369_v30, %s2059_s26 }
 0x426   :  { %v440_v32 = vpop.permute.xlu1 %439 }
 0x427   :  { %v442_v33 = vmul.f32 %v1954_v31, %v440_v32 }
 0x429   :  { %444 = vrot.lane.b32.xlu1 %v442_v33, %s2059_s26 }
 0x497   :  { %v372_v35 = vpop.permute.xlu0 %371 }
 0x498   :  { %v2216_v36 = vadd.f32 %v372_v35, %v364_v34 }
 0x49a   :  { %1955 = vtanh.f32 %v2216_v36 }
 0x49b   :  { %v445_v38 = vpop.permute.xlu1 %444 }
 0x49c   :  { %v2220_v39 = vadd.f32 %v445_v38, %v437_v37 }
 0x49e   :  { %1957 = vtanh.f32 %v2220_v39 }
 0x4a4   :  { %v1956_v40 = vpop.eup %1955 }
 0x4a5   :  { %377 = vrot.lane.b32.xlu0 %v1956_v40, %s2059_s26 }
 0x4a8   :  { %v1958_v41 = vpop.eup %1957 }
 0x4a9   :  { %450 = vrot.lane.b32.xlu1 %v1958_v41, %s2059_s26  ;;  %v1703_v41 = vld [vmem:[%s2624_s0 + $0x3] sm:$0x1] }
 0x517   :  { %v378_v42 = vpop.permute.xlu0 %377 }
 0x518   :  { %v380_v43 = vmul.f32 %v1952_v28, %v378_v42  ;;  %v686_v42 = vunpack.c.l.bf16 %v1703_v41 }
 0x51a   :  { %v2225_v44 = vpack.c.bf16 %v380_v43, %v380_v43  ;;  %v1706_v43 = vld [vmem:[%s2625_s1 + $0x4] sm:$0x1] }
 0x51b   :  { %v451_v45 = vpop.permute.xlu1 %450 }
 0x51c   :  { %v453_v46 = vmul.f32 %v1954_v31, %v451_v45  ;;  %499 = vrot.lane.b32.xlu0 %v2225_v44, %s2060_s9 }
 0x51e   :  { %v2229_v47 = vpack.c.bf16 %v453_v46, %v453_v46 }
 0x520   :  { %572 = vrot.lane.b32.xlu1 %v2229_v47, %s2060_s9 }
 0x58e   :  { %v500_v48 = vpop.permute.xlu0 %499 }
 0x58f   :  { %1826 = vmatmul.mubr.msk.bf16.vlgmr.msra.gmra.mrb[8].mxu0 %vm93_vm2, %v500_v48 }
 0x590   :  { %1838 = vmatpush3.bf16.msra.mxu0 %v2097_v1  ;;  %1841 = vmatprep.mubr.msk.bf16.mxu0 %vm2058_vm1, %v2057_v0 }
 0x591   :  { %1839 = vmatprep.subr.bf16.mxu0 %v2057_v0 }
 0x592   :  { %v573_v49 = vpop.permute.xlu1 %572 }
 0x593   :  { %1834 = vmatmul.mubr.msk.bf16.vlgmr.msra.gmra.mrb[8].mxu1 %vm93_vm2, %v573_v49  ;;  %v759_v49 = vunpack.c.l.bf16 %v1706_v43 }
 0x594   :  { %1846 = vmatpush3.bf16.msra.mxu1 %v2111_v2  ;;  %1840 = vmatpush3.bf16.msra.mxu0 %v2121_v3 }
 0x595   :  { %1847 = vmatprep.subr.bf16.mxu1 %v2057_v0  ;;  %1849 = vmatprep.mubr.msk.bf16.mxu1 %vm2058_vm1, %v2057_v0 }
 0x596   :  { %1853 = vmatprep.subr.bf16.mxu0 %v2057_v0 }
 0x598   :  { %1848 = vmatpush3.bf16.msra.mxu1 %v2128_v4 }
 0x599   :  { %1861 = vmatprep.subr.bf16.mxu1 %v2057_v0 }
 0x662   :  { %v538_v53 = vpop.f32.mrb[8].mxu0 }
 0x663   :  { %v539_v54 = vadd.f32 %v538_v53, %v498_v51  ;;  %v1827_v56 = vpop.f32.mrb[9].mxu0 }
 0x664   :  { %v541_v59 = vpop.f32.mrb[10].mxu0 }
 0x665   :  { %v544_v60 = vadd.f32 %v2160_v15, %v539_v54  ;;  %v1828_v61 = vpop.f32.mrb[11].mxu0 }
 0x666   :  { %v611_v62 = vpop.f32.mrb[8].mxu1 }
 0x667   :  { %1959 = vtanh.f32 %v544_v60  ;;  %v612_v63 = vadd.f32 %v611_v62, %v571_v57  ;;  %v1835_v5 = vpop.f32.mrb[9].mxu1  ;;  %v1697_v11 = vmul.f32 -1.442695, %v544_v60 }
 0x668   :  { %v614_v6 = vpop.f32.mrb[10].mxu1 }
 0x669   :  { %v617_v7 = vadd.f32 %v2165_v17, %v612_v63  ;;  %v1836_v8 = vpop.f32.mrb[11].mxu1 }
 0x66b   :  { %1961 = vtanh.f32 %v617_v7  ;;  %v1700_v12 = vmul.f32 -1.442695, %v617_v7 }
 0x66c   :  { %1963 = vpow2.f32 %v1697_v11 }
 0x66d   :  { %1965 = vpow2.f32 %v1700_v12 }
 0x671   :  { %v1960_v9 = vpop.eup %1959 }
 0x672   :  { %554 = vrot.lane.b32.xlu0 %v1960_v9, %s2059_s26 }
 0x675   :  { %v1962_v10 = vpop.eup %1961 }
 0x676   :  { %627 = vrot.lane.b32.xlu1 %v1962_v10, %s2059_s26  ;;  %v1964_v13 = vpop.eup %1963 }
 0x677   :  { %v548_v14 = vadd.f32 1.0, %v1964_v13  ;;  %v1966_v16 = vpop.eup %1965 }
 0x678   :  { %v621_v18 = vadd.f32 1.0, %v1966_v16 }
 0x679   :  { %1967 = vrcp.f32 %v548_v14 }
 0x67a   :  { %1969 = vrcp.f32 %v621_v18 }
 0x683   :  { %v1968_v19 = vpop.eup %1967 }
 0x684   :  { %v1970_v22 = vpop.eup %1969  ;;  %v552_v25 = vmul.f32 %v1968_v19, %v2216_v36 }
 0x685   :  { %v625_v28 = vmul.f32 %v1970_v22, %v2220_v39 }
 0x6e4   :  { %v555_v20 = vpop.permute.xlu0 %554 }
 0x6e5   :  { %v557_v21 = vmul.f32 %v1968_v19, %v555_v20 }
 0x6e7   :  { %559 = vrot.lane.b32.xlu0 %v557_v21, %s2059_s26 }
 0x6e8   :  { %v628_v23 = vpop.permute.xlu1 %627 }
 0x6e9   :  { %v630_v24 = vmul.f32 %v1970_v22, %v628_v23 }
 0x6eb   :  { %632 = vrot.lane.b32.xlu1 %v630_v24, %s2059_s26 }
 0x759   :  { %v560_v26 = vpop.permute.xlu0 %559 }
 0x75a   :  { %v2260_v27 = vadd.f32 %v560_v26, %v552_v25 }
 0x75c   :  { %1971 = vtanh.f32 %v2260_v27 }
 0x75d   :  { %v633_v29 = vpop.permute.xlu1 %632 }
 0x75e   :  { %v2264_v30 = vadd.f32 %v633_v29, %v625_v28 }
 0x760   :  { %1973 = vtanh.f32 %v2264_v30 }
 0x766   :  { %v1972_v31 = vpop.eup %1971 }
 0x767   :  { %565 = vrot.lane.b32.xlu0 %v1972_v31, %s2059_s26 }
 0x76a   :  { %v1974_v32 = vpop.eup %1973 }
 0x76b   :  { %638 = vrot.lane.b32.xlu1 %v1974_v32, %s2059_s26 }
 0x7d9   :  { %v566_v33 = vpop.permute.xlu0 %565 }
 0x7da   :  { %v568_v34 = vmul.f32 %v1968_v19, %v566_v33 }
 0x7dc   :  { %v2269_v35 = vpack.c.bf16 %v568_v34, %v568_v34  ;;  %v1711_v34 = vld [vmem:[%s2624_s0 + $0x4] sm:$0x1] }
 0x7dd   :  { %v639_v36 = vpop.permute.xlu1 %638 }
 0x7de   :  { %v641_v37 = vmul.f32 %v1970_v22, %v639_v36  ;;  %687 = vrot.lane.b32.xlu0 %v2269_v35, %s2060_s9  ;;  %v874_v36 = vunpack.c.l.bf16 %v1711_v34 }
 0x7e0   :  { %v2273_v38 = vpack.c.bf16 %v641_v37, %v641_v37  ;;  %v1714_v37 = vld [vmem:[%s2625_s1 + $0x3] sm:$0x1] }
 0x7e2   :  { %760 = vrot.lane.b32.xlu1 %v2273_v38, %s2060_s9 }
 0x850   :  { %v688_v39 = vpop.permute.xlu0 %687 }
 0x851   :  { %1842 = vmatmul.mubr.msk.bf16.vlgmr.msra.gmra.mrb[12].mxu0 %vm93_vm2, %v688_v39 }
 0x852   :  { %1854 = vmatpush3.bf16.msra.mxu0 %v2097_v1  ;;  %1857 = vmatprep.mubr.msk.bf16.mxu0 %vm2058_vm1, %v2057_v0 }
 0x853   :  { %1855 = vmatprep.subr.bf16.mxu0 %v2057_v0 }
 0x854   :  { %v761_v40 = vpop.permute.xlu1 %760 }
 0x855   :  { %1850 = vmatmul.mubr.msk.bf16.vlgmr.msra.gmra.mrb[12].mxu1 %vm93_vm2, %v761_v40 }
 0x856   :  { %1862 = vmatpush3.bf16.msra.mxu1 %v2111_v2  ;;  %1856 = vmatpush3.bf16.msra.mxu0 %v2121_v3 }
 0x857   :  { %1863 = vmatprep.subr.bf16.mxu1 %v2057_v0  ;;  %1865 = vmatprep.mubr.msk.bf16.mxu1 %vm2058_vm1, %v2057_v0 }
 0x858   :  { %1869 = vmatprep.subr.bf16.mxu0 %v2057_v0 }
 0x85a   :  { %1864 = vmatpush3.bf16.msra.mxu1 %v2128_v4 }
 0x85b   :  { %1877 = vmatprep.subr.bf16.mxu1 %v2057_v0 }
 0x924   :  { %v726_v45 = vpop.f32.mrb[12].mxu0 }
 0x925   :  { %v727_v46 = vadd.f32 %v726_v45, %v686_v42  ;;  %v1843_v48 = vpop.f32.mrb[13].mxu0  ;;  %v947_v42 = vunpack.c.l.bf16 %v1714_v37 }
 0x926   :  { %v729_v50 = vpop.f32.mrb[14].mxu0 }
 0x927   :  { %v732_v51 = vadd.f32 %v2160_v15, %v727_v46  ;;  %v1844_v52 = vpop.f32.mrb[15].mxu0 }
 0x928   :  { %v799_v53 = vpop.f32.mrb[12].mxu1 }
 0x929   :  { %1975 = vtanh.f32 %v732_v51  ;;  %v800_v54 = vadd.f32 %v799_v53, %v759_v49  ;;  %v1851_v56 = vpop.f32.mrb[13].mxu1  ;;  %v1705_v63 = vmul.f32 -1.442695, %v732_v51 }
 0x92a   :  { %v802_v57 = vpop.f32.mrb[14].mxu1 }
 0x92b   :  { %v805_v59 = vadd.f32 %v2165_v17, %v800_v54  ;;  %v1852_v60 = vpop.f32.mrb[15].mxu1 }
 0x92d   :  { %1977 = vtanh.f32 %v805_v59  ;;  %v1708_v5 = vmul.f32 -1.442695, %v805_v59 }
 0x92e   :  { %1979 = vpow2.f32 %v1705_v63 }
 0x92f   :  { %1981 = vpow2.f32 %v1708_v5 }
 0x933   :  { %v1976_v61 = vpop.eup %1975 }
 0x934   :  { %742 = vrot.lane.b32.xlu0 %v1976_v61, %s2059_s26 }
 0x937   :  { %v1978_v62 = vpop.eup %1977 }
 0x938   :  { %815 = vrot.lane.b32.xlu1 %v1978_v62, %s2059_s26  ;;  %v1980_v6 = vpop.eup %1979 }
 0x939   :  { %v736_v7 = vadd.f32 1.0, %v1980_v6  ;;  %v1982_v8 = vpop.eup %1981 }
 0x93a   :  { %v809_v9 = vadd.f32 1.0, %v1982_v8 }
 0x93b   :  { %1983 = vrcp.f32 %v736_v7 }
 0x93c   :  { %1985 = vrcp.f32 %v809_v9 }
 0x945   :  { %v1984_v10 = vpop.eup %1983 }
 0x946   :  { %v1986_v13 = vpop.eup %1985  ;;  %v740_v18 = vmul.f32 %v1984_v10, %v2260_v27 }
 0x947   :  { %v813_v21 = vmul.f32 %v1986_v13, %v2264_v30 }
 0x9a6   :  { %v743_v11 = vpop.permute.xlu0 %742 }
 0x9a7   :  { %v745_v12 = vmul.f32 %v1984_v10, %v743_v11 }
 0x9a9   :  { %747 = vrot.lane.b32.xlu0 %v745_v12, %s2059_s26 }
 0x9aa   :  { %v816_v14 = vpop.permute.xlu1 %815 }
 0x9ab   :  { %v818_v16 = vmul.f32 %v1986_v13, %v816_v14 }
 0x9ad   :  { %820 = vrot.lane.b32.xlu1 %v818_v16, %s2059_s26 }
 0xa1b   :  { %v748_v19 = vpop.permute.xlu0 %747 }
 0xa1c   :  { %v2304_v20 = vadd.f32 %v748_v19, %v740_v18 }
 0xa1e   :  { %1987 = vtanh.f32 %v2304_v20 }
 0xa1f   :  { %v821_v22 = vpop.permute.xlu1 %820 }
 0xa20   :  { %v2308_v23 = vadd.f32 %v821_v22, %v813_v21 }
 0xa22   :  { %1989 = vtanh.f32 %v2308_v23 }
 0xa28   :  { %v1988_v24 = vpop.eup %1987 }
 0xa29   :  { %753 = vrot.lane.b32.xlu0 %v1988_v24, %s2059_s26 }
 0xa2c   :  { %v1990_v25 = vpop.eup %1989 }
 0xa2d   :  { %826 = vrot.lane.b32.xlu1 %v1990_v25, %s2059_s26 }
 0xa9b   :  { %v754_v26 = vpop.permute.xlu0 %753 }
 0xa9c   :  { %v756_v27 = vmul.f32 %v1984_v10, %v754_v26 }
 0xa9e   :  { %v2313_v28 = vpack.c.bf16 %v756_v27, %v756_v27 }
 0xa9f   :  { %v827_v29 = vpop.permute.xlu1 %826 }
 0xaa0   :  { %v829_v31 = vmul.f32 %v1986_v13, %v827_v29  ;;  %875 = vrot.lane.b32.xlu0 %v2313_v28, %s2060_s9 }
 0xaa2   :  { %v2317_v30 = vpack.c.bf16 %v829_v31, %v829_v31  ;;  %v1719_v31 = vld [vmem:[%s2624_s0 + $0x5] sm:$0x1] }
 0xaa4   :  { %948 = vrot.lane.b32.xlu1 %v2317_v30, %s2060_s9 }
 0xb12   :  { %v876_v32 = vpop.permute.xlu0 %875 }
 0xb13   :  { %1858 = vmatmul.mubr.msk.bf16.vlgmr.msra.gmra.mrb[16].mxu0 %vm93_vm2, %v876_v32  ;;  %v1062_v32 = vunpack.c.l.bf16 %v1719_v31  ;;  %v1730_v31 = vld [vmem:[%s2625_s1 + $0x1] sm:$0x1] }
 0xb14   :  { %1870 = vmatpush3.bf16.msra.mxu0 %v2097_v1  ;;  %1873 = vmatprep.mubr.msk.bf16.mxu0 %vm2058_vm1, %v2057_v0 }
 0xb15   :  { %1871 = vmatprep.subr.bf16.mxu0 %v2057_v0 }
 0xb16   :  { %v949_v33 = vpop.permute.xlu1 %948 }
 0xb17   :  { %1866 = vmatmul.mubr.msk.bf16.vlgmr.msra.gmra.mrb[16].mxu1 %vm93_vm2, %v949_v33  ;;  %v1722_v33 = vld [vmem:[%s2625_s1 + $0x2] sm:$0x1] }
 0xb18   :  { %1878 = vmatpush3.bf16.msra.mxu1 %v2111_v2  ;;  %1872 = vmatpush3.bf16.msra.mxu0 %v2121_v3 }
 0xb19   :  { %1879 = vmatprep.subr.bf16.mxu1 %v2057_v0  ;;  %1881 = vmatprep.mubr.msk.bf16.mxu1 %vm2058_vm1, %v2057_v0 }
 0xb1a   :  { %1885 = vmatprep.subr.bf16.mxu0 %v2057_v0 }
 0xb1c   :  { %1880 = vmatpush3.bf16.msra.mxu1 %v2128_v4 }
 0xb1d   :  { %1893 = vmatprep.subr.bf16.mxu1 %v2057_v0 }
 0xbe6   :  { %v914_v39 = vpop.f32.mrb[16].mxu0 }
 0xbe7   :  { %v915_v40 = vadd.f32 %v914_v39, %v874_v36  ;;  %v1859_v41 = vpop.f32.mrb[17].mxu0  ;;  %v1135_v39 = vunpack.c.l.bf16 %v1722_v33 }
 0xbe8   :  { %v917_v43 = vpop.f32.mrb[18].mxu0 }
 0xbe9   :  { %v920_v45 = vadd.f32 %v2160_v15, %v915_v40  ;;  %v1860_v46 = vpop.f32.mrb[19].mxu0 }
 0xbea   :  { %v987_v48 = vpop.f32.mrb[16].mxu1 }
 0xbeb   :  { %1991 = vtanh.f32 %v920_v45  ;;  %v988_v49 = vadd.f32 %v987_v48, %v947_v42  ;;  %v1867_v50 = vpop.f32.mrb[17].mxu1  ;;  %v1713_v57 = vmul.f32 -1.442695, %v920_v45 }
 0xbec   :  { %v990_v51 = vpop.f32.mrb[18].mxu1 }
 0xbed   :  { %v993_v52 = vadd.f32 %v2165_v17, %v988_v49  ;;  %v1868_v53 = vpop.f32.mrb[19].mxu1 }
 0xbef   :  { %1993 = vtanh.f32 %v993_v52  ;;  %v1716_v59 = vmul.f32 -1.442695, %v993_v52 }
 0xbf0   :  { %1995 = vpow2.f32 %v1713_v57 }
 0xbf1   :  { %1997 = vpow2.f32 %v1716_v59 }
 0xbf5   :  { %v1992_v54 = vpop.eup %1991 }
 0xbf6   :  { %930 = vrot.lane.b32.xlu0 %v1992_v54, %s2059_s26 }
 0xbf9   :  { %v1994_v56 = vpop.eup %1993 }
 0xbfa   :  { %1003 = vrot.lane.b32.xlu1 %v1994_v56, %s2059_s26  ;;  %v1996_v60 = vpop.eup %1995 }
 0xbfb   :  { %v924_v61 = vadd.f32 1.0, %v1996_v60  ;;  %v1998_v62 = vpop.eup %1997 }
 0xbfc   :  { %v997_v63 = vadd.f32 1.0, %v1998_v62 }
 0xbfd   :  { %1999 = vrcp.f32 %v924_v61 }
 0xbfe   :  { %2001 = vrcp.f32 %v997_v63 }
 0xc07   :  { %v2000_v5 = vpop.eup %1999 }
 0xc08   :  { %v2002_v8 = vpop.eup %2001  ;;  %v928_v11 = vmul.f32 %v2000_v5, %v2304_v20 }
 0xc09   :  { %v1001_v14 = vmul.f32 %v2002_v8, %v2308_v23 }
 0xc68   :  { %v931_v6 = vpop.permute.xlu0 %930 }
 0xc69   :  { %v933_v7 = vmul.f32 %v2000_v5, %v931_v6 }
 0xc6b   :  { %935 = vrot.lane.b32.xlu0 %v933_v7, %s2059_s26 }
 0xc6c   :  { %v1004_v9 = vpop.permute.xlu1 %1003 }
 0xc6d   :  { %v1006_v10 = vmul.f32 %v2002_v8, %v1004_v9 }
 0xc6f   :  { %1008 = vrot.lane.b32.xlu1 %v1006_v10, %s2059_s26 }
 0xcdd   :  { %v936_v12 = vpop.permute.xlu0 %935 }
 0xcde   :  { %v2348_v13 = vadd.f32 %v936_v12, %v928_v11 }
 0xce0   :  { %2003 = vtanh.f32 %v2348_v13 }
 0xce1   :  { %v1009_v16 = vpop.permute.xlu1 %1008 }
 0xce2   :  { %v2352_v18 = vadd.f32 %v1009_v16, %v1001_v14 }
 0xce4   :  { %2005 = vtanh.f32 %v2352_v18 }
 0xcea   :  { %v2004_v19 = vpop.eup %2003 }
 0xceb   :  { %941 = vrot.lane.b32.xlu0 %v2004_v19, %s2059_s26 }
 0xcee   :  { %v2006_v21 = vpop.eup %2005 }
 0xcef   :  { %1014 = vrot.lane.b32.xlu1 %v2006_v21, %s2059_s26 }
 0xd5d   :  { %v942_v22 = vpop.permute.xlu0 %941 }
 0xd5e   :  { %v944_v20 = vmul.f32 %v2000_v5, %v942_v22 }
 0xd60   :  { %v2357_v24 = vpack.c.bf16 %v944_v20, %v944_v20 }
 0xd61   :  { %v1015_v25 = vpop.permute.xlu1 %1014 }
 0xd62   :  { %v1017_v26 = vmul.f32 %v2002_v8, %v1015_v25  ;;  %1063 = vrot.lane.b32.xlu0 %v2357_v24, %s2060_s9 }
 0xd64   :  { %v2361_v23 = vpack.c.bf16 %v1017_v26, %v1017_v26 }
 0xd66   :  { %1136 = vrot.lane.b32.xlu1 %v2361_v23, %s2060_s9 }
 0xdd4   :  { %v1064_v27 = vpop.permute.xlu0 %1063 }
 0xdd5   :  { %1874 = vmatmul.mubr.msk.bf16.vlgmr.msra.gmra.mrb[20].mxu0 %vm93_vm2, %v1064_v27 }
 0xdd6   :  { %1886 = vmatpush3.bf16.msra.mxu0 %v2097_v1  ;;  %1889 = vmatprep.mubr.msk.bf16.mxu0 %vm2058_vm1, %v2057_v0 }
 0xdd7   :  { %1887 = vmatprep.subr.bf16.mxu0 %v2057_v0 }
 0xdd8   :  { %v1137_v29 = vpop.permute.xlu1 %1136 }
 0xdd9   :  { %1882 = vmatmul.mubr.msk.bf16.vlgmr.msra.gmra.mrb[20].mxu1 %vm93_vm2, %v1137_v29 }
 0xdda   :  { %1894 = vmatpush3.bf16.msra.mxu1 %v2111_v2  ;;  %1888 = vmatpush3.bf16.msra.mxu0 %v2121_v3 }
 0xddb   :  { %1895 = vmatprep.subr.bf16.mxu1 %v2057_v0  ;;  %1897 = vmatprep.mubr.msk.bf16.mxu1 %vm2058_vm1, %v2057_v0 }
 0xddc   :  { %1901 = vmatprep.subr.bf16.mxu0 %v2057_v0 }
 0xdde   :  { %1896 = vmatpush3.bf16.msra.mxu1 %v2128_v4 }
 0xddf   :  { %1909 = vmatprep.subr.bf16.mxu1 %v2057_v0 }
 0xea8   :  { %v1102_v34 = vpop.f32.mrb[20].mxu0 }
 0xea9   :  { %v1103_v36 = vadd.f32 %v1102_v34, %v1062_v32  ;;  %v1875_v37 = vpop.f32.mrb[21].mxu0 }
 0xeaa   :  { %v1105_v40 = vpop.f32.mrb[22].mxu0 }
 0xeab   :  { %v1108_v41 = vadd.f32 %v2160_v15, %v1103_v36  ;;  %v1876_v42 = vpop.f32.mrb[23].mxu0 }
 0xeac   :  { %v1175_v43 = vpop.f32.mrb[20].mxu1 }
 0xead   :  { %2007 = vtanh.f32 %v1108_v41  ;;  %v1176_v45 = vadd.f32 %v1175_v43, %v1135_v39  ;;  %v1883_v46 = vpop.f32.mrb[21].mxu1  ;;  %v1721_v53 = vmul.f32 -1.442695, %v1108_v41 }
 0xeae   :  { %v1178_v48 = vpop.f32.mrb[22].mxu1 }
 0xeaf   :  { %v1181_v49 = vadd.f32 %v2165_v17, %v1176_v45  ;;  %v1884_v50 = vpop.f32.mrb[23].mxu1 }
 0xeb1   :  { %2009 = vtanh.f32 %v1181_v49  ;;  %v1724_v54 = vmul.f32 -1.442695, %v1181_v49 }
 0xeb2   :  { %2011 = vpow2.f32 %v1721_v53 }
 0xeb3   :  { %2013 = vpow2.f32 %v1724_v54 }
 0xeb7   :  { %v2008_v51 = vpop.eup %2007 }
 0xeb8   :  { %1118 = vrot.lane.b32.xlu0 %v2008_v51, %s2059_s26 }
 0xebb   :  { %v2010_v52 = vpop.eup %2009 }
 0xebc   :  { %1191 = vrot.lane.b32.xlu1 %v2010_v52, %s2059_s26  ;;  %v2012_v56 = vpop.eup %2011 }
 0xebd   :  { %v1112_v57 = vadd.f32 1.0, %v2012_v56  ;;  %v2014_v59 = vpop.eup %2013 }
 0xebe   :  { %v1185_v60 = vadd.f32 1.0, %v2014_v59 }
 0xebf   :  { %2015 = vrcp.f32 %v1112_v57 }
 0xec0   :  { %2017 = vrcp.f32 %v1185_v60 }
 0xec9   :  { %v2016_v61 = vpop.eup %2015 }
 0xeca   :  { %v2018_v5 = vpop.eup %2017  ;;  %v1116_v8 = vmul.f32 %v2016_v61, %v2348_v13 }
 0xecb   :  { %v1189_v11 = vmul.f32 %v2018_v5, %v2352_v18 }
 0xf2a   :  { %v1119_v62 = vpop.permute.xlu0 %1118 }
 0xf2b   :  { %v1121_v63 = vmul.f32 %v2016_v61, %v1119_v62 }
 0xf2d   :  { %1123 = vrot.lane.b32.xlu0 %v1121_v63, %s2059_s26 }
 0xf2e   :  { %v1192_v6 = vpop.permute.xlu1 %1191 }
 0xf2f   :  { %v1194_v7 = vmul.f32 %v2018_v5, %v1192_v6 }
 0xf31   :  { %1196 = vrot.lane.b32.xlu1 %v1194_v7, %s2059_s26 }
 0xf9f   :  { %v1124_v9 = vpop.permute.xlu0 %1123 }
 0xfa0   :  { %v2392_v10 = vadd.f32 %v1124_v9, %v1116_v8 }
 0xfa2   :  { %2019 = vtanh.f32 %v2392_v10 }
 0xfa3   :  { %v1197_v12 = vpop.permute.xlu1 %1196 }
 0xfa4   :  { %v2396_v14 = vadd.f32 %v1197_v12, %v1189_v11 }
 0xfa6   :  { %2021 = vtanh.f32 %v2396_v14 }
 0xfac   :  { %v2020_v16 = vpop.eup %2019 }
 0xfad   :  { %1129 = vrot.lane.b32.xlu0 %v2020_v16, %s2059_s26 }
 0xfb0   :  { %v2022_v19 = vpop.eup %2021 }
 0xfb1   :  { %1202 = vrot.lane.b32.xlu1 %v2022_v19, %s2059_s26 }
0x101f   :  { %v1130_v21 = vpop.permute.xlu0 %1129 }
0x1020   :  { %v1132_v13 = vmul.f32 %v2016_v61, %v1130_v21  ;;  %v1735_v21 = vld [vmem:[%s2624_s0 + $0x7] sm:$0x1] }
0x1022   :  { %v2401_v22 = vpack.c.bf16 %v1132_v13, %v1132_v13  ;;  %v1438_v13 = vunpack.c.l.bf16 %v1735_v21 }
0x1023   :  { %v1203_v20 = vpop.permute.xlu1 %1202 }
0x1024   :  { %v1205_v25 = vmul.f32 %v2018_v5, %v1203_v20  ;;  %1251 = vrot.lane.b32.xlu0 %v2401_v22, %s2060_s9  ;;  %v1509_v20 = vld [vmem:[%s2625_s1] sm:$0x1]  ;;  %s2062_s1 = smov 96  }
0x1026   :  { %v2405_v18 = vpack.c.bf16 %v1205_v25, %v1205_v25 }
0x1028   :  { %1324 = vrot.lane.b32.xlu1 %v2405_v18, %s2060_s9 }
0x1096   :  { %v1252_v26 = vpop.permute.xlu0 %1251 }
0x1097   :  { %1890 = vmatmul.mubr.msk.bf16.vlgmr.msra.gmra.mrb[24].mxu0 %vm93_vm2, %v1252_v26 }
0x1098   :  { %1902 = vmatpush3.bf16.msra.mxu0 %v2097_v1  ;;  %1905 = vmatprep.mubr.msk.bf16.mxu0 %vm2058_vm1, %v2057_v0  ;;  %v1727_v1 = vld [vmem:[%s2624_s0 + $0x6] sm:$0x1] }
0x1099   :  { %1903 = vmatprep.subr.bf16.mxu0 %v2057_v0  ;;  %v1250_v29 = vunpack.c.l.bf16 %v1727_v1  ;;  %v1510_v1 = vunpack.c.l.bf16 %v1509_v20 }
0x109a   :  { %v1325_v27 = vpop.permute.xlu1 %1324 }
0x109b   :  { %1898 = vmatmul.mubr.msk.bf16.vlgmr.msra.gmra.mrb[24].mxu1 %vm93_vm2, %v1325_v27 }
0x109c   :  { %1910 = vmatpush3.bf16.msra.mxu1 %v2111_v2  ;;  %1904 = vmatpush3.bf16.msra.mxu0 %v2121_v3  ;;  %v1323_v3 = vunpack.c.l.bf16 %v1730_v31  ;;  %v2055_v31 = vld [vmem:[%s2626_s2] ss:$0 sm:$0xff] }
0x109d   :  { %1911 = vmatprep.subr.bf16.mxu1 %v2057_v0  ;;  %1913 = vmatprep.mubr.msk.bf16.mxu1 %vm2058_vm1, %v2057_v0 }
0x10a0   :  { %1912 = vmatpush3.bf16.msra.mxu1 %v2128_v4 }
0x116a   :  { %v1290_v32 = vpop.f32.mrb[24].mxu0 }
0x116b   :  { %v1291_v2 = vadd.f32 %v1290_v32, %v1250_v29  ;;  %v1891_v33 = vpop.f32.mrb[25].mxu0 }
0x116c   :  { %v1293_v34 = vpop.f32.mrb[26].mxu0 }
0x116d   :  { %v1296_v36 = vadd.f32 %v2160_v15, %v1291_v2  ;;  %v1892_v37 = vpop.f32.mrb[27].mxu0 }
0x116e   :  { %v1363_v0 = vpop.f32.mrb[24].mxu1  ;;  %v2056_v37 = vld [vmem:[%s2626_s2 + $0x1] ss:$0 sm:$0xff] }
0x116f   :  { %2023 = vtanh.f32 %v1296_v36  ;;  %v1364_v4 = vadd.f32 %v1363_v0, %v1323_v3  ;;  %v1899_v39 = vpop.f32.mrb[25].mxu1  ;;  %v1729_v46 = vmul.f32 -1.442695, %v1296_v36 }
0x1170   :  { %v1366_v40 = vpop.f32.mrb[26].mxu1 }
0x1171   :  { %v1369_v41 = vadd.f32 %v2165_v17, %v1364_v4  ;;  %v1900_v42 = vpop.f32.mrb[27].mxu1 }
0x1173   :  { %2025 = vtanh.f32 %v1369_v41  ;;  %v1732_v48 = vmul.f32 -1.442695, %v1369_v41 }
0x1174   :  { %2027 = vpow2.f32 %v1729_v46 }
0x1175   :  { %2029 = vpow2.f32 %v1732_v48 }
0x1179   :  { %v2024_v43 = vpop.eup %2023 }
0x117a   :  { %1306 = vrot.lane.b32.xlu0 %v2024_v43, %s2059_s26 }
0x117d   :  { %v2026_v45 = vpop.eup %2025 }
0x117e   :  { %1379 = vrot.lane.b32.xlu1 %v2026_v45, %s2059_s26  ;;  %v2028_v15 = vpop.eup %2027 }
0x117f   :  { %v1300_v49 = vadd.f32 1.0, %v2028_v15  ;;  %v2030_v50 = vpop.eup %2029 }
0x1180   :  { %v1373_v51 = vadd.f32 1.0, %v2030_v50 }
0x1181   :  { %2031 = vrcp.f32 %v1300_v49 }
0x1182   :  { %2033 = vrcp.f32 %v1373_v51 }
0x118b   :  { %v2032_v52 = vpop.eup %2031 }
0x118c   :  { %v2034_v54 = vpop.eup %2033  ;;  %v1304_v59 = vmul.f32 %v2032_v52, %v2392_v10 }
0x118d   :  { %v1377_v62 = vmul.f32 %v2034_v54, %v2396_v14 }
0x11ec   :  { %v1307_v17 = vpop.permute.xlu0 %1306 }
0x11ed   :  { %v1309_v53 = vmul.f32 %v2032_v52, %v1307_v17 }
0x11ef   :  { %1311 = vrot.lane.b32.xlu0 %v1309_v53, %s2059_s26 }
0x11f0   :  { %v1380_v56 = vpop.permute.xlu1 %1379 }
0x11f1   :  { %v1382_v57 = vmul.f32 %v2034_v54, %v1380_v56 }
0x11f3   :  { %1384 = vrot.lane.b32.xlu1 %v1382_v57, %s2059_s26  ;;  %v271_v57 = vlaneseq }
0x1261   :  { %v1312_v60 = vpop.permute.xlu0 %1311 }
0x1262   :  { %v2434_v61 = vadd.f32 %v1312_v60, %v1304_v59 }
0x1264   :  { %2035 = vtanh.f32 %v2434_v61 }
0x1265   :  { %v1385_v63 = vpop.permute.xlu1 %1384 }
0x1266   :  { %v2438_v5 = vadd.f32 %v1385_v63, %v1377_v62 }
0x1268   :  { %2037 = vtanh.f32 %v2438_v5 }
0x126e   :  { %v2036_v6 = vpop.eup %2035 }
0x126f   :  { %1317 = vrot.lane.b32.xlu0 %v2036_v6, %s2059_s26  ;;  %v272_v6 = vshrl.u32 %v271_v57, 7 }
0x1272   :  { %v2038_v7 = vpop.eup %2037 }
0x1273   :  { %1390 = vrot.lane.b32.xlu1 %v2038_v7, %s2059_s26 }
0x12e1   :  { %v1318_v8 = vpop.permute.xlu0 %1317 }
0x12e2   :  { %v1320_v9 = vmul.f32 %v2032_v52, %v1318_v8 }
0x12e4   :  { %v2443_v10 = vpack.c.bf16 %v1320_v9, %v1320_v9 }
0x12e5   :  { %v1391_v11 = vpop.permute.xlu1 %1390 }
0x12e6   :  { %v1393_v12 = vmul.f32 %v2034_v54, %v1391_v11  ;;  %1439 = vrot.lane.b32.xlu0 %v2443_v10, %s2060_s9  ;;  %v2061_v54 = vmov 1966171168  }
0x12e7   :  { %v269_v56 = vunpack.c.l.s4 %v2061_v54 }
0x12e8   :  { %v2447_v14 = vpack.c.bf16 %v1393_v12, %v1393_v12 }
0x12e9   :  { %v270_v63 = vunpack.c.0.s8 %v269_v56 }
0x12ea   :  { %1511 = vrot.lane.b32.xlu1 %v2447_v14, %s2060_s9 }
0x12eb   :  { %v2482_v9 = vsub.s32 %v270_v63, %v272_v6 }
0x12ed   :  { %v295_v12 = vrot.slane %v2185_v58, %v2482_v9  ;;  %v483_v21 = vrot.slane %v2229_v47, %v2482_v9  ;;  %v838_v20 = vrot.slane %v2313_v28, %v2482_v9  ;;  %v1047_v28 = vrot.slane %v2361_v23, %v2482_v9 }
0x1358   :  { %v1440_v16 = vpop.permute.xlu0 %1439 }
0x1359   :  { %1906 = vmatmul.mubr.msk.bf16.vlgmr.msra.gmra.mrb[28].mxu0 %vm93_vm2, %v1440_v16 }
0x135c   :  { %v1512_v19 = vpop.permute.xlu1 %1511 }
0x135d   :  { %1914 = vmatmul.mubr.msk.bf16.vlgmr.msra.gmra.mrb[28].mxu1 %vm93_vm2, %v1512_v19 }
0x142c   :  { %v1478_v25 = vpop.f32.mrb[28].mxu0 }
0x142d   :  { %v1479_v26 = vadd.f32 %v1478_v25, %v1438_v13  ;;  %v1907_v27 = vpop.f32.mrb[29].mxu0  ;;  %v302_v13 = vrot.slane %v295_v12, %v2482_v9  ;;  %v490_v25 = vrot.slane %v483_v21, %v2482_v9 }
0x142e   :  { %v1481_v29 = vpop.f32.mrb[30].mxu0 }
0x142f   :  { %v1484_v32 = vadd.f32 %v2055_v31, %v1479_v26  ;;  %v1908_v2 = vpop.f32.mrb[31].mxu0  ;;  %v1026_v26 = vrot.slane %v2357_v24, %v2482_v9  ;;  %v1235_v24 = vrot.slane %v2405_v18, %v2482_v9  ;;  %v1402_v31 = vrot.slane %v2443_v10, %v2482_v9 }
0x1430   :  { %v1550_v33 = vpop.f32.mrb[28].mxu1 }
0x1431   :  { %2039 = vtanh.f32 %v1484_v32  ;;  %v1551_v3 = vadd.f32 %v1550_v33, %v1510_v1  ;;  %v1915_v34 = vpop.f32.mrb[29].mxu1  ;;  %v1737_v41 = vmul.f32 -1.442695, %v1484_v32  ;;  %v1214_v1 = vrot.slane %v2401_v22, %v2482_v9 }
0x1432   :  { %v1553_v36 = vpop.f32.mrb[30].mxu1  ;;  %v1054_v32 = vrot.slane %v1047_v28, %v2482_v9  ;;  %v1423_v22 = vrot.slane %v2447_v14, %v2482_v9  ;;  %v1242_v2 = vrot.slane %v1235_v24, %v2482_v9  ;;  %v1409_v33 = vrot.slane %v1402_v31, %v2482_v9 }
0x1433   :  { %v1556_v0 = vadd.f32 %v2056_v37, %v1551_v3  ;;  %v1916_v4 = vpop.f32.mrb[31].mxu1  ;;  %v1221_v23 = vrot.slane %v1214_v1, %v2482_v9 }
0x1434   :  { %v1430_v18 = vrot.slane %v1423_v22, %v2482_v9 }
0x1435   :  { %2041 = vtanh.f32 %v1556_v0  ;;  %v1739_v42 = vmul.f32 -1.442695, %v1556_v0 }
0x1436   :  { %2043 = vpow2.f32 %v1737_v41 }
0x1437   :  { %2045 = vpow2.f32 %v1739_v42 }
0x143b   :  { %v2040_v39 = vpop.eup %2039 }
0x143c   :  { %1494 = vrot.lane.b32.xlu0 %v2040_v39, %s2059_s26 }
0x143f   :  { %v2042_v40 = vpop.eup %2041 }
0x1440   :  { %1566 = vrot.lane.b32.xlu1 %v2042_v40, %s2059_s26  ;;  %v2044_v43 = vpop.eup %2043 }
0x1441   :  { %v1488_v45 = vadd.f32 1.0, %v2044_v43  ;;  %v2046_v46 = vpop.eup %2045 }
0x1442   :  { %v1560_v48 = vadd.f32 1.0, %v2046_v46 }
0x1443   :  { %2047 = vrcp.f32 %v1488_v45 }
0x1444   :  { %2049 = vrcp.f32 %v1560_v48 }
0x144d   :  { %v2467_v15 = vpop.eup %2047 }
0x144e   :  { %v2471_v51 = vpop.eup %2049  ;;  %v1492_v53 = vmul.f32 %v2467_v15, %v2434_v61  ;;  %v274_v61 = vrot.slane %v2181_v55, %v2482_v9  ;;  %v650_v55 = vrot.slane %v2269_v35, %v2482_v9  ;;  %v859_v35 = vrot.slane %v2317_v30, %v2482_v9 }
0x144f   :  { %v1564_v62 = vmul.f32 %v2471_v51, %v2438_v5  ;;  %v462_v5 = vrot.slane %v2225_v44, %v2482_v9  ;;  %v671_v44 = vrot.slane %v2273_v38, %v2482_v9  ;;  %v845_v38 = vrot.slane %v838_v20, %v2482_v9 }
0x1450   :  { %v281_v16 = vrot.slane %v274_v61, %v2482_v9  ;;  %v657_v47 = vrot.slane %v650_v55, %v2482_v9  ;;  %v866_v29 = vrot.slane %v859_v35, %v2482_v9  ;;  %v1033_v30 = vrot.slane %v1026_v26, %v2482_v9 }
0x1451   :  { %v469_v58 = vrot.slane %v462_v5, %v2482_v9  ;;  %v678_v27 = vrot.slane %v671_v44, %v2482_v9 }
0x14ae   :  { %v1495_v49 = vpop.permute.xlu0 %1494 }
0x14af   :  { %v1497_v50 = vmul.f32 %v2467_v15, %v1495_v49 }
0x14b1   :  { %1499 = vrot.lane.b32.xlu0 %v1497_v50, %s2059_s26 }
0x14b2   :  { %v1567_v52 = vpop.permute.xlu1 %1566 }
0x14b3   :  { %v1569_v17 = vmul.f32 %v2471_v51, %v1567_v52 }
0x14b5   :  { %1571 = vrot.lane.b32.xlu1 %v1569_v17, %s2059_s26 }
0x1523   :  { %v1500_v59 = vpop.permute.xlu0 %1499 }
0x1524   :  { %v1502_v60 = vadd.f32 %v1500_v59, %v1492_v53 }
0x1526   :  { %2051 = vtanh.f32 %v1502_v60 }
0x1527   :  { %v1572_v7 = vpop.permute.xlu1 %1571 }
0x1528   :  { %v2479_v8 = vadd.f32 %v1572_v7, %v1564_v62 }
0x152a   :  { %2053 = vtanh.f32 %v2479_v8 }
0x1530   :  { %v2052_v11 = vpop.eup %2051 }
0x1531   :  { %1505 = vrot.lane.b32.xlu0 %v2052_v11, %s2059_s26 }
0x1534   :  { %v2054_v19 = vpop.eup %2053 }
0x1535   :  { %1577 = vrot.lane.b32.xlu1 %v2054_v19, %s2059_s26  ;;  %282 = vrot.lane.b32.xlu0 %v281_v16, %s2060_s9 }
0x1539   :  { %303 = vrot.lane.b32.xlu1 %v302_v13, %s2060_s9  ;;  %470 = vrot.lane.b32.xlu0 %v469_v58, %s2060_s9 }
0x153d   :  { %491 = vrot.lane.b32.xlu1 %v490_v25, %s2060_s9  ;;  %658 = vrot.lane.b32.xlu0 %v657_v47, %s2060_s9 }
0x1541   :  { %679 = vrot.lane.b32.xlu1 %v678_v27, %s2060_s9  ;;  %846 = vrot.lane.b32.xlu0 %v845_v38, %s2060_s9 }
0x1545   :  { %867 = vrot.lane.b32.xlu1 %v866_v29, %s2060_s9  ;;  %1034 = vrot.lane.b32.xlu0 %v1033_v30, %s2060_s9 }
0x1549   :  { %1055 = vrot.lane.b32.xlu1 %v1054_v32, %s2060_s9  ;;  %1222 = vrot.lane.b32.xlu0 %v1221_v23, %s2060_s9 }
0x154d   :  { %1243 = vrot.lane.b32.xlu1 %v1242_v2, %s2060_s9  ;;  %1410 = vrot.lane.b32.xlu0 %v1409_v33, %s2060_s9 }
0x1551   :  { %1431 = vrot.lane.b32.xlu1 %v1430_v18, %s2060_s9 }
0x1555   :  { %1629 = vrot.lane.b32.xlu1 %v1502_v60, %s2062_s1 }
0x15a3   :  { %v1506_v10 = vpop.permute.xlu0 %1505 }
0x15a4   :  { %v1508_v3 = vmul.f32 %v2467_v15, %v1506_v10 }
0x15a6   :  { %v1581_v14 = vpack.c.bf16 %v1508_v3, %v1508_v3  ;;  %1623 = vrot.lane.b32.xlu0 %v1508_v3, %s2060_s9 }
0x15a7   :  { %v1578_v34 = vpop.permute.xlu1 %1577  ;;  %v283_v36 = vpop.permute.xlu0 %282 }
0x15a8   :  { %v1589_v37 = vrot.slane %v1581_v14, %v2482_v9  ;;  %v1580_v0 = vmul.f32 %v2471_v51, %v1578_v34  ;;  %286 = vst.msk [vmem:[%s2627_s4] sm:$0x1] %vm285_vm3, %v283_v36 }
0x15aa   :  { %v1602_v4 = vpack.c.bf16 %v1580_v0, %v1580_v0  ;;  %v1596_v39 = vrot.slane %v1589_v37, %v2482_v9 }
0x15ab   :  { %v304_v40 = vpop.permute.xlu1 %303  ;;  %v471_v41 = vpop.permute.xlu0 %470 }
0x15ac   :  { %v1610_v42 = vrot.slane %v1602_v4, %v2482_v9  ;;  %1686 = vst.msk [vmem:[%s2628_s5 + $0x7] sm:$0x1] %vm285_vm3, %v304_v40  ;;  %1693 = vst.msk [vmem:[%s2627_s4 + $0x1] sm:$0x1] %vm285_vm3, %v471_v41  ;;  %1597 = vrot.lane.b32.xlu0 %v1596_v39, %s2060_s9 }
0x15ae   :  { %v1617_v43 = vrot.slane %v1610_v42, %v2482_v9 }
0x15af   :  { %v492_v45 = vpop.permute.xlu1 %491  ;;  %v659_v46 = vpop.permute.xlu0 %658 }
0x15b0   :  { %1694 = vst.msk [vmem:[%s2628_s5 + $0x6] sm:$0x1] %vm285_vm3, %v492_v45  ;;  %1701 = vst.msk [vmem:[%s2627_s4 + $0x2] sm:$0x1] %vm285_vm3, %v659_v46  ;;  %1618 = vrot.lane.b32.xlu1 %v1617_v43, %s2060_s9  ;;  %1634 = vrot.lane.b32.xlu0 %v1580_v0, %s2060_s9 }
0x15b3   :  { %v680_v48 = vpop.permute.xlu1 %679  ;;  %v847_v15 = vpop.permute.xlu0 %846 }
0x15b4   :  { %1702 = vst.msk [vmem:[%s2628_s5 + $0x5] sm:$0x1] %vm285_vm3, %v680_v48  ;;  %1709 = vst.msk [vmem:[%s2627_s4 + $0x3] sm:$0x1] %vm285_vm3, %v847_v15  ;;  %1639 = vrot.lane.b32.xlu1 %v2479_v8, %s2062_s1 }
0x15b7   :  { %v868_v49 = vpop.permute.xlu1 %867  ;;  %v1035_v50 = vpop.permute.xlu0 %1034 }
0x15b8   :  { %1710 = vst.msk [vmem:[%s2628_s5 + $0x4] sm:$0x1] %vm285_vm3, %v868_v49  ;;  %1717 = vst.msk [vmem:[%s2627_s4 + $0x4] sm:$0x1] %vm285_vm3, %v1035_v50 }
0x15bb   :  { %v1056_v51 = vpop.permute.xlu1 %1055  ;;  %v1223_v52 = vpop.permute.xlu0 %1222 }
0x15bc   :  { %1718 = vst.msk [vmem:[%s2628_s5 + $0x3] sm:$0x1] %vm285_vm3, %v1056_v51  ;;  %1725 = vst.msk [vmem:[%s2627_s4 + $0x5] sm:$0x1] %vm285_vm3, %v1223_v52 }
0x15bf   :  { %v1244_v17 = vpop.permute.xlu1 %1243  ;;  %v1411_v53 = vpop.permute.xlu0 %1410 }
0x15c0   :  { %1726 = vst.msk [vmem:[%s2628_s5 + $0x2] sm:$0x1] %vm285_vm3, %v1244_v17  ;;  %1733 = vst.msk [vmem:[%s2627_s4 + $0x6] sm:$0x1] %vm285_vm3, %v1411_v53 }
0x15c3   :  { %v1432_v54 = vpop.permute.xlu1 %1431 }
0x15c4   :  { %1734 = vst.msk [vmem:[%s2628_s5 + $0x1] sm:$0x1] %vm285_vm3, %v1432_v54 }
0x15c7   :  { %v1630_v56 = vpop.permute.xlu1 %1629 }
0x15c8   :  { %1632 = vst.msk [vmem:[#allocation3] sm:$0x3] %vm55_vm0, %v1630_v56 }
0x1618   :  { %v1624_v57 = vpop.permute.xlu0 %1623 }
0x1619   :  { %1627 = vst.msk [vmem:[#allocation2] sm:$0x3] %vm55_vm0, %v1624_v57 }
0x161e   :  { %v1598_v59 = vpop.permute.xlu0 %1597 }
0x161f   :  { %1740 = vst.msk [vmem:[%s2627_s4 + $0x7] sm:$0x1] %vm285_vm3, %v1598_v59 }
0x1622   :  { %v1619_v60 = vpop.permute.xlu1 %1618  ;;  %v1635_v62 = vpop.permute.xlu0 %1634 }
0x1623   :  { %1621 = vst.msk [vmem:[%s2628_s5] sm:$0x1] %vm285_vm3, %v1619_v60 }
0x1624   :  { %1637 = vst.msk [vmem:[#allocation2 + $0x2] sm:$0x3] %vm55_vm0, %v1635_v62 }
0x1626   :  { %v1640_v63 = vpop.permute.xlu1 %1639 }
0x1627   :  { %1642 = vst.msk [vmem:[#allocation3 + $0x2] sm:$0x3] %vm55_vm0, %v1640_v63 }

</bundles_post_ra>
